<compile_context>
chip_gen: v7x
topology: tpu7x:2x2x1
jax: 0.10.0
libtpu: 0.0.40
codegen_flags: <defaults>
</compile_context>

<pallas_src>
import functools

import jax
import jax.numpy as jnp
import numpy as np
from jax.experimental import pallas as pl
from jax.experimental.pallas import tpu as pltpu

HIDDEN = 51          # real LSTM hidden size, as in the PyTorch module
HP = 64              # per-gate padded hidden size (lane-aligned chunk)
GATES = 4 * HP       # fused gate lanes = 256 (i, f, g, o), PyTorch gate order


# ---------------------------------------------------------------------------
# Kernel
# ---------------------------------------------------------------------------
def _sequence_kernel(xg_ref,        # (T, B_pad, 256) teacher-forced layer-1 pre-acts (x*w_in1 + b1, prescaled)
                     big_ref,       # (128, 512) fused RHS: [W2 | [W_hh1 ; 0]] (prescaled)
                     b2_ref,        # (1, 256)   lstm2 fused bias (prescaled)
                     wfeed_ref,     # (64, 256)  rank-1 feedback weight w_lin^T ⊗ w_in1 (prescaled)
                     b1fut_ref,     # (1, 256)   b1 + b_lin*w_in1 (prescaled)
                     w_lin_ref,     # (1, 64)    linear head weight (unscaled)
                     b_lin_ref,     # (1, 1)     linear head bias
                     out_ref,       # (B_pad, out_lanes)
                     *, seq_len, future):
    f32 = jnp.float32
    B = xg_ref.shape[1]
    out_lanes = out_ref.shape[1]
    total = seq_len + future

    # Only the tiny parameters stay resident; big slabs are read at point of
    # use inside each unrolled step (vld slots are otherwise idle here).
    b2 = b2_ref[...]
    b1_fut = b1fut_ref[...]
    w_lin = w_lin_ref[...]
    b_lin = b_lin_ref[...]

    lane_ids = jax.lax.broadcasted_iota(jnp.int32, (B, out_lanes), 1)
    gate_lane = jax.lax.broadcasted_iota(jnp.int32, (B, GATES), 1)
    # g-gate lanes (gate order i, f, g, o): tanh stays raw there, i/f/o lanes
    # were pre-scaled by 0.5 so sigmoid(z) = 0.5*tanh(z/2) + 0.5.
    g_mask = (gate_lane >= 2 * HP) & (gate_lane < 3 * HP)

    def gate_act(pre):
        t = jnp.tanh(pre)                       # one EUP pass over all 256 lanes
        return jnp.where(g_mask, t, 0.5 * t + 0.5)

    def cell_update(act, c):
        i = act[:, 0 * HP:1 * HP]
        f = act[:, 1 * HP:2 * HP]
        g = act[:, 2 * HP:3 * HP]
        o = act[:, 3 * HP:4 * HP]
        c_new = f * c + i * g
        h_new = o * jnp.tanh(c_new)
        # padded lanes: zero weights/bias -> pre=0 -> g=0 so c stays 0 and
        # h = 0.5*tanh(0) = 0; padding never leaks into real lanes.
        return h_new, c_new

    # zero-initialized state (as in the PyTorch forward), carried as values.
    c1 = jnp.zeros((B, HP), f32)
    c2 = jnp.zeros((B, HP), f32)
    h2 = jnp.zeros((B, HP), f32)
    r1 = jnp.zeros((B, GATES), f32)         # h1(t-1) @ W_hh1  (zero at t=0)
    in1 = xg_ref[0]                         # layer-1 input contribution, step 0
    out_acc = jnp.zeros((B, out_lanes), f32)

    # Fully unrolled recurrence (trip count is small & static).
    for t in range(total):
        # --- layer 1: pre-activation = recurrent part + input part ---------
        act1 = gate_act(r1 + in1)
        h1, c1 = cell_update(act1, c1)

        # --- fused push: layer-2 gates of step t  AND  layer-1 recurrent ----
        # pre-activation for step t+1, from L = [h1(t) | h2(t-1)].
        L = jnp.concatenate([h1, h2], axis=-1)                    # (B, 128)
        P = jnp.dot(L, big_ref[...], preferred_element_type=f32)  # (B, 512)
        gates2 = P[:, :GATES] + b2
        r1 = P[:, GATES:]                                         # h1(t) @ W_hh1

        act2 = gate_act(gates2)
        h2, c2 = cell_update(act2, c2)

        # --- linear head (off the critical path: only feeds the output) ----
        y = jnp.sum(h2 * w_lin, axis=-1, keepdims=True) + b_lin   # (B, 1)
        out_acc = jnp.where(lane_ids == t, y, out_acc)

        # --- next step's layer-1 input contribution -------------------------
        if t + 1 < seq_len:
            in1 = xg_ref[t + 1]                                   # teacher forcing
        elif t + 1 < total:
            # autoregressive: y(t)*w_in1 + b1 == h2(t) @ W_feed + b1_fut
            in1 = jnp.dot(h2, wfeed_ref[...],
                          preferred_element_type=f32) + b1_fut

    out_ref[...] = out_acc


# ---------------------------------------------------------------------------
# Wrapper
# ---------------------------------------------------------------------------
@functools.partial(jax.jit, static_argnames=("future",))
def sequence_forward(x, packed, future=0):
    """x: (batch, seq) float32. Returns (batch, seq + future) float32."""
    B, T = x.shape
    total = T + future
    B_pad = max(8, ((B + 7) // 8) * 8)
    out_lanes = ((total + 127) // 128) * 128

    # time-major, batch padded to a full sublane group
    x_tm = jnp.zeros((T, B_pad, 1), jnp.float32).at[:, :B, 0].set(
        jnp.transpose(x.astype(jnp.float32), (1, 0)))

    # Hoist all teacher-forced layer-1 input contributions out of the
    # recurrence: xg[t] = x_t * w_in1 + b1 (already gate-prescaled).
    xg = x_tm * packed["w_in1"] + packed["b1"]            # (T, B_pad, 256)

    kernel = functools.partial(_sequence_kernel, seq_len=T, future=future)
    vmem = pl.BlockSpec(memory_space=pltpu.MemorySpace.VMEM)

    out = pl.pallas_call(
        kernel,
        out_shape=jax.ShapeDtypeStruct((B_pad, out_lanes), jnp.float32),
        in_specs=[vmem] * 7,
        out_specs=vmem,
    )(xg, packed["big"], packed["b2"], packed["w_feed"], packed["b1_fut"],
      packed["w_lin"], packed["b_lin"])

    return out[:B, :total]


# ---------------------------------------------------------------------------
# Parameter construction (PyTorch-style uniform init, raw PyTorch shapes)
# ---------------------------------------------------------------------------
def init_params(key):
    stdv = 1.0 / np.sqrt(HIDDEN)

    def u(k, shape):
        return jax.random.uniform(k, shape, jnp.float32, -stdv, stdv)

    ks = jax.random.split(key, 10)
    w_ih1 = u(ks[0], (4 * HIDDEN, 1))
    w_hh1 = u(ks[1], (4 * HIDDEN, HIDDEN))
    b_ih1 = u(ks[2], (4 * HIDDEN,))
    b_hh1 = u(ks[3], (4 * HIDDEN,))
    w_ih2 = u(ks[4], (4 * HIDDEN, HIDDEN))
    w_hh2 = u(ks[5], (4 * HIDDEN, HIDDEN))
    b_ih2 = u(ks[6], (4 * HIDDEN,))
    b_hh2 = u(ks[7], (4 * HIDDEN,))
    w_lin = u(ks[8], (1, HIDDEN))
    b_lin = u(ks[9], (1,))
    return (w_ih1, w_hh1, b_ih1, b_hh1,
            w_ih2, w_hh2, b_ih2, b_hh2,
            w_lin, b_lin)


def pack_params(raw):
    """Re-pack raw PyTorch-shaped params into fused, zero-padded MXU slabs.

    A 0.5 pre-scale is baked into the i/f/o gate columns (and their biases) so
    the kernel can use a single tanh per 256-lane gate vreg:
        sigmoid(z) = 0.5 * tanh(0.5 * z) + 0.5.
    """
    (w_ih1, w_hh1, b_ih1, b_hh1,
     w_ih2, w_hh2, b_ih2, b_hh2,
     w_lin, b_lin) = raw

    # column scale: 0.5 for i, f, o gates; 1.0 for g (gate order i, f, g, o)
    col_scale = jnp.concatenate([
        jnp.full((HP,), 0.5, jnp.float32),
        jnp.full((HP,), 0.5, jnp.float32),
        jnp.ones((HP,), jnp.float32),
        jnp.full((HP,), 0.5, jnp.float32),
    ])                                                          # (256,)

    def fuse_gates(w, in_dim, in_pad):
        # w: (4H, in_dim), PyTorch gate order (i, f, g, o)
        w4 = jnp.transpose(w.reshape(4, HIDDEN, in_dim), (0, 2, 1))  # (4,in,H)
        w4 = jnp.pad(w4, ((0, 0), (0, in_pad - in_dim), (0, HP - HIDDEN)))
        # gate-major on the lane axis: (in_pad, 4*HP)
        return jnp.transpose(w4, (1, 0, 2)).reshape(in_pad, GATES)

    def fuse_bias(b_ih, b_hh):
        b = (b_ih + b_hh).reshape(4, HIDDEN)
        b = jnp.pad(b, ((0, 0), (0, HP - HIDDEN)))   # padded lanes stay zero
        return b.reshape(1, GATES)

    w_in1 = fuse_gates(w_ih1, 1, 1) * col_scale                 # (1, 256)
    w_hh1_p = fuse_gates(w_hh1, HIDDEN, HP) * col_scale         # (64, 256)
    b1 = fuse_bias(b_ih1, b_hh1) * col_scale                    # (1, 256)
    w2 = jnp.concatenate([fuse_gates(w_ih2, HIDDEN, HP),        # rows 0:64  <- h1
                          fuse_gates(w_hh2, HIDDEN, HP)],       # rows 64:128 <- h2(t-1)
                         axis=0) * col_scale                    # (128, 256)
    b2 = fuse_bias(b_ih2, b_hh2) * col_scale                    # (1, 256)

    # fused RHS: lanes 0:256 -> gates2(t); lanes 256:512 -> h1(t)@W_hh1 (zero
    # rows for the h2 half so h2(t-1) never leaks into layer-1's gates).
    big = jnp.concatenate(
        [w2,
         jnp.concatenate([w_hh1_p, jnp.zeros((HP, GATES), jnp.float32)],
                         axis=0)],
        axis=1)                                                 # (128, 512)

    w_lin_p = jnp.pad(w_lin.astype(jnp.float32),
                      ((0, 0), (0, HP - HIDDEN)))               # (1, 64)
    b_lin_p = b_lin.reshape(1, 1).astype(jnp.float32)           # (1, 1)

    # autoregressive feedback:  y*w_in1 + b1  ==  h2 @ W_feed + b1_fut
    w_feed = w_lin_p.reshape(HP, 1) * w_in1                     # (64, 256) rank-1
    b1_fut = b1 + b_lin_p * w_in1                               # (1, 256)

    return dict(w_in1=w_in1, b1=b1, big=big, b2=b2,
                w_feed=w_feed, b1_fut=b1_fut,
                w_lin=w_lin_p, b_lin=b_lin_p)


# ---------------------------------------------------------------------------
# Pure-JAX reference (raw PyTorch shapes; exercises the packing too)
# ---------------------------------------------------------------------------
def reference_forward(x, raw, future=0):
    (w_ih1, w_hh1, b_ih1, b_hh1,
     w_ih2, w_hh2, b_ih2, b_hh2,
     w_lin, b_lin) = raw
    B, T = x.shape
    H = HIDDEN
    hi = jax.lax.Precision.HIGHEST

    def cell(xt, h, c, w_ih, w_hh, bi, bh):
        z = (jnp.dot(xt, w_ih.T, precision=hi)
             + jnp.dot(h, w_hh.T, precision=hi) + bi + bh)
        i = jax.nn.sigmoid(z[:, 0:H])
        f = jax.nn.sigmoid(z[:, H:2 * H])
        g = jnp.tanh(z[:, 2 * H:3 * H])
        o = jax.nn.sigmoid(z[:, 3 * H:4 * H])
        c = f * c + i * g
        h = o * jnp.tanh(c)
        return h, c

    h1 = jnp.zeros((B, H), jnp.float32)
    c1 = jnp.zeros((B, H), jnp.float32)
    h2 = jnp.zeros((B, H), jnp.float32)
    c2 = jnp.zeros((B, H), jnp.float32)
    y = jnp.zeros((B, 1), jnp.float32)
    outs = []
    for t in range(T):
        xt = x[:, t:t + 1]
        h1, c1 = cell(xt, h1, c1, w_ih1, w_hh1, b_ih1, b_hh1)
        h2, c2 = cell(h1, h2, c2, w_ih2, w_hh2, b_ih2, b_hh2)
        y = jnp.dot(h2, w_lin.T, precision=hi) + b_lin
        outs.append(y)
    for _ in range(future):
        h1, c1 = cell(y, h1, c1, w_ih1, w_hh1, b_ih1, b_hh1)
        h2, c2 = cell(h1, h2, c2, w_ih2, w_hh2, b_ih2, b_hh2)
        y = jnp.dot(h2, w_lin.T, precision=hi) + b_lin
        outs.append(y)
    return jnp.concatenate(outs, axis=1)  # (B, T + future)


# ---------------------------------------------------------------------------
if __name__ == "__main__":
    key = jax.random.PRNGKey(0)
    k_param, k_x = jax.random.split(key)

    B, T, FUTURE = 4, 8, 4
    raw = init_params(k_param)
    packed = pack_params(raw)
    x = jax.random.normal(k_x, (B, T), jnp.float32)

    out = sequence_forward(x, packed, future=FUTURE)
    out = jax.block_until_ready(out)

    ref = reference_forward(x, raw, future=FUTURE)
    np.testing.assert_allclose(np.asarray(out), np.asarray(ref),
                               rtol=2e-4, atol=2e-4)
    assert out.shape == (B, T + FUTURE)

    print("KERNEL_OK")
</pallas_src>

<mosaic_0001>
module attributes {stable_mosaic.version = 11 : i64} {
  func.func @_sequence_kernel(%arg0: memref<8x8x256xf32, #tpu.memory_space<vmem>>, %arg1: memref<128x512xf32, #tpu.memory_space<vmem>>, %arg2: memref<1x256xf32, #tpu.memory_space<vmem>>, %arg3: memref<64x256xf32, #tpu.memory_space<vmem>>, %arg4: memref<1x256xf32, #tpu.memory_space<vmem>>, %arg5: memref<1x64xf32, #tpu.memory_space<vmem>>, %arg6: memref<1x1xf32, #tpu.memory_space<vmem>>, %arg7: memref<8x128xf32, #tpu.memory_space<vmem>>) attributes {dimension_semantics = [], scalar_prefetch = 0 : i64, scratch_operands = 0 : i64, tpu.core_type = #tpu.core_type<tc>} {
    %c0 = arith.constant 0 : index
    %c0_0 = arith.constant 0 : index
    %0 = vector.load %arg2[%c0, %c0_0] : memref<1x256xf32, #tpu.memory_space<vmem>>, vector<1x256xf32>
    %c0_1 = arith.constant 0 : index
    %c0_2 = arith.constant 0 : index
    %1 = vector.load %arg4[%c0_1, %c0_2] : memref<1x256xf32, #tpu.memory_space<vmem>>, vector<1x256xf32>
    %c0_3 = arith.constant 0 : index
    %c0_4 = arith.constant 0 : index
    %2 = vector.load %arg5[%c0_3, %c0_4] : memref<1x64xf32, #tpu.memory_space<vmem>>, vector<1x64xf32>
    %c0_5 = arith.constant 0 : index
    %c0_6 = arith.constant 0 : index
    %3 = vector.load %arg6[%c0_5, %c0_6] : memref<1x1xf32, #tpu.memory_space<vmem>>, vector<1x1xf32>
    %4 = tpu.iota {dimensions = array<i32: 1>} : vector<8x128xi32>
    %5 = tpu.iota {dimensions = array<i32: 1>} : vector<8x256xi32>
    %c128_i32 = arith.constant 128 : i32
    %6 = vector.broadcast %c128_i32 : i32 to vector<8x256xi32>
    %7 = arith.cmpi sge, %5, %6 : vector<8x256xi32>
    %c192_i32 = arith.constant 192 : i32
    %8 = vector.broadcast %c192_i32 : i32 to vector<8x256xi32>
    %9 = arith.cmpi slt, %5, %8 : vector<8x256xi32>
    %10 = arith.andi %7, %9 : vector<8x256xi1>
    %cst = arith.constant 0.000000e+00 : f32
    %11 = vector.broadcast %cst : f32 to vector<8x64xf32>
    %cst_7 = arith.constant 0.000000e+00 : f32
    %12 = vector.broadcast %cst_7 : f32 to vector<8x64xf32>
    %cst_8 = arith.constant 0.000000e+00 : f32
    %13 = vector.broadcast %cst_8 : f32 to vector<8x64xf32>
    %cst_9 = arith.constant 0.000000e+00 : f32
    %14 = vector.broadcast %cst_9 : f32 to vector<8x256xf32>
    %c0_10 = arith.constant 0 : index
    %c0_11 = arith.constant 0 : index
    %c0_12 = arith.constant 0 : index
    %15 = vector.load %arg0[%c0_10, %c0_11, %c0_12] : memref<8x8x256xf32, #tpu.memory_space<vmem>>, vector<1x8x256xf32>
    %16 = vector.shape_cast %15 : vector<1x8x256xf32> to vector<8x256xf32>
    %cst_13 = arith.constant 0.000000e+00 : f32
    %17 = vector.broadcast %cst_13 : f32 to vector<8x128xf32>
    %18 = arith.addf %14, %16 : vector<8x256xf32>
    %19 = math.tanh %18 : vector<8x256xf32>
    %cst_14 = arith.constant 5.000000e-01 : f32
    %20 = vector.broadcast %cst_14 : f32 to vector<8x256xf32>
    %21 = arith.mulf %20, %19 : vector<8x256xf32>
    %cst_15 = arith.constant 5.000000e-01 : f32
    %22 = vector.broadcast %cst_15 : f32 to vector<8x256xf32>
    %23 = arith.addf %21, %22 : vector<8x256xf32>
    %24 = arith.select %10, %19, %23 : vector<8x256xi1>, vector<8x256xf32>
    %25 = vector.extract_strided_slice %24 {offsets = [0, 0], sizes = [8, 64], strides = [1, 1]} : vector<8x256xf32> to vector<8x64xf32>
    %26 = vector.extract_strided_slice %24 {offsets = [0, 64], sizes = [8, 64], strides = [1, 1]} : vector<8x256xf32> to vector<8x64xf32>
    %27 = vector.extract_strided_slice %24 {offsets = [0, 128], sizes = [8, 64], strides = [1, 1]} : vector<8x256xf32> to vector<8x64xf32>
    %28 = vector.extract_strided_slice %24 {offsets = [0, 192], sizes = [8, 64], strides = [1, 1]} : vector<8x256xf32> to vector<8x64xf32>
    %29 = arith.mulf %26, %11 : vector<8x64xf32>
    %30 = arith.mulf %25, %27 : vector<8x64xf32>
    %31 = arith.addf %29, %30 : vector<8x64xf32>
    %32 = math.tanh %31 : vector<8x64xf32>
    %33 = arith.mulf %28, %32 : vector<8x64xf32>
    %34 = tpu.concatenate %33, %13 in 1 : vector<8x64xf32>, vector<8x64xf32> -> vector<8x128xf32>
    %c0_16 = arith.constant 0 : index
    %c0_17 = arith.constant 0 : index
    %35 = vector.load %arg1[%c0_16, %c0_17] : memref<128x512xf32, #tpu.memory_space<vmem>>, vector<128x512xf32>
    %cst_18 = arith.constant dense<0.000000e+00> : vector<8x512xf32>
    %36 = tpu.matmul %34, %35, %cst_18 {dimension_numbers = #tpu.dot_dimension_numbers<[1], [0], [0], [1], [0, 0, 1, 1], [], []>} : vector<8x128xf32>, vector<128x512xf32>, vector<8x512xf32> -> vector<8x512xf32>
    %37 = vector.extract_strided_slice %36 {offsets = [0, 0], sizes = [8, 256], strides = [1, 1]} : vector<8x512xf32> to vector<8x256xf32>
    %38 = vector.broadcast %0 : vector<1x256xf32> to vector<8x256xf32>
    %39 = arith.addf %37, %38 : vector<8x256xf32>
    %40 = vector.extract_strided_slice %36 {offsets = [0, 256], sizes = [8, 256], strides = [1, 1]} : vector<8x512xf32> to vector<8x256xf32>
    %41 = math.tanh %39 : vector<8x256xf32>
    %cst_19 = arith.constant 5.000000e-01 : f32
    %42 = vector.broadcast %cst_19 : f32 to vector<8x256xf32>
    %43 = arith.mulf %42, %41 : vector<8x256xf32>
    %cst_20 = arith.constant 5.000000e-01 : f32
    %44 = vector.broadcast %cst_20 : f32 to vector<8x256xf32>
    %45 = arith.addf %43, %44 : vector<8x256xf32>
    %46 = arith.select %10, %41, %45 : vector<8x256xi1>, vector<8x256xf32>
    %47 = vector.extract_strided_slice %46 {offsets = [0, 0], sizes = [8, 64], strides = [1, 1]} : vector<8x256xf32> to vector<8x64xf32>
    %48 = vector.extract_strided_slice %46 {offsets = [0, 64], sizes = [8, 64], strides = [1, 1]} : vector<8x256xf32> to vector<8x64xf32>
    %49 = vector.extract_strided_slice %46 {offsets = [0, 128], sizes = [8, 64], strides = [1, 1]} : vector<8x256xf32> to vector<8x64xf32>
    %50 = vector.extract_strided_slice %46 {offsets = [0, 192], sizes = [8, 64], strides = [1, 1]} : vector<8x256xf32> to vector<8x64xf32>
    %51 = arith.mulf %48, %12 : vector<8x64xf32>
    %52 = arith.mulf %47, %49 : vector<8x64xf32>
    %53 = arith.addf %51, %52 : vector<8x64xf32>
    %54 = math.tanh %53 : vector<8x64xf32>
    %55 = arith.mulf %50, %54 : vector<8x64xf32>
    %56 = vector.broadcast %2 : vector<1x64xf32> to vector<8x64xf32>
    %57 = arith.mulf %55, %56 : vector<8x64xf32>
    %cst_21 = arith.constant dense<0.000000e+00> : vector<8xf32>
    %58 = vector.multi_reduction <add>, %57, %cst_21 [1] : vector<8x64xf32> to vector<8xf32>
    %59 = vector.shape_cast %58 : vector<8xf32> to vector<8x1xf32>
    %60 = vector.broadcast %3 : vector<1x1xf32> to vector<8x1xf32>
    %61 = arith.addf %59, %60 : vector<8x1xf32>
    %c0_i32 = arith.constant 0 : i32
    %62 = vector.broadcast %c0_i32 : i32 to vector<8x128xi32>
    %63 = arith.cmpi eq, %4, %62 : vector<8x128xi32>
    %64 = vector.shape_cast %61 : vector<8x1xf32> to vector<8x1xf32>
    %65 = vector.broadcast %64 : vector<8x1xf32> to vector<8x128xf32>
    %66 = arith.select %63, %65, %17 : vector<8x128xi1>, vector<8x128xf32>
    %c1 = arith.constant 1 : index
    %c0_22 = arith.constant 0 : index
    %c0_23 = arith.constant 0 : index
    %67 = vector.load %arg0[%c1, %c0_22, %c0_23] : memref<8x8x256xf32, #tpu.memory_space<vmem>>, vector<1x8x256xf32>
    %68 = vector.shape_cast %67 : vector<1x8x256xf32> to vector<8x256xf32>
    %69 = arith.addf %40, %68 : vector<8x256xf32>
    %70 = math.tanh %69 : vector<8x256xf32>
    %cst_24 = arith.constant 5.000000e-01 : f32
    %71 = vector.broadcast %cst_24 : f32 to vector<8x256xf32>
    %72 = arith.mulf %71, %70 : vector<8x256xf32>
    %cst_25 = arith.constant 5.000000e-01 : f32
    %73 = vector.broadcast %cst_25 : f32 to vector<8x256xf32>
    %74 = arith.addf %72, %73 : vector<8x256xf32>
    %75 = arith.select %10, %70, %74 : vector<8x256xi1>, vector<8x256xf32>
    %76 = vector.extract_strided_slice %75 {offsets = [0, 0], sizes = [8, 64], strides = [1, 1]} : vector<8x256xf32> to vector<8x64xf32>
    %77 = vector.extract_strided_slice %75 {offsets = [0, 64], sizes = [8, 64], strides = [1, 1]} : vector<8x256xf32> to vector<8x64xf32>
    %78 = vector.extract_strided_slice %75 {offsets = [0, 128], sizes = [8, 64], strides = [1, 1]} : vector<8x256xf32> to vector<8x64xf32>
    %79 = vector.extract_strided_slice %75 {offsets = [0, 192], sizes = [8, 64], strides = [1, 1]} : vector<8x256xf32> to vector<8x64xf32>
    %80 = arith.mulf %77, %31 : vector<8x64xf32>
    %81 = arith.mulf %76, %78 : vector<8x64xf32>
    %82 = arith.addf %80, %81 : vector<8x64xf32>
    %83 = math.tanh %82 : vector<8x64xf32>
    %84 = arith.mulf %79, %83 : vector<8x64xf32>
    %85 = tpu.concatenate %84, %55 in 1 : vector<8x64xf32>, vector<8x64xf32> -> vector<8x128xf32>
    %c0_26 = arith.constant 0 : index
    %c0_27 = arith.constant 0 : index
    %86 = vector.load %arg1[%c0_26, %c0_27] : memref<128x512xf32, #tpu.memory_space<vmem>>, vector<128x512xf32>
    %cst_28 = arith.constant dense<0.000000e+00> : vector<8x512xf32>
    %87 = tpu.matmul %85, %86, %cst_28 {dimension_numbers = #tpu.dot_dimension_numbers<[1], [0], [0], [1], [0, 0, 1, 1], [], []>} : vector<8x128xf32>, vector<128x512xf32>, vector<8x512xf32> -> vector<8x512xf32>
    %88 = vector.extract_strided_slice %87 {offsets = [0, 0], sizes = [8, 256], strides = [1, 1]} : vector<8x512xf32> to vector<8x256xf32>
    %89 = vector.broadcast %0 : vector<1x256xf32> to vector<8x256xf32>
    %90 = arith.addf %88, %89 : vector<8x256xf32>
    %91 = vector.extract_strided_slice %87 {offsets = [0, 256], sizes = [8, 256], strides = [1, 1]} : vector<8x512xf32> to vector<8x256xf32>
    %92 = math.tanh %90 : vector<8x256xf32>
    %cst_29 = arith.constant 5.000000e-01 : f32
    %93 = vector.broadcast %cst_29 : f32 to vector<8x256xf32>
    %94 = arith.mulf %93, %92 : vector<8x256xf32>
    %cst_30 = arith.constant 5.000000e-01 : f32
    %95 = vector.broadcast %cst_30 : f32 to vector<8x256xf32>
    %96 = arith.addf %94, %95 : vector<8x256xf32>
    %97 = arith.select %10, %92, %96 : vector<8x256xi1>, vector<8x256xf32>
    %98 = vector.extract_strided_slice %97 {offsets = [0, 0], sizes = [8, 64], strides = [1, 1]} : vector<8x256xf32> to vector<8x64xf32>
    %99 = vector.extract_strided_slice %97 {offsets = [0, 64], sizes = [8, 64], strides = [1, 1]} : vector<8x256xf32> to vector<8x64xf32>
    %100 = vector.extract_strided_slice %97 {offsets = [0, 128], sizes = [8, 64], strides = [1, 1]} : vector<8x256xf32> to vector<8x64xf32>
    %101 = vector.extract_strided_slice %97 {offsets = [0, 192], sizes = [8, 64], strides = [1, 1]} : vector<8x256xf32> to vector<8x64xf32>
    %102 = arith.mulf %99, %53 : vector<8x64xf32>
    %103 = arith.mulf %98, %100 : vector<8x64xf32>
    %104 = arith.addf %102, %103 : vector<8x64xf32>
    %105 = math.tanh %104 : vector<8x64xf32>
    %106 = arith.mulf %101, %105 : vector<8x64xf32>
    %107 = vector.broadcast %2 : vector<1x64xf32> to vector<8x64xf32>
    %108 = arith.mulf %106, %107 : vector<8x64xf32>
    %cst_31 = arith.constant dense<0.000000e+00> : vector<8xf32>
    %109 = vector.multi_reduction <add>, %108, %cst_31 [1] : vector<8x64xf32> to vector<8xf32>
    %110 = vector.shape_cast %109 : vector<8xf32> to vector<8x1xf32>
    %111 = vector.broadcast %3 : vector<1x1xf32> to vector<8x1xf32>
    %112 = arith.addf %110, %111 : vector<8x1xf32>
    %c1_i32 = arith.constant 1 : i32
    %113 = vector.broadcast %c1_i32 : i32 to vector<8x128xi32>
    %114 = arith.cmpi eq, %4, %113 : vector<8x128xi32>
    %115 = vector.shape_cast %112 : vector<8x1xf32> to vector<8x1xf32>
    %116 = vector.broadcast %115 : vector<8x1xf32> to vector<8x128xf32>
    %117 = arith.select %114, %116, %66 : vector<8x128xi1>, vector<8x128xf32>
    %c2 = arith.constant 2 : index
    %c0_32 = arith.constant 0 : index
    %c0_33 = arith.constant 0 : index
    %118 = vector.load %arg0[%c2, %c0_32, %c0_33] : memref<8x8x256xf32, #tpu.memory_space<vmem>>, vector<1x8x256xf32>
    %119 = vector.shape_cast %118 : vector<1x8x256xf32> to vector<8x256xf32>
    %120 = arith.addf %91, %119 : vector<8x256xf32>
    %121 = math.tanh %120 : vector<8x256xf32>
    %cst_34 = arith.constant 5.000000e-01 : f32
    %122 = vector.broadcast %cst_34 : f32 to vector<8x256xf32>
    %123 = arith.mulf %122, %121 : vector<8x256xf32>
    %cst_35 = arith.constant 5.000000e-01 : f32
    %124 = vector.broadcast %cst_35 : f32 to vector<8x256xf32>
    %125 = arith.addf %123, %124 : vector<8x256xf32>
    %126 = arith.select %10, %121, %125 : vector<8x256xi1>, vector<8x256xf32>
    %127 = vector.extract_strided_slice %126 {offsets = [0, 0], sizes = [8, 64], strides = [1, 1]} : vector<8x256xf32> to vector<8x64xf32>
    %128 = vector.extract_strided_slice %126 {offsets = [0, 64], sizes = [8, 64], strides = [1, 1]} : vector<8x256xf32> to vector<8x64xf32>
    %129 = vector.extract_strided_slice %126 {offsets = [0, 128], sizes = [8, 64], strides = [1, 1]} : vector<8x256xf32> to vector<8x64xf32>
    %130 = vector.extract_strided_slice %126 {offsets = [0, 192], sizes = [8, 64], strides = [1, 1]} : vector<8x256xf32> to vector<8x64xf32>
    %131 = arith.mulf %128, %82 : vector<8x64xf32>
    %132 = arith.mulf %127, %129 : vector<8x64xf32>
    %133 = arith.addf %131, %132 : vector<8x64xf32>
    %134 = math.tanh %133 : vector<8x64xf32>
    %135 = arith.mulf %130, %134 : vector<8x64xf32>
    %136 = tpu.concatenate %135, %106 in 1 : vector<8x64xf32>, vector<8x64xf32> -> vector<8x128xf32>
    %c0_36 = arith.constant 0 : index
    %c0_37 = arith.constant 0 : index
    %137 = vector.load %arg1[%c0_36, %c0_37] : memref<128x512xf32, #tpu.memory_space<vmem>>, vector<128x512xf32>
    %cst_38 = arith.constant dense<0.000000e+00> : vector<8x512xf32>
    %138 = tpu.matmul %136, %137, %cst_38 {dimension_numbers = #tpu.dot_dimension_numbers<[1], [0], [0], [1], [0, 0, 1, 1], [], []>} : vector<8x128xf32>, vector<128x512xf32>, vector<8x512xf32> -> vector<8x512xf32>
    %139 = vector.extract_strided_slice %138 {offsets = [0, 0], sizes = [8, 256], strides = [1, 1]} : vector<8x512xf32> to vector<8x256xf32>
    %140 = vector.broadcast %0 : vector<1x256xf32> to vector<8x256xf32>
    %141 = arith.addf %139, %140 : vector<8x256xf32>
    %142 = vector.extract_strided_slice %138 {offsets = [0, 256], sizes = [8, 256], strides = [1, 1]} : vector<8x512xf32> to vector<8x256xf32>
    %143 = math.tanh %141 : vector<8x256xf32>
    %cst_39 = arith.constant 5.000000e-01 : f32
    %144 = vector.broadcast %cst_39 : f32 to vector<8x256xf32>
    %145 = arith.mulf %144, %143 : vector<8x256xf32>
    %cst_40 = arith.constant 5.000000e-01 : f32
    %146 = vector.broadcast %cst_40 : f32 to vector<8x256xf32>
    %147 = arith.addf %145, %146 : vector<8x256xf32>
    %148 = arith.select %10, %143, %147 : vector<8x256xi1>, vector<8x256xf32>
    %149 = vector.extract_strided_slice %148 {offsets = [0, 0], sizes = [8, 64], strides = [1, 1]} : vector<8x256xf32> to vector<8x64xf32>
    %150 = vector.extract_strided_slice %148 {offsets = [0, 64], sizes = [8, 64], strides = [1, 1]} : vector<8x256xf32> to vector<8x64xf32>
    %151 = vector.extract_strided_slice %148 {offsets = [0, 128], sizes = [8, 64], strides = [1, 1]} : vector<8x256xf32> to vector<8x64xf32>
    %152 = vector.extract_strided_slice %148 {offsets = [0, 192], sizes = [8, 64], strides = [1, 1]} : vector<8x256xf32> to vector<8x64xf32>
    %153 = arith.mulf %150, %104 : vector<8x64xf32>
    %154 = arith.mulf %149, %151 : vector<8x64xf32>
    %155 = arith.addf %153, %154 : vector<8x64xf32>
    %156 = math.tanh %155 : vector<8x64xf32>
    %157 = arith.mulf %152, %156 : vector<8x64xf32>
    %158 = vector.broadcast %2 : vector<1x64xf32> to vector<8x64xf32>
    %159 = arith.mulf %157, %158 : vector<8x64xf32>
    %cst_41 = arith.constant dense<0.000000e+00> : vector<8xf32>
    %160 = vector.multi_reduction <add>, %159, %cst_41 [1] : vector<8x64xf32> to vector<8xf32>
    %161 = vector.shape_cast %160 : vector<8xf32> to vector<8x1xf32>
    %162 = vector.broadcast %3 : vector<1x1xf32> to vector<8x1xf32>
    %163 = arith.addf %161, %162 : vector<8x1xf32>
    %c2_i32 = arith.constant 2 : i32
    %164 = vector.broadcast %c2_i32 : i32 to vector<8x128xi32>
    %165 = arith.cmpi eq, %4, %164 : vector<8x128xi32>
    %166 = vector.shape_cast %163 : vector<8x1xf32> to vector<8x1xf32>
    %167 = vector.broadcast %166 : vector<8x1xf32> to vector<8x128xf32>
    %168 = arith.select %165, %167, %117 : vector<8x128xi1>, vector<8x128xf32>
    %c3 = arith.constant 3 : index
    %c0_42 = arith.constant 0 : index
    %c0_43 = arith.constant 0 : index
    %169 = vector.load %arg0[%c3, %c0_42, %c0_43] : memref<8x8x256xf32, #tpu.memory_space<vmem>>, vector<1x8x256xf32>
    %170 = vector.shape_cast %169 : vector<1x8x256xf32> to vector<8x256xf32>
    %171 = arith.addf %142, %170 : vector<8x256xf32>
    %172 = math.tanh %171 : vector<8x256xf32>
    %cst_44 = arith.constant 5.000000e-01 : f32
    %173 = vector.broadcast %cst_44 : f32 to vector<8x256xf32>
    %174 = arith.mulf %173, %172 : vector<8x256xf32>
    %cst_45 = arith.constant 5.000000e-01 : f32
    %175 = vector.broadcast %cst_45 : f32 to vector<8x256xf32>
    %176 = arith.addf %174, %175 : vector<8x256xf32>
    %177 = arith.select %10, %172, %176 : vector<8x256xi1>, vector<8x256xf32>
    %178 = vector.extract_strided_slice %177 {offsets = [0, 0], sizes = [8, 64], strides = [1, 1]} : vector<8x256xf32> to vector<8x64xf32>
    %179 = vector.extract_strided_slice %177 {offsets = [0, 64], sizes = [8, 64], strides = [1, 1]} : vector<8x256xf32> to vector<8x64xf32>
    %180 = vector.extract_strided_slice %177 {offsets = [0, 128], sizes = [8, 64], strides = [1, 1]} : vector<8x256xf32> to vector<8x64xf32>
    %181 = vector.extract_strided_slice %177 {offsets = [0, 192], sizes = [8, 64], strides = [1, 1]} : vector<8x256xf32> to vector<8x64xf32>
    %182 = arith.mulf %179, %133 : vector<8x64xf32>
    %183 = arith.mulf %178, %180 : vector<8x64xf32>
    %184 = arith.addf %182, %183 : vector<8x64xf32>
    %185 = math.tanh %184 : vector<8x64xf32>
    %186 = arith.mulf %181, %185 : vector<8x64xf32>
    %187 = tpu.concatenate %186, %157 in 1 : vector<8x64xf32>, vector<8x64xf32> -> vector<8x128xf32>
    %c0_46 = arith.constant 0 : index
    %c0_47 = arith.constant 0 : index
    %188 = vector.load %arg1[%c0_46, %c0_47] : memref<128x512xf32, #tpu.memory_space<vmem>>, vector<128x512xf32>
    %cst_48 = arith.constant dense<0.000000e+00> : vector<8x512xf32>
    %189 = tpu.matmul %187, %188, %cst_48 {dimension_numbers = #tpu.dot_dimension_numbers<[1], [0], [0], [1], [0, 0, 1, 1], [], []>} : vector<8x128xf32>, vector<128x512xf32>, vector<8x512xf32> -> vector<8x512xf32>
    %190 = vector.extract_strided_slice %189 {offsets = [0, 0], sizes = [8, 256], strides = [1, 1]} : vector<8x512xf32> to vector<8x256xf32>
    %191 = vector.broadcast %0 : vector<1x256xf32> to vector<8x256xf32>
    %192 = arith.addf %190, %191 : vector<8x256xf32>
    %193 = vector.extract_strided_slice %189 {offsets = [0, 256], sizes = [8, 256], strides = [1, 1]} : vector<8x512xf32> to vector<8x256xf32>
    %194 = math.tanh %192 : vector<8x256xf32>
    %cst_49 = arith.constant 5.000000e-01 : f32
    %195 = vector.broadcast %cst_49 : f32 to vector<8x256xf32>
    %196 = arith.mulf %195, %194 : vector<8x256xf32>
    %cst_50 = arith.constant 5.000000e-01 : f32
    %197 = vector.broadcast %cst_50 : f32 to vector<8x256xf32>
    %198 = arith.addf %196, %197 : vector<8x256xf32>
    %199 = arith.select %10, %194, %198 : vector<8x256xi1>, vector<8x256xf32>
    %200 = vector.extract_strided_slice %199 {offsets = [0, 0], sizes = [8, 64], strides = [1, 1]} : vector<8x256xf32> to vector<8x64xf32>
    %201 = vector.extract_strided_slice %199 {offsets = [0, 64], sizes = [8, 64], strides = [1, 1]} : vector<8x256xf32> to vector<8x64xf32>
    %202 = vector.extract_strided_slice %199 {offsets = [0, 128], sizes = [8, 64], strides = [1, 1]} : vector<8x256xf32> to vector<8x64xf32>
    %203 = vector.extract_strided_slice %199 {offsets = [0, 192], sizes = [8, 64], strides = [1, 1]} : vector<8x256xf32> to vector<8x64xf32>
    %204 = arith.mulf %201, %155 : vector<8x64xf32>
    %205 = arith.mulf %200, %202 : vector<8x64xf32>
    %206 = arith.addf %204, %205 : vector<8x64xf32>
    %207 = math.tanh %206 : vector<8x64xf32>
    %208 = arith.mulf %203, %207 : vector<8x64xf32>
    %209 = vector.broadcast %2 : vector<1x64xf32> to vector<8x64xf32>
    %210 = arith.mulf %208, %209 : vector<8x64xf32>
    %cst_51 = arith.constant dense<0.000000e+00> : vector<8xf32>
    %211 = vector.multi_reduction <add>, %210, %cst_51 [1] : vector<8x64xf32> to vector<8xf32>
    %212 = vector.shape_cast %211 : vector<8xf32> to vector<8x1xf32>
    %213 = vector.broadcast %3 : vector<1x1xf32> to vector<8x1xf32>
    %214 = arith.addf %212, %213 : vector<8x1xf32>
    %c3_i32 = arith.constant 3 : i32
    %215 = vector.broadcast %c3_i32 : i32 to vector<8x128xi32>
    %216 = arith.cmpi eq, %4, %215 : vector<8x128xi32>
    %217 = vector.shape_cast %214 : vector<8x1xf32> to vector<8x1xf32>
    %218 = vector.broadcast %217 : vector<8x1xf32> to vector<8x128xf32>
    %219 = arith.select %216, %218, %168 : vector<8x128xi1>, vector<8x128xf32>
    %c4 = arith.constant 4 : index
    %c0_52 = arith.constant 0 : index
    %c0_53 = arith.constant 0 : index
    %220 = vector.load %arg0[%c4, %c0_52, %c0_53] : memref<8x8x256xf32, #tpu.memory_space<vmem>>, vector<1x8x256xf32>
    %221 = vector.shape_cast %220 : vector<1x8x256xf32> to vector<8x256xf32>
    %222 = arith.addf %193, %221 : vector<8x256xf32>
    %223 = math.tanh %222 : vector<8x256xf32>
    %cst_54 = arith.constant 5.000000e-01 : f32
    %224 = vector.broadcast %cst_54 : f32 to vector<8x256xf32>
    %225 = arith.mulf %224, %223 : vector<8x256xf32>
    %cst_55 = arith.constant 5.000000e-01 : f32
    %226 = vector.broadcast %cst_55 : f32 to vector<8x256xf32>
    %227 = arith.addf %225, %226 : vector<8x256xf32>
    %228 = arith.select %10, %223, %227 : vector<8x256xi1>, vector<8x256xf32>
    %229 = vector.extract_strided_slice %228 {offsets = [0, 0], sizes = [8, 64], strides = [1, 1]} : vector<8x256xf32> to vector<8x64xf32>
    %230 = vector.extract_strided_slice %228 {offsets = [0, 64], sizes = [8, 64], strides = [1, 1]} : vector<8x256xf32> to vector<8x64xf32>
    %231 = vector.extract_strided_slice %228 {offsets = [0, 128], sizes = [8, 64], strides = [1, 1]} : vector<8x256xf32> to vector<8x64xf32>
    %232 = vector.extract_strided_slice %228 {offsets = [0, 192], sizes = [8, 64], strides = [1, 1]} : vector<8x256xf32> to vector<8x64xf32>
    %233 = arith.mulf %230, %184 : vector<8x64xf32>
    %234 = arith.mulf %229, %231 : vector<8x64xf32>
    %235 = arith.addf %233, %234 : vector<8x64xf32>
    %236 = math.tanh %235 : vector<8x64xf32>
    %237 = arith.mulf %232, %236 : vector<8x64xf32>
    %238 = tpu.concatenate %237, %208 in 1 : vector<8x64xf32>, vector<8x64xf32> -> vector<8x128xf32>
    %c0_56 = arith.constant 0 : index
    %c0_57 = arith.constant 0 : index
    %239 = vector.load %arg1[%c0_56, %c0_57] : memref<128x512xf32, #tpu.memory_space<vmem>>, vector<128x512xf32>
    %cst_58 = arith.constant dense<0.000000e+00> : vector<8x512xf32>
    %240 = tpu.matmul %238, %239, %cst_58 {dimension_numbers = #tpu.dot_dimension_numbers<[1], [0], [0], [1], [0, 0, 1, 1], [], []>} : vector<8x128xf32>, vector<128x512xf32>, vector<8x512xf32> -> vector<8x512xf32>
    %241 = vector.extract_strided_slice %240 {offsets = [0, 0], sizes = [8, 256], strides = [1, 1]} : vector<8x512xf32> to vector<8x256xf32>
    %242 = vector.broadcast %0 : vector<1x256xf32> to vector<8x256xf32>
    %243 = arith.addf %241, %242 : vector<8x256xf32>
    %244 = vector.extract_strided_slice %240 {offsets = [0, 256], sizes = [8, 256], strides = [1, 1]} : vector<8x512xf32> to vector<8x256xf32>
    %245 = math.tanh %243 : vector<8x256xf32>
    %cst_59 = arith.constant 5.000000e-01 : f32
    %246 = vector.broadcast %cst_59 : f32 to vector<8x256xf32>
    %247 = arith.mulf %246, %245 : vector<8x256xf32>
    %cst_60 = arith.constant 5.000000e-01 : f32
    %248 = vector.broadcast %cst_60 : f32 to vector<8x256xf32>
    %249 = arith.addf %247, %248 : vector<8x256xf32>
    %250 = arith.select %10, %245, %249 : vector<8x256xi1>, vector<8x256xf32>
    %251 = vector.extract_strided_slice %250 {offsets = [0, 0], sizes = [8, 64], strides = [1, 1]} : vector<8x256xf32> to vector<8x64xf32>
    %252 = vector.extract_strided_slice %250 {offsets = [0, 64], sizes = [8, 64], strides = [1, 1]} : vector<8x256xf32> to vector<8x64xf32>
    %253 = vector.extract_strided_slice %250 {offsets = [0, 128], sizes = [8, 64], strides = [1, 1]} : vector<8x256xf32> to vector<8x64xf32>
    %254 = vector.extract_strided_slice %250 {offsets = [0, 192], sizes = [8, 64], strides = [1, 1]} : vector<8x256xf32> to vector<8x64xf32>
    %255 = arith.mulf %252, %206 : vector<8x64xf32>
    %256 = arith.mulf %251, %253 : vector<8x64xf32>
    %257 = arith.addf %255, %256 : vector<8x64xf32>
    %258 = math.tanh %257 : vector<8x64xf32>
    %259 = arith.mulf %254, %258 : vector<8x64xf32>
    %260 = vector.broadcast %2 : vector<1x64xf32> to vector<8x64xf32>
    %261 = arith.mulf %259, %260 : vector<8x64xf32>
    %cst_61 = arith.constant dense<0.000000e+00> : vector<8xf32>
    %262 = vector.multi_reduction <add>, %261, %cst_61 [1] : vector<8x64xf32> to vector<8xf32>
    %263 = vector.shape_cast %262 : vector<8xf32> to vector<8x1xf32>
    %264 = vector.broadcast %3 : vector<1x1xf32> to vector<8x1xf32>
    %265 = arith.addf %263, %264 : vector<8x1xf32>
    %c4_i32 = arith.constant 4 : i32
    %266 = vector.broadcast %c4_i32 : i32 to vector<8x128xi32>
    %267 = arith.cmpi eq, %4, %266 : vector<8x128xi32>
    %268 = vector.shape_cast %265 : vector<8x1xf32> to vector<8x1xf32>
    %269 = vector.broadcast %268 : vector<8x1xf32> to vector<8x128xf32>
    %270 = arith.select %267, %269, %219 : vector<8x128xi1>, vector<8x128xf32>
    %c5 = arith.constant 5 : index
    %c0_62 = arith.constant 0 : index
    %c0_63 = arith.constant 0 : index
    %271 = vector.load %arg0[%c5, %c0_62, %c0_63] : memref<8x8x256xf32, #tpu.memory_space<vmem>>, vector<1x8x256xf32>
    %272 = vector.shape_cast %271 : vector<1x8x256xf32> to vector<8x256xf32>
    %273 = arith.addf %244, %272 : vector<8x256xf32>
    %274 = math.tanh %273 : vector<8x256xf32>
    %cst_64 = arith.constant 5.000000e-01 : f32
    %275 = vector.broadcast %cst_64 : f32 to vector<8x256xf32>
    %276 = arith.mulf %275, %274 : vector<8x256xf32>
    %cst_65 = arith.constant 5.000000e-01 : f32
    %277 = vector.broadcast %cst_65 : f32 to vector<8x256xf32>
    %278 = arith.addf %276, %277 : vector<8x256xf32>
    %279 = arith.select %10, %274, %278 : vector<8x256xi1>, vector<8x256xf32>
    %280 = vector.extract_strided_slice %279 {offsets = [0, 0], sizes = [8, 64], strides = [1, 1]} : vector<8x256xf32> to vector<8x64xf32>
    %281 = vector.extract_strided_slice %279 {offsets = [0, 64], sizes = [8, 64], strides = [1, 1]} : vector<8x256xf32> to vector<8x64xf32>
    %282 = vector.extract_strided_slice %279 {offsets = [0, 128], sizes = [8, 64], strides = [1, 1]} : vector<8x256xf32> to vector<8x64xf32>
    %283 = vector.extract_strided_slice %279 {offsets = [0, 192], sizes = [8, 64], strides = [1, 1]} : vector<8x256xf32> to vector<8x64xf32>
    %284 = arith.mulf %281, %235 : vector<8x64xf32>
    %285 = arith.mulf %280, %282 : vector<8x64xf32>
    %286 = arith.addf %284, %285 : vector<8x64xf32>
    %287 = math.tanh %286 : vector<8x64xf32>
    %288 = arith.mulf %283, %287 : vector<8x64xf32>
    %289 = tpu.concatenate %288, %259 in 1 : vector<8x64xf32>, vector<8x64xf32> -> vector<8x128xf32>
    %c0_66 = arith.constant 0 : index
    %c0_67 = arith.constant 0 : index
    %290 = vector.load %arg1[%c0_66, %c0_67] : memref<128x512xf32, #tpu.memory_space<vmem>>, vector<128x512xf32>
    %cst_68 = arith.constant dense<0.000000e+00> : vector<8x512xf32>
    %291 = tpu.matmul %289, %290, %cst_68 {dimension_numbers = #tpu.dot_dimension_numbers<[1], [0], [0], [1], [0, 0, 1, 1], [], []>} : vector<8x128xf32>, vector<128x512xf32>, vector<8x512xf32> -> vector<8x512xf32>
    %292 = vector.extract_strided_slice %291 {offsets = [0, 0], sizes = [8, 256], strides = [1, 1]} : vector<8x512xf32> to vector<8x256xf32>
    %293 = vector.broadcast %0 : vector<1x256xf32> to vector<8x256xf32>
    %294 = arith.addf %292, %293 : vector<8x256xf32>
    %295 = vector.extract_strided_slice %291 {offsets = [0, 256], sizes = [8, 256], strides = [1, 1]} : vector<8x512xf32> to vector<8x256xf32>
    %296 = math.tanh %294 : vector<8x256xf32>
    %cst_69 = arith.constant 5.000000e-01 : f32
    %297 = vector.broadcast %cst_69 : f32 to vector<8x256xf32>
    %298 = arith.mulf %297, %296 : vector<8x256xf32>
    %cst_70 = arith.constant 5.000000e-01 : f32
    %299 = vector.broadcast %cst_70 : f32 to vector<8x256xf32>
    %300 = arith.addf %298, %299 : vector<8x256xf32>
    %301 = arith.select %10, %296, %300 : vector<8x256xi1>, vector<8x256xf32>
    %302 = vector.extract_strided_slice %301 {offsets = [0, 0], sizes = [8, 64], strides = [1, 1]} : vector<8x256xf32> to vector<8x64xf32>
    %303 = vector.extract_strided_slice %301 {offsets = [0, 64], sizes = [8, 64], strides = [1, 1]} : vector<8x256xf32> to vector<8x64xf32>
    %304 = vector.extract_strided_slice %301 {offsets = [0, 128], sizes = [8, 64], strides = [1, 1]} : vector<8x256xf32> to vector<8x64xf32>
    %305 = vector.extract_strided_slice %301 {offsets = [0, 192], sizes = [8, 64], strides = [1, 1]} : vector<8x256xf32> to vector<8x64xf32>
    %306 = arith.mulf %303, %257 : vector<8x64xf32>
    %307 = arith.mulf %302, %304 : vector<8x64xf32>
    %308 = arith.addf %306, %307 : vector<8x64xf32>
    %309 = math.tanh %308 : vector<8x64xf32>
    %310 = arith.mulf %305, %309 : vector<8x64xf32>
    %311 = vector.broadcast %2 : vector<1x64xf32> to vector<8x64xf32>
    %312 = arith.mulf %310, %311 : vector<8x64xf32>
    %cst_71 = arith.constant dense<0.000000e+00> : vector<8xf32>
    %313 = vector.multi_reduction <add>, %312, %cst_71 [1] : vector<8x64xf32> to vector<8xf32>
    %314 = vector.shape_cast %313 : vector<8xf32> to vector<8x1xf32>
    %315 = vector.broadcast %3 : vector<1x1xf32> to vector<8x1xf32>
    %316 = arith.addf %314, %315 : vector<8x1xf32>
    %c5_i32 = arith.constant 5 : i32
    %317 = vector.broadcast %c5_i32 : i32 to vector<8x128xi32>
    %318 = arith.cmpi eq, %4, %317 : vector<8x128xi32>
    %319 = vector.shape_cast %316 : vector<8x1xf32> to vector<8x1xf32>
    %320 = vector.broadcast %319 : vector<8x1xf32> to vector<8x128xf32>
    %321 = arith.select %318, %320, %270 : vector<8x128xi1>, vector<8x128xf32>
    %c6 = arith.constant 6 : index
    %c0_72 = arith.constant 0 : index
    %c0_73 = arith.constant 0 : index
    %322 = vector.load %arg0[%c6, %c0_72, %c0_73] : memref<8x8x256xf32, #tpu.memory_space<vmem>>, vector<1x8x256xf32>
    %323 = vector.shape_cast %322 : vector<1x8x256xf32> to vector<8x256xf32>
    %324 = arith.addf %295, %323 : vector<8x256xf32>
    %325 = math.tanh %324 : vector<8x256xf32>
    %cst_74 = arith.constant 5.000000e-01 : f32
    %326 = vector.broadcast %cst_74 : f32 to vector<8x256xf32>
    %327 = arith.mulf %326, %325 : vector<8x256xf32>
    %cst_75 = arith.constant 5.000000e-01 : f32
    %328 = vector.broadcast %cst_75 : f32 to vector<8x256xf32>
    %329 = arith.addf %327, %328 : vector<8x256xf32>
    %330 = arith.select %10, %325, %329 : vector<8x256xi1>, vector<8x256xf32>
    %331 = vector.extract_strided_slice %330 {offsets = [0, 0], sizes = [8, 64], strides = [1, 1]} : vector<8x256xf32> to vector<8x64xf32>
    %332 = vector.extract_strided_slice %330 {offsets = [0, 64], sizes = [8, 64], strides = [1, 1]} : vector<8x256xf32> to vector<8x64xf32>
    %333 = vector.extract_strided_slice %330 {offsets = [0, 128], sizes = [8, 64], strides = [1, 1]} : vector<8x256xf32> to vector<8x64xf32>
    %334 = vector.extract_strided_slice %330 {offsets = [0, 192], sizes = [8, 64], strides = [1, 1]} : vector<8x256xf32> to vector<8x64xf32>
    %335 = arith.mulf %332, %286 : vector<8x64xf32>
    %336 = arith.mulf %331, %333 : vector<8x64xf32>
    %337 = arith.addf %335, %336 : vector<8x64xf32>
    %338 = math.tanh %337 : vector<8x64xf32>
    %339 = arith.mulf %334, %338 : vector<8x64xf32>
    %340 = tpu.concatenate %339, %310 in 1 : vector<8x64xf32>, vector<8x64xf32> -> vector<8x128xf32>
    %c0_76 = arith.constant 0 : index
    %c0_77 = arith.constant 0 : index
    %341 = vector.load %arg1[%c0_76, %c0_77] : memref<128x512xf32, #tpu.memory_space<vmem>>, vector<128x512xf32>
    %cst_78 = arith.constant dense<0.000000e+00> : vector<8x512xf32>
    %342 = tpu.matmul %340, %341, %cst_78 {dimension_numbers = #tpu.dot_dimension_numbers<[1], [0], [0], [1], [0, 0, 1, 1], [], []>} : vector<8x128xf32>, vector<128x512xf32>, vector<8x512xf32> -> vector<8x512xf32>
    %343 = vector.extract_strided_slice %342 {offsets = [0, 0], sizes = [8, 256], strides = [1, 1]} : vector<8x512xf32> to vector<8x256xf32>
    %344 = vector.broadcast %0 : vector<1x256xf32> to vector<8x256xf32>
    %345 = arith.addf %343, %344 : vector<8x256xf32>
    %346 = vector.extract_strided_slice %342 {offsets = [0, 256], sizes = [8, 256], strides = [1, 1]} : vector<8x512xf32> to vector<8x256xf32>
    %347 = math.tanh %345 : vector<8x256xf32>
    %cst_79 = arith.constant 5.000000e-01 : f32
    %348 = vector.broadcast %cst_79 : f32 to vector<8x256xf32>
    %349 = arith.mulf %348, %347 : vector<8x256xf32>
    %cst_80 = arith.constant 5.000000e-01 : f32
    %350 = vector.broadcast %cst_80 : f32 to vector<8x256xf32>
    %351 = arith.addf %349, %350 : vector<8x256xf32>
    %352 = arith.select %10, %347, %351 : vector<8x256xi1>, vector<8x256xf32>
    %353 = vector.extract_strided_slice %352 {offsets = [0, 0], sizes = [8, 64], strides = [1, 1]} : vector<8x256xf32> to vector<8x64xf32>
    %354 = vector.extract_strided_slice %352 {offsets = [0, 64], sizes = [8, 64], strides = [1, 1]} : vector<8x256xf32> to vector<8x64xf32>
    %355 = vector.extract_strided_slice %352 {offsets = [0, 128], sizes = [8, 64], strides = [1, 1]} : vector<8x256xf32> to vector<8x64xf32>
    %356 = vector.extract_strided_slice %352 {offsets = [0, 192], sizes = [8, 64], strides = [1, 1]} : vector<8x256xf32> to vector<8x64xf32>
    %357 = arith.mulf %354, %308 : vector<8x64xf32>
    %358 = arith.mulf %353, %355 : vector<8x64xf32>
    %359 = arith.addf %357, %358 : vector<8x64xf32>
    %360 = math.tanh %359 : vector<8x64xf32>
    %361 = arith.mulf %356, %360 : vector<8x64xf32>
    %362 = vector.broadcast %2 : vector<1x64xf32> to vector<8x64xf32>
    %363 = arith.mulf %361, %362 : vector<8x64xf32>
    %cst_81 = arith.constant dense<0.000000e+00> : vector<8xf32>
    %364 = vector.multi_reduction <add>, %363, %cst_81 [1] : vector<8x64xf32> to vector<8xf32>
    %365 = vector.shape_cast %364 : vector<8xf32> to vector<8x1xf32>
    %366 = vector.broadcast %3 : vector<1x1xf32> to vector<8x1xf32>
    %367 = arith.addf %365, %366 : vector<8x1xf32>
    %c6_i32 = arith.constant 6 : i32
    %368 = vector.broadcast %c6_i32 : i32 to vector<8x128xi32>
    %369 = arith.cmpi eq, %4, %368 : vector<8x128xi32>
    %370 = vector.shape_cast %367 : vector<8x1xf32> to vector<8x1xf32>
    %371 = vector.broadcast %370 : vector<8x1xf32> to vector<8x128xf32>
    %372 = arith.select %369, %371, %321 : vector<8x128xi1>, vector<8x128xf32>
    %c7 = arith.constant 7 : index
    %c0_82 = arith.constant 0 : index
    %c0_83 = arith.constant 0 : index
    %373 = vector.load %arg0[%c7, %c0_82, %c0_83] : memref<8x8x256xf32, #tpu.memory_space<vmem>>, vector<1x8x256xf32>
    %374 = vector.shape_cast %373 : vector<1x8x256xf32> to vector<8x256xf32>
    %375 = arith.addf %346, %374 : vector<8x256xf32>
    %376 = math.tanh %375 : vector<8x256xf32>
    %cst_84 = arith.constant 5.000000e-01 : f32
    %377 = vector.broadcast %cst_84 : f32 to vector<8x256xf32>
    %378 = arith.mulf %377, %376 : vector<8x256xf32>
    %cst_85 = arith.constant 5.000000e-01 : f32
    %379 = vector.broadcast %cst_85 : f32 to vector<8x256xf32>
    %380 = arith.addf %378, %379 : vector<8x256xf32>
    %381 = arith.select %10, %376, %380 : vector<8x256xi1>, vector<8x256xf32>
    %382 = vector.extract_strided_slice %381 {offsets = [0, 0], sizes = [8, 64], strides = [1, 1]} : vector<8x256xf32> to vector<8x64xf32>
    %383 = vector.extract_strided_slice %381 {offsets = [0, 64], sizes = [8, 64], strides = [1, 1]} : vector<8x256xf32> to vector<8x64xf32>
    %384 = vector.extract_strided_slice %381 {offsets = [0, 128], sizes = [8, 64], strides = [1, 1]} : vector<8x256xf32> to vector<8x64xf32>
    %385 = vector.extract_strided_slice %381 {offsets = [0, 192], sizes = [8, 64], strides = [1, 1]} : vector<8x256xf32> to vector<8x64xf32>
    %386 = arith.mulf %383, %337 : vector<8x64xf32>
    %387 = arith.mulf %382, %384 : vector<8x64xf32>
    %388 = arith.addf %386, %387 : vector<8x64xf32>
    %389 = math.tanh %388 : vector<8x64xf32>
    %390 = arith.mulf %385, %389 : vector<8x64xf32>
    %391 = tpu.concatenate %390, %361 in 1 : vector<8x64xf32>, vector<8x64xf32> -> vector<8x128xf32>
    %c0_86 = arith.constant 0 : index
    %c0_87 = arith.constant 0 : index
    %392 = vector.load %arg1[%c0_86, %c0_87] : memref<128x512xf32, #tpu.memory_space<vmem>>, vector<128x512xf32>
    %cst_88 = arith.constant dense<0.000000e+00> : vector<8x512xf32>
    %393 = tpu.matmul %391, %392, %cst_88 {dimension_numbers = #tpu.dot_dimension_numbers<[1], [0], [0], [1], [0, 0, 1, 1], [], []>} : vector<8x128xf32>, vector<128x512xf32>, vector<8x512xf32> -> vector<8x512xf32>
    %394 = vector.extract_strided_slice %393 {offsets = [0, 0], sizes = [8, 256], strides = [1, 1]} : vector<8x512xf32> to vector<8x256xf32>
    %395 = vector.broadcast %0 : vector<1x256xf32> to vector<8x256xf32>
    %396 = arith.addf %394, %395 : vector<8x256xf32>
    %397 = vector.extract_strided_slice %393 {offsets = [0, 256], sizes = [8, 256], strides = [1, 1]} : vector<8x512xf32> to vector<8x256xf32>
    %398 = math.tanh %396 : vector<8x256xf32>
    %cst_89 = arith.constant 5.000000e-01 : f32
    %399 = vector.broadcast %cst_89 : f32 to vector<8x256xf32>
    %400 = arith.mulf %399, %398 : vector<8x256xf32>
    %cst_90 = arith.constant 5.000000e-01 : f32
    %401 = vector.broadcast %cst_90 : f32 to vector<8x256xf32>
    %402 = arith.addf %400, %401 : vector<8x256xf32>
    %403 = arith.select %10, %398, %402 : vector<8x256xi1>, vector<8x256xf32>
    %404 = vector.extract_strided_slice %403 {offsets = [0, 0], sizes = [8, 64], strides = [1, 1]} : vector<8x256xf32> to vector<8x64xf32>
    %405 = vector.extract_strided_slice %403 {offsets = [0, 64], sizes = [8, 64], strides = [1, 1]} : vector<8x256xf32> to vector<8x64xf32>
    %406 = vector.extract_strided_slice %403 {offsets = [0, 128], sizes = [8, 64], strides = [1, 1]} : vector<8x256xf32> to vector<8x64xf32>
    %407 = vector.extract_strided_slice %403 {offsets = [0, 192], sizes = [8, 64], strides = [1, 1]} : vector<8x256xf32> to vector<8x64xf32>
    %408 = arith.mulf %405, %359 : vector<8x64xf32>
    %409 = arith.mulf %404, %406 : vector<8x64xf32>
    %410 = arith.addf %408, %409 : vector<8x64xf32>
    %411 = math.tanh %410 : vector<8x64xf32>
    %412 = arith.mulf %407, %411 : vector<8x64xf32>
    %413 = vector.broadcast %2 : vector<1x64xf32> to vector<8x64xf32>
    %414 = arith.mulf %412, %413 : vector<8x64xf32>
    %cst_91 = arith.constant dense<0.000000e+00> : vector<8xf32>
    %415 = vector.multi_reduction <add>, %414, %cst_91 [1] : vector<8x64xf32> to vector<8xf32>
    %416 = vector.shape_cast %415 : vector<8xf32> to vector<8x1xf32>
    %417 = vector.broadcast %3 : vector<1x1xf32> to vector<8x1xf32>
    %418 = arith.addf %416, %417 : vector<8x1xf32>
    %c7_i32 = arith.constant 7 : i32
    %419 = vector.broadcast %c7_i32 : i32 to vector<8x128xi32>
    %420 = arith.cmpi eq, %4, %419 : vector<8x128xi32>
    %421 = vector.shape_cast %418 : vector<8x1xf32> to vector<8x1xf32>
    %422 = vector.broadcast %421 : vector<8x1xf32> to vector<8x128xf32>
    %423 = arith.select %420, %422, %372 : vector<8x128xi1>, vector<8x128xf32>
    %c0_92 = arith.constant 0 : index
    %c0_93 = arith.constant 0 : index
    %424 = vector.load %arg3[%c0_92, %c0_93] : memref<64x256xf32, #tpu.memory_space<vmem>>, vector<64x256xf32>
    %cst_94 = arith.constant dense<0.000000e+00> : vector<8x256xf32>
    %425 = tpu.matmul %412, %424, %cst_94 {dimension_numbers = #tpu.dot_dimension_numbers<[1], [0], [0], [1], [0, 0, 1, 1], [], []>} : vector<8x64xf32>, vector<64x256xf32>, vector<8x256xf32> -> vector<8x256xf32>
    %426 = vector.broadcast %1 : vector<1x256xf32> to vector<8x256xf32>
    %427 = arith.addf %425, %426 : vector<8x256xf32>
    %428 = arith.addf %397, %427 : vector<8x256xf32>
    %429 = math.tanh %428 : vector<8x256xf32>
    %cst_95 = arith.constant 5.000000e-01 : f32
    %430 = vector.broadcast %cst_95 : f32 to vector<8x256xf32>
    %431 = arith.mulf %430, %429 : vector<8x256xf32>
    %cst_96 = arith.constant 5.000000e-01 : f32
    %432 = vector.broadcast %cst_96 : f32 to vector<8x256xf32>
    %433 = arith.addf %431, %432 : vector<8x256xf32>
    %434 = arith.select %10, %429, %433 : vector<8x256xi1>, vector<8x256xf32>
    %435 = vector.extract_strided_slice %434 {offsets = [0, 0], sizes = [8, 64], strides = [1, 1]} : vector<8x256xf32> to vector<8x64xf32>
    %436 = vector.extract_strided_slice %434 {offsets = [0, 64], sizes = [8, 64], strides = [1, 1]} : vector<8x256xf32> to vector<8x64xf32>
    %437 = vector.extract_strided_slice %434 {offsets = [0, 128], sizes = [8, 64], strides = [1, 1]} : vector<8x256xf32> to vector<8x64xf32>
    %438 = vector.extract_strided_slice %434 {offsets = [0, 192], sizes = [8, 64], strides = [1, 1]} : vector<8x256xf32> to vector<8x64xf32>
    %439 = arith.mulf %436, %388 : vector<8x64xf32>
    %440 = arith.mulf %435, %437 : vector<8x64xf32>
    %441 = arith.addf %439, %440 : vector<8x64xf32>
    %442 = math.tanh %441 : vector<8x64xf32>
    %443 = arith.mulf %438, %442 : vector<8x64xf32>
    %444 = tpu.concatenate %443, %412 in 1 : vector<8x64xf32>, vector<8x64xf32> -> vector<8x128xf32>
    %c0_97 = arith.constant 0 : index
    %c0_98 = arith.constant 0 : index
    %445 = vector.load %arg1[%c0_97, %c0_98] : memref<128x512xf32, #tpu.memory_space<vmem>>, vector<128x512xf32>
    %cst_99 = arith.constant dense<0.000000e+00> : vector<8x512xf32>
    %446 = tpu.matmul %444, %445, %cst_99 {dimension_numbers = #tpu.dot_dimension_numbers<[1], [0], [0], [1], [0, 0, 1, 1], [], []>} : vector<8x128xf32>, vector<128x512xf32>, vector<8x512xf32> -> vector<8x512xf32>
    %447 = vector.extract_strided_slice %446 {offsets = [0, 0], sizes = [8, 256], strides = [1, 1]} : vector<8x512xf32> to vector<8x256xf32>
    %448 = vector.broadcast %0 : vector<1x256xf32> to vector<8x256xf32>
    %449 = arith.addf %447, %448 : vector<8x256xf32>
    %450 = vector.extract_strided_slice %446 {offsets = [0, 256], sizes = [8, 256], strides = [1, 1]} : vector<8x512xf32> to vector<8x256xf32>
    %451 = math.tanh %449 : vector<8x256xf32>
    %cst_100 = arith.constant 5.000000e-01 : f32
    %452 = vector.broadcast %cst_100 : f32 to vector<8x256xf32>
    %453 = arith.mulf %452, %451 : vector<8x256xf32>
    %cst_101 = arith.constant 5.000000e-01 : f32
    %454 = vector.broadcast %cst_101 : f32 to vector<8x256xf32>
    %455 = arith.addf %453, %454 : vector<8x256xf32>
    %456 = arith.select %10, %451, %455 : vector<8x256xi1>, vector<8x256xf32>
    %457 = vector.extract_strided_slice %456 {offsets = [0, 0], sizes = [8, 64], strides = [1, 1]} : vector<8x256xf32> to vector<8x64xf32>
    %458 = vector.extract_strided_slice %456 {offsets = [0, 64], sizes = [8, 64], strides = [1, 1]} : vector<8x256xf32> to vector<8x64xf32>
    %459 = vector.extract_strided_slice %456 {offsets = [0, 128], sizes = [8, 64], strides = [1, 1]} : vector<8x256xf32> to vector<8x64xf32>
    %460 = vector.extract_strided_slice %456 {offsets = [0, 192], sizes = [8, 64], strides = [1, 1]} : vector<8x256xf32> to vector<8x64xf32>
    %461 = arith.mulf %458, %410 : vector<8x64xf32>
    %462 = arith.mulf %457, %459 : vector<8x64xf32>
    %463 = arith.addf %461, %462 : vector<8x64xf32>
    %464 = math.tanh %463 : vector<8x64xf32>
    %465 = arith.mulf %460, %464 : vector<8x64xf32>
    %466 = vector.broadcast %2 : vector<1x64xf32> to vector<8x64xf32>
    %467 = arith.mulf %465, %466 : vector<8x64xf32>
    %cst_102 = arith.constant dense<0.000000e+00> : vector<8xf32>
    %468 = vector.multi_reduction <add>, %467, %cst_102 [1] : vector<8x64xf32> to vector<8xf32>
    %469 = vector.shape_cast %468 : vector<8xf32> to vector<8x1xf32>
    %470 = vector.broadcast %3 : vector<1x1xf32> to vector<8x1xf32>
    %471 = arith.addf %469, %470 : vector<8x1xf32>
    %c8_i32 = arith.constant 8 : i32
    %472 = vector.broadcast %c8_i32 : i32 to vector<8x128xi32>
    %473 = arith.cmpi eq, %4, %472 : vector<8x128xi32>
    %474 = vector.shape_cast %471 : vector<8x1xf32> to vector<8x1xf32>
    %475 = vector.broadcast %474 : vector<8x1xf32> to vector<8x128xf32>
    %476 = arith.select %473, %475, %423 : vector<8x128xi1>, vector<8x128xf32>
    %c0_103 = arith.constant 0 : index
    %c0_104 = arith.constant 0 : index
    %477 = vector.load %arg3[%c0_103, %c0_104] : memref<64x256xf32, #tpu.memory_space<vmem>>, vector<64x256xf32>
    %cst_105 = arith.constant dense<0.000000e+00> : vector<8x256xf32>
    %478 = tpu.matmul %465, %477, %cst_105 {dimension_numbers = #tpu.dot_dimension_numbers<[1], [0], [0], [1], [0, 0, 1, 1], [], []>} : vector<8x64xf32>, vector<64x256xf32>, vector<8x256xf32> -> vector<8x256xf32>
    %479 = vector.broadcast %1 : vector<1x256xf32> to vector<8x256xf32>
    %480 = arith.addf %478, %479 : vector<8x256xf32>
    %481 = arith.addf %450, %480 : vector<8x256xf32>
    %482 = math.tanh %481 : vector<8x256xf32>
    %cst_106 = arith.constant 5.000000e-01 : f32
    %483 = vector.broadcast %cst_106 : f32 to vector<8x256xf32>
    %484 = arith.mulf %483, %482 : vector<8x256xf32>
    %cst_107 = arith.constant 5.000000e-01 : f32
    %485 = vector.broadcast %cst_107 : f32 to vector<8x256xf32>
    %486 = arith.addf %484, %485 : vector<8x256xf32>
    %487 = arith.select %10, %482, %486 : vector<8x256xi1>, vector<8x256xf32>
    %488 = vector.extract_strided_slice %487 {offsets = [0, 0], sizes = [8, 64], strides = [1, 1]} : vector<8x256xf32> to vector<8x64xf32>
    %489 = vector.extract_strided_slice %487 {offsets = [0, 64], sizes = [8, 64], strides = [1, 1]} : vector<8x256xf32> to vector<8x64xf32>
    %490 = vector.extract_strided_slice %487 {offsets = [0, 128], sizes = [8, 64], strides = [1, 1]} : vector<8x256xf32> to vector<8x64xf32>
    %491 = vector.extract_strided_slice %487 {offsets = [0, 192], sizes = [8, 64], strides = [1, 1]} : vector<8x256xf32> to vector<8x64xf32>
    %492 = arith.mulf %489, %441 : vector<8x64xf32>
    %493 = arith.mulf %488, %490 : vector<8x64xf32>
    %494 = arith.addf %492, %493 : vector<8x64xf32>
    %495 = math.tanh %494 : vector<8x64xf32>
    %496 = arith.mulf %491, %495 : vector<8x64xf32>
    %497 = tpu.concatenate %496, %465 in 1 : vector<8x64xf32>, vector<8x64xf32> -> vector<8x128xf32>
    %c0_108 = arith.constant 0 : index
    %c0_109 = arith.constant 0 : index
    %498 = vector.load %arg1[%c0_108, %c0_109] : memref<128x512xf32, #tpu.memory_space<vmem>>, vector<128x512xf32>
    %cst_110 = arith.constant dense<0.000000e+00> : vector<8x512xf32>
    %499 = tpu.matmul %497, %498, %cst_110 {dimension_numbers = #tpu.dot_dimension_numbers<[1], [0], [0], [1], [0, 0, 1, 1], [], []>} : vector<8x128xf32>, vector<128x512xf32>, vector<8x512xf32> -> vector<8x512xf32>
    %500 = vector.extract_strided_slice %499 {offsets = [0, 0], sizes = [8, 256], strides = [1, 1]} : vector<8x512xf32> to vector<8x256xf32>
    %501 = vector.broadcast %0 : vector<1x256xf32> to vector<8x256xf32>
    %502 = arith.addf %500, %501 : vector<8x256xf32>
    %503 = vector.extract_strided_slice %499 {offsets = [0, 256], sizes = [8, 256], strides = [1, 1]} : vector<8x512xf32> to vector<8x256xf32>
    %504 = math.tanh %502 : vector<8x256xf32>
    %cst_111 = arith.constant 5.000000e-01 : f32
    %505 = vector.broadcast %cst_111 : f32 to vector<8x256xf32>
    %506 = arith.mulf %505, %504 : vector<8x256xf32>
    %cst_112 = arith.constant 5.000000e-01 : f32
    %507 = vector.broadcast %cst_112 : f32 to vector<8x256xf32>
    %508 = arith.addf %506, %507 : vector<8x256xf32>
    %509 = arith.select %10, %504, %508 : vector<8x256xi1>, vector<8x256xf32>
    %510 = vector.extract_strided_slice %509 {offsets = [0, 0], sizes = [8, 64], strides = [1, 1]} : vector<8x256xf32> to vector<8x64xf32>
    %511 = vector.extract_strided_slice %509 {offsets = [0, 64], sizes = [8, 64], strides = [1, 1]} : vector<8x256xf32> to vector<8x64xf32>
    %512 = vector.extract_strided_slice %509 {offsets = [0, 128], sizes = [8, 64], strides = [1, 1]} : vector<8x256xf32> to vector<8x64xf32>
    %513 = vector.extract_strided_slice %509 {offsets = [0, 192], sizes = [8, 64], strides = [1, 1]} : vector<8x256xf32> to vector<8x64xf32>
    %514 = arith.mulf %511, %463 : vector<8x64xf32>
    %515 = arith.mulf %510, %512 : vector<8x64xf32>
    %516 = arith.addf %514, %515 : vector<8x64xf32>
    %517 = math.tanh %516 : vector<8x64xf32>
    %518 = arith.mulf %513, %517 : vector<8x64xf32>
    %519 = vector.broadcast %2 : vector<1x64xf32> to vector<8x64xf32>
    %520 = arith.mulf %518, %519 : vector<8x64xf32>
    %cst_113 = arith.constant dense<0.000000e+00> : vector<8xf32>
    %521 = vector.multi_reduction <add>, %520, %cst_113 [1] : vector<8x64xf32> to vector<8xf32>
    %522 = vector.shape_cast %521 : vector<8xf32> to vector<8x1xf32>
    %523 = vector.broadcast %3 : vector<1x1xf32> to vector<8x1xf32>
    %524 = arith.addf %522, %523 : vector<8x1xf32>
    %c9_i32 = arith.constant 9 : i32
    %525 = vector.broadcast %c9_i32 : i32 to vector<8x128xi32>
    %526 = arith.cmpi eq, %4, %525 : vector<8x128xi32>
    %527 = vector.shape_cast %524 : vector<8x1xf32> to vector<8x1xf32>
    %528 = vector.broadcast %527 : vector<8x1xf32> to vector<8x128xf32>
    %529 = arith.select %526, %528, %476 : vector<8x128xi1>, vector<8x128xf32>
    %c0_114 = arith.constant 0 : index
    %c0_115 = arith.constant 0 : index
    %530 = vector.load %arg3[%c0_114, %c0_115] : memref<64x256xf32, #tpu.memory_space<vmem>>, vector<64x256xf32>
    %cst_116 = arith.constant dense<0.000000e+00> : vector<8x256xf32>
    %531 = tpu.matmul %518, %530, %cst_116 {dimension_numbers = #tpu.dot_dimension_numbers<[1], [0], [0], [1], [0, 0, 1, 1], [], []>} : vector<8x64xf32>, vector<64x256xf32>, vector<8x256xf32> -> vector<8x256xf32>
    %532 = vector.broadcast %1 : vector<1x256xf32> to vector<8x256xf32>
    %533 = arith.addf %531, %532 : vector<8x256xf32>
    %534 = arith.addf %503, %533 : vector<8x256xf32>
    %535 = math.tanh %534 : vector<8x256xf32>
    %cst_117 = arith.constant 5.000000e-01 : f32
    %536 = vector.broadcast %cst_117 : f32 to vector<8x256xf32>
    %537 = arith.mulf %536, %535 : vector<8x256xf32>
    %cst_118 = arith.constant 5.000000e-01 : f32
    %538 = vector.broadcast %cst_118 : f32 to vector<8x256xf32>
    %539 = arith.addf %537, %538 : vector<8x256xf32>
    %540 = arith.select %10, %535, %539 : vector<8x256xi1>, vector<8x256xf32>
    %541 = vector.extract_strided_slice %540 {offsets = [0, 0], sizes = [8, 64], strides = [1, 1]} : vector<8x256xf32> to vector<8x64xf32>
    %542 = vector.extract_strided_slice %540 {offsets = [0, 64], sizes = [8, 64], strides = [1, 1]} : vector<8x256xf32> to vector<8x64xf32>
    %543 = vector.extract_strided_slice %540 {offsets = [0, 128], sizes = [8, 64], strides = [1, 1]} : vector<8x256xf32> to vector<8x64xf32>
    %544 = vector.extract_strided_slice %540 {offsets = [0, 192], sizes = [8, 64], strides = [1, 1]} : vector<8x256xf32> to vector<8x64xf32>
    %545 = arith.mulf %542, %494 : vector<8x64xf32>
    %546 = arith.mulf %541, %543 : vector<8x64xf32>
    %547 = arith.addf %545, %546 : vector<8x64xf32>
    %548 = math.tanh %547 : vector<8x64xf32>
    %549 = arith.mulf %544, %548 : vector<8x64xf32>
    %550 = tpu.concatenate %549, %518 in 1 : vector<8x64xf32>, vector<8x64xf32> -> vector<8x128xf32>
    %c0_119 = arith.constant 0 : index
    %c0_120 = arith.constant 0 : index
    %551 = vector.load %arg1[%c0_119, %c0_120] : memref<128x512xf32, #tpu.memory_space<vmem>>, vector<128x512xf32>
    %cst_121 = arith.constant dense<0.000000e+00> : vector<8x512xf32>
    %552 = tpu.matmul %550, %551, %cst_121 {dimension_numbers = #tpu.dot_dimension_numbers<[1], [0], [0], [1], [0, 0, 1, 1], [], []>} : vector<8x128xf32>, vector<128x512xf32>, vector<8x512xf32> -> vector<8x512xf32>
    %553 = vector.extract_strided_slice %552 {offsets = [0, 0], sizes = [8, 256], strides = [1, 1]} : vector<8x512xf32> to vector<8x256xf32>
    %554 = vector.broadcast %0 : vector<1x256xf32> to vector<8x256xf32>
    %555 = arith.addf %553, %554 : vector<8x256xf32>
    %556 = vector.extract_strided_slice %552 {offsets = [0, 256], sizes = [8, 256], strides = [1, 1]} : vector<8x512xf32> to vector<8x256xf32>
    %557 = math.tanh %555 : vector<8x256xf32>
    %cst_122 = arith.constant 5.000000e-01 : f32
    %558 = vector.broadcast %cst_122 : f32 to vector<8x256xf32>
    %559 = arith.mulf %558, %557 : vector<8x256xf32>
    %cst_123 = arith.constant 5.000000e-01 : f32
    %560 = vector.broadcast %cst_123 : f32 to vector<8x256xf32>
    %561 = arith.addf %559, %560 : vector<8x256xf32>
    %562 = arith.select %10, %557, %561 : vector<8x256xi1>, vector<8x256xf32>
    %563 = vector.extract_strided_slice %562 {offsets = [0, 0], sizes = [8, 64], strides = [1, 1]} : vector<8x256xf32> to vector<8x64xf32>
    %564 = vector.extract_strided_slice %562 {offsets = [0, 64], sizes = [8, 64], strides = [1, 1]} : vector<8x256xf32> to vector<8x64xf32>
    %565 = vector.extract_strided_slice %562 {offsets = [0, 128], sizes = [8, 64], strides = [1, 1]} : vector<8x256xf32> to vector<8x64xf32>
    %566 = vector.extract_strided_slice %562 {offsets = [0, 192], sizes = [8, 64], strides = [1, 1]} : vector<8x256xf32> to vector<8x64xf32>
    %567 = arith.mulf %564, %516 : vector<8x64xf32>
    %568 = arith.mulf %563, %565 : vector<8x64xf32>
    %569 = arith.addf %567, %568 : vector<8x64xf32>
    %570 = math.tanh %569 : vector<8x64xf32>
    %571 = arith.mulf %566, %570 : vector<8x64xf32>
    %572 = vector.broadcast %2 : vector<1x64xf32> to vector<8x64xf32>
    %573 = arith.mulf %571, %572 : vector<8x64xf32>
    %cst_124 = arith.constant dense<0.000000e+00> : vector<8xf32>
    %574 = vector.multi_reduction <add>, %573, %cst_124 [1] : vector<8x64xf32> to vector<8xf32>
    %575 = vector.shape_cast %574 : vector<8xf32> to vector<8x1xf32>
    %576 = vector.broadcast %3 : vector<1x1xf32> to vector<8x1xf32>
    %577 = arith.addf %575, %576 : vector<8x1xf32>
    %c10_i32 = arith.constant 10 : i32
    %578 = vector.broadcast %c10_i32 : i32 to vector<8x128xi32>
    %579 = arith.cmpi eq, %4, %578 : vector<8x128xi32>
    %580 = vector.shape_cast %577 : vector<8x1xf32> to vector<8x1xf32>
    %581 = vector.broadcast %580 : vector<8x1xf32> to vector<8x128xf32>
    %582 = arith.select %579, %581, %529 : vector<8x128xi1>, vector<8x128xf32>
    %c0_125 = arith.constant 0 : index
    %c0_126 = arith.constant 0 : index
    %583 = vector.load %arg3[%c0_125, %c0_126] : memref<64x256xf32, #tpu.memory_space<vmem>>, vector<64x256xf32>
    %cst_127 = arith.constant dense<0.000000e+00> : vector<8x256xf32>
    %584 = tpu.matmul %571, %583, %cst_127 {dimension_numbers = #tpu.dot_dimension_numbers<[1], [0], [0], [1], [0, 0, 1, 1], [], []>} : vector<8x64xf32>, vector<64x256xf32>, vector<8x256xf32> -> vector<8x256xf32>
    %585 = vector.broadcast %1 : vector<1x256xf32> to vector<8x256xf32>
    %586 = arith.addf %584, %585 : vector<8x256xf32>
    %587 = arith.addf %556, %586 : vector<8x256xf32>
    %588 = math.tanh %587 : vector<8x256xf32>
    %cst_128 = arith.constant 5.000000e-01 : f32
    %589 = vector.broadcast %cst_128 : f32 to vector<8x256xf32>
    %590 = arith.mulf %589, %588 : vector<8x256xf32>
    %cst_129 = arith.constant 5.000000e-01 : f32
    %591 = vector.broadcast %cst_129 : f32 to vector<8x256xf32>
    %592 = arith.addf %590, %591 : vector<8x256xf32>
    %593 = arith.select %10, %588, %592 : vector<8x256xi1>, vector<8x256xf32>
    %594 = vector.extract_strided_slice %593 {offsets = [0, 0], sizes = [8, 64], strides = [1, 1]} : vector<8x256xf32> to vector<8x64xf32>
    %595 = vector.extract_strided_slice %593 {offsets = [0, 64], sizes = [8, 64], strides = [1, 1]} : vector<8x256xf32> to vector<8x64xf32>
    %596 = vector.extract_strided_slice %593 {offsets = [0, 128], sizes = [8, 64], strides = [1, 1]} : vector<8x256xf32> to vector<8x64xf32>
    %597 = vector.extract_strided_slice %593 {offsets = [0, 192], sizes = [8, 64], strides = [1, 1]} : vector<8x256xf32> to vector<8x64xf32>
    %598 = arith.mulf %595, %547 : vector<8x64xf32>
    %599 = arith.mulf %594, %596 : vector<8x64xf32>
    %600 = arith.addf %598, %599 : vector<8x64xf32>
    %601 = math.tanh %600 : vector<8x64xf32>
    %602 = arith.mulf %597, %601 : vector<8x64xf32>
    %603 = tpu.concatenate %602, %571 in 1 : vector<8x64xf32>, vector<8x64xf32> -> vector<8x128xf32>
    %c0_130 = arith.constant 0 : index
    %c0_131 = arith.constant 0 : index
    %604 = vector.load %arg1[%c0_130, %c0_131] : memref<128x512xf32, #tpu.memory_space<vmem>>, vector<128x512xf32>
    %cst_132 = arith.constant dense<0.000000e+00> : vector<8x512xf32>
    %605 = tpu.matmul %603, %604, %cst_132 {dimension_numbers = #tpu.dot_dimension_numbers<[1], [0], [0], [1], [0, 0, 1, 1], [], []>} : vector<8x128xf32>, vector<128x512xf32>, vector<8x512xf32> -> vector<8x512xf32>
    %606 = vector.extract_strided_slice %605 {offsets = [0, 0], sizes = [8, 256], strides = [1, 1]} : vector<8x512xf32> to vector<8x256xf32>
    %607 = vector.broadcast %0 : vector<1x256xf32> to vector<8x256xf32>
    %608 = arith.addf %606, %607 : vector<8x256xf32>
    %609 = math.tanh %608 : vector<8x256xf32>
    %cst_133 = arith.constant 5.000000e-01 : f32
    %610 = vector.broadcast %cst_133 : f32 to vector<8x256xf32>
    %611 = arith.mulf %610, %609 : vector<8x256xf32>
    %cst_134 = arith.constant 5.000000e-01 : f32
    %612 = vector.broadcast %cst_134 : f32 to vector<8x256xf32>
    %613 = arith.addf %611, %612 : vector<8x256xf32>
    %614 = arith.select %10, %609, %613 : vector<8x256xi1>, vector<8x256xf32>
    %615 = vector.extract_strided_slice %614 {offsets = [0, 0], sizes = [8, 64], strides = [1, 1]} : vector<8x256xf32> to vector<8x64xf32>
    %616 = vector.extract_strided_slice %614 {offsets = [0, 64], sizes = [8, 64], strides = [1, 1]} : vector<8x256xf32> to vector<8x64xf32>
    %617 = vector.extract_strided_slice %614 {offsets = [0, 128], sizes = [8, 64], strides = [1, 1]} : vector<8x256xf32> to vector<8x64xf32>
    %618 = vector.extract_strided_slice %614 {offsets = [0, 192], sizes = [8, 64], strides = [1, 1]} : vector<8x256xf32> to vector<8x64xf32>
    %619 = arith.mulf %616, %569 : vector<8x64xf32>
    %620 = arith.mulf %615, %617 : vector<8x64xf32>
    %621 = arith.addf %619, %620 : vector<8x64xf32>
    %622 = math.tanh %621 : vector<8x64xf32>
    %623 = arith.mulf %618, %622 : vector<8x64xf32>
    %624 = vector.broadcast %2 : vector<1x64xf32> to vector<8x64xf32>
    %625 = arith.mulf %623, %624 : vector<8x64xf32>
    %cst_135 = arith.constant dense<0.000000e+00> : vector<8xf32>
    %626 = vector.multi_reduction <add>, %625, %cst_135 [1] : vector<8x64xf32> to vector<8xf32>
    %627 = vector.shape_cast %626 : vector<8xf32> to vector<8x1xf32>
    %628 = vector.broadcast %3 : vector<1x1xf32> to vector<8x1xf32>
    %629 = arith.addf %627, %628 : vector<8x1xf32>
    %c11_i32 = arith.constant 11 : i32
    %630 = vector.broadcast %c11_i32 : i32 to vector<8x128xi32>
    %631 = arith.cmpi eq, %4, %630 : vector<8x128xi32>
    %632 = vector.shape_cast %629 : vector<8x1xf32> to vector<8x1xf32>
    %633 = vector.broadcast %632 : vector<8x1xf32> to vector<8x128xf32>
    %634 = arith.select %631, %633, %582 : vector<8x128xi1>, vector<8x128xf32>
    %c0_136 = arith.constant 0 : index
    %c0_137 = arith.constant 0 : index
    %635 = vector.load %arg7[%c0_136, %c0_137] : memref<8x128xf32, #tpu.memory_space<vmem>>, vector<8x128xf32>
    tpu.vector_store %arg7[%c0_136, %c0_137], %634 {strides = array<i32>} : memref<8x128xf32, #tpu.memory_space<vmem>>, vector<8x128xf32>,
    return
  }
}

</mosaic_0001>

<bundles_post_ra>
// kernel: sequence_forward.1
= control target key start
LH: loop header
LB: loop body
LE: loop exit
PB: predicated region body
PF: predicated region fallthrough
CT: control target
= control target key end

     0   :  { %s4905_s0 = inlined_call_operand.vmem [shape: f32[8,8,256], index: 0, kind: input, shape index: {}]   ;;  %s4906_s1 = inlined_call_operand.hbm [shape: f32[128,512], index: 1, kind: input, shape index: {}]   ;;  %s4907_s2 = inlined_call_operand.vmem [shape: f32[1,256], index: 2, kind: input, shape index: {}]   ;;  %s4908_s3 = inlined_call_operand.vmem [shape: f32[64,256], index: 3, kind: input, shape index: {}]   ;;  %s4909_s4 = inlined_call_operand.vmem [shape: f32[1,256], index: 4, kind: input, shape index: {}]   ;;  %s4910_s5 = inlined_call_operand.vmem [shape: f32[1,64], index: 5, kind: input, shape index: {}]   ;;  %s4911_s6 = inlined_call_operand.<no memory space> [shape: f32[1,1], index: 6, kind: input, shape index: {}]   ;;  %s4912_s7 = inlined_call_operand.vmem [shape: f32[8,128], index: 7, kind: output, shape index: {}]  }
   0x1   :  { %v12_v0 = vstv %s4911_s6 }
   0x2   :  { %13 = vst [vmem:[#allocation2] sm:$0x1] %v12_v0 }
   0x3   :  { %14 = vsyncpa [#allocation4], 0  ;;  %s3860_s26 = smov [#allocation3]   ;;  %s3836_s30 = scalar_lea.hbm %s4906_s1, 8192 }
   0x4   :  { %s22_s27 = sshll.u32 %s3860_s26, 4  ;;  %p3837_p0 = scmp.ne.s32.totalorder %s4906_s1, %s3836_s30  ;;  %s23_s27 = int_to_ptr.vmem [resolvable:$true] %s22_s27 }
   0x5   :  { %p3840_p1 = scmp.lt.u32.totalorder %s3836_s30, %s4906_s1 }
   0x7   :  { %p3842_p2 = pnand %p3840_p1, %p3837_p0 }
   0x9   :  { %3845 = shalt.err (!%p3842_p2)
}
   0xa   :  { %s3846_s6 = scalar_lea.vmem %s23_s27, 8192  ;;  %p3851_p4 = scmp.lt.s32.totalorder %s23_s27, %s23_s27 }
   0xb   :  { %p3847_p3 = scmp.ne.s32.totalorder %s23_s27, %s3846_s6  ;;  %p3852_p5 = scmp.lt.s32.totalorder %s3846_s6, %s3846_s6 }
   0xd   :  { %p3853_p6 = por %p3852_p5, %p3851_p4 }
   0xf   :  { %p3854_p7 = pnand %p3853_p6, %p3847_p3 }
  0x11   :  { %3857 = shalt.err (!%p3854_p7)
}
  0x12   :  { %s3861_s12 = smov 512   ;;  %s3862_s13 = smov 32  }
  0x13   :  { %28 = dma.hbm_to_vmem [thread:$0]  %s4906_s1, 8192, %s23_s27, [#allocation4], %s3861_s12, %s3861_s12, %s3862_s13  }
  0x14   :  { %3858 = dma.done.wait [#allocation4], 8192  }
  0x15   :  { %3859 = vsyncadd [#allocation4], 4294959104  ;;  %v55_v1 = vld [vmem:[%s4905_s0] sm:$0xff]  ;;  %v56_v2 = vld [vmem:[%s4905_s0 + $0x8] sm:$0xff]  ;;  %v46_v3 = vlaneseq  ;;  %s3863_s1 = smov 64   ;;  %v4915_v21 = vmov 0.0  }
  0x16   :  { %3692 = vtanh.f32 %v55_v1  ;;  %v83_v14 = vld [vmem:[#allocation3 + $0x8] sm:$0xff]  ;;  %v85_v16 = vld [vmem:[#allocation3 + $0x18] sm:$0xff]  ;;  %v82_v19 = vld [vmem:[#allocation3] sm:$0xff]  ;;  %210 = vmatprep.mubr.f32.mxu0 %v4915_v21  ;;  %281 = vmatprep.mubr.f32.mxu1 %v4915_v21  ;;  %vm80_vm1 = vcmask 523264  }
  0x17   :  { %3694 = vtanh.f32 %v56_v2  ;;  %v3928_v4 = vand.u32 127, %v46_v3  ;;  %v87_v15 = vld [vmem:[#allocation3 + $0x28] sm:$0xff]  ;;  %v89_v18 = vld [vmem:[#allocation3 + $0x38] sm:$0xff]  ;;  %v86_v20 = vld [vmem:[#allocation3 + $0x20] sm:$0xff] }
  0x18   :  { %v3943_v17 = vpack.c.bf16 %v87_v15, %v83_v14  ;;  %v3947_v22 = vpack.c.bf16 %v89_v18, %v85_v16  ;;  %v3949_v23 = vpack.c.bf16 %v86_v20, %v82_v19  ;;  %v84_v24 = vld [vmem:[#allocation3 + $0x10] sm:$0xff]  ;;  %v91_v26 = vld [vmem:[#allocation3 + $0x48] sm:$0xff]  ;;  %v93_v29 = vld [vmem:[#allocation3 + $0x58] sm:$0xff] }
  0x19   :  { %4925 = vst [vmem:[#allocation6_spill] sm:$0xff] %v3928_v4  ;;  %v3931_v5 = vadd.s32 128, %v3928_v4  ;;  %v88_v25 = vld [vmem:[#allocation3 + $0x30] sm:$0xff]  ;;  %v95_v28 = vld [vmem:[#allocation3 + $0x68] sm:$0xff]  ;;  %v97_v30 = vld [vmem:[#allocation3 + $0x78] sm:$0xff] }
  0x1a   :  { %2869 = vmatprep.subr.bf16.mxu0 %v3943_v17  ;;  %v3952_v27 = vpack.c.bf16 %v88_v25, %v84_v24  ;;  %2901 = vmatprep.subr.bf16.mxu1 %v3947_v22  ;;  %v3956_v31 = vpack.c.bf16 %v95_v28, %v91_v26  ;;  %v3958_v32 = vpack.c.bf16 %v97_v30, %v93_v29  ;;  %v90_v33 = vld [vmem:[#allocation3 + $0x40] sm:$0xff]  ;;  %v92_v35 = vld [vmem:[#allocation3 + $0x50] sm:$0xff]  ;;  %v99_v38 = vld [vmem:[#allocation3 + $0x88] sm:$0xff] }
  0x1b   :  { %vm52_vm0 = vcmp.lt.s32.totalorder %v3931_v5, 192  ;;  %2871 = vmatpush1.bf16.msra.mxu0 %v3949_v23  ;;  %v94_v34 = vld [vmem:[#allocation3 + $0x60] sm:$0xff]  ;;  %v96_v37 = vld [vmem:[#allocation3 + $0x70] sm:$0xff]  ;;  %v103_v39 = vld [vmem:[#allocation3 + $0xa8] sm:$0xff] }
  0x1c   :  { %2903 = vmatpush1.bf16.msra.mxu1 %v3952_v27  ;;  %v3961_v36 = vpack.c.bf16 %v94_v34, %v90_v33  ;;  %2873 = vmatprep.subr.bf16.mxu0 %v3956_v31  ;;  %v3965_v40 = vpack.c.bf16 %v96_v37, %v92_v35  ;;  %v3967_v41 = vpack.c.bf16 %v103_v39, %v99_v38  ;;  %v101_v42 = vld [vmem:[#allocation3 + $0x98] sm:$0xff]  ;;  %v98_v44 = vld [vmem:[#allocation3 + $0x80] sm:$0xff]  ;;  %v100_v47 = vld [vmem:[#allocation3 + $0x90] sm:$0xff] }
  0x1d   :  { %2905 = vmatprep.subr.bf16.mxu1 %v3958_v32  ;;  %v105_v43 = vld [vmem:[#allocation3 + $0xb8] sm:$0xff]  ;;  %v102_v46 = vld [vmem:[#allocation3 + $0xa0] sm:$0xff]  ;;  %v104_v48 = vld [vmem:[#allocation3 + $0xb0] sm:$0xff] }
  0x1e   :  { %v3969_v45 = vpack.c.bf16 %v105_v43, %v101_v42  ;;  %v3972_v49 = vpack.c.bf16 %v102_v46, %v98_v44  ;;  %v107_v50 = vld [vmem:[#allocation3 + $0xc8] sm:$0xff]  ;;  %v109_v52 = vld [vmem:[#allocation3 + $0xd8] sm:$0xff]  ;;  %v3976_v53 = vpack.c.bf16 %v104_v48, %v100_v47  ;;  %v106_v56 = vld [vmem:[#allocation3 + $0xc0] sm:$0xff] }
  0x1f   :  { %2875 = vmatpush1.bf16.msra.mxu0 %v3961_v36  ;;  %v111_v51 = vld [vmem:[#allocation3 + $0xe8] sm:$0xff]  ;;  %v113_v55 = vld [vmem:[#allocation3 + $0xf8] sm:$0xff]  ;;  %v110_v57 = vld [vmem:[#allocation3 + $0xe0] sm:$0xff] }
  0x20   :  { %v3693_v6 = vpop.eup %3692  ;;  %2907 = vmatpush1.bf16.msra.mxu1 %v3965_v40  ;;  %2877 = vmatprep.subr.bf16.mxu0 %v3967_v41  ;;  %v3978_v54 = vpack.c.bf16 %v111_v51, %v107_v50  ;;  %v3981_v58 = vpack.c.bf16 %v113_v55, %v109_v52  ;;  %v108_v59 = vld [vmem:[#allocation3 + $0xd0] sm:$0xff]  ;;  %v115_v61 = vld [vmem:[#allocation3 + $0x108] sm:$0xff]  ;;  %v117_v63 = vld [vmem:[#allocation3 + $0x118] sm:$0xff]  ;;  %v3984_v1 = vpack.c.bf16 %v110_v57, %v106_v56 }
  0x21   :  { %v3695_v7 = vpop.eup %3694  ;;  %v61_v8 = vmul.f32 0.5, %v3693_v6  ;;  %2909 = vmatprep.subr.bf16.mxu1 %v3969_v45  ;;  %v112_v60 = vld [vmem:[#allocation3 + $0xf0] sm:$0xff]  ;;  %v119_v62 = vld [vmem:[#allocation3 + $0x128] sm:$0xff]  ;;  %v121_v0 = vld [vmem:[#allocation3 + $0x138] sm:$0xff] }
  0x22   :  { %v62_v9 = vmul.f32 0.5, %v3695_v7  ;;  %v3988_v2 = vpack.c.bf16 %v112_v60, %v108_v59  ;;  %v3990_v6 = vpack.c.bf16 %v119_v62, %v115_v61  ;;  %v123_v14 = vld [vmem:[#allocation3 + $0x148] sm:$0xff]  ;;  %v125_v16 = vld [vmem:[#allocation3 + $0x158] sm:$0xff]  ;;  %v122_v25 = vld [vmem:[#allocation3 + $0x140] sm:$0xff] }
  0x23   :  { %v3934_v10 = vadd.f32 0.5, %v61_v8  ;;  %2879 = vmatpush1.bf16.msra.mxu0 %v3972_v49  ;;  %v118_v8 = vld [vmem:[#allocation3 + $0x120] sm:$0xff]  ;;  %v127_v15 = vld [vmem:[#allocation3 + $0x168] sm:$0xff]  ;;  %v129_v18 = vld [vmem:[#allocation3 + $0x178] sm:$0xff] }
  0x24   :  { %v64_v11 = vadd.f32 0.5, %v62_v9  ;;  %2911 = vmatpush1.bf16.msra.mxu1 %v3976_v53  ;;  %2881 = vmatprep.subr.bf16.mxu0 %v3978_v54  ;;  %v116_v9 = vld [vmem:[#allocation3 + $0x110] sm:$0xff]  ;;  %v4002_v24 = vpack.c.bf16 %v127_v15, %v123_v14  ;;  %v126_v26 = vld [vmem:[#allocation3 + $0x160] sm:$0xff]  ;;  %v4005_v29 = vpack.c.bf16 %v129_v18, %v125_v16  ;;  %v131_v33 = vld [vmem:[#allocation3 + $0x188] sm:$0xff] }
  0x25   :  { %2913 = vmatprep.subr.bf16.mxu1 %v3981_v58  ;;  %v124_v28 = vld [vmem:[#allocation3 + $0x150] sm:$0xff]  ;;  %v135_v34 = vld [vmem:[#allocation3 + $0x1a8] sm:$0xff]  ;;  %v133_v35 = vld [vmem:[#allocation3 + $0x198] sm:$0xff]  ;;  %v4008_v38 = vpack.c.bf16 %v126_v26, %v122_v25 }
  0x26   :  { %v3938_v12 = vsel %vm52_vm0, %v3695_v7, %v64_v11  ;;  %v114_v7 = vld [vmem:[#allocation3 + $0x100] sm:$0xff]  ;;  %v3993_v11 = vpack.c.bf16 %v121_v0, %v117_v63  ;;  %v128_v30 = vld [vmem:[#allocation3 + $0x170] sm:$0xff]  ;;  %v137_v37 = vld [vmem:[#allocation3 + $0x1b8] sm:$0xff]  ;;  %v4014_v42 = vpack.c.bf16 %v135_v34, %v131_v33 }
  0x27   :  { %v68_v13 = vmul.f32 %v3938_v12, %v3934_v10  ;;  %2883 = vmatpush1.bf16.msra.mxu0 %v3984_v1  ;;  %v3996_v19 = vpack.c.bf16 %v118_v8, %v114_v7  ;;  %v4012_v39 = vpack.c.bf16 %v128_v30, %v124_v28  ;;  %v130_v43 = vld [vmem:[#allocation3 + $0x180] sm:$0xff]  ;;  %v132_v46 = vld [vmem:[#allocation3 + $0x190] sm:$0xff]  ;;  %v4017_v47 = vpack.c.bf16 %v137_v37, %v133_v35  ;;  %v139_v50 = vld [vmem:[#allocation3 + $0x1c8] sm:$0xff] }
  0x28   :  { %2915 = vmatpush1.bf16.msra.mxu1 %v3988_v2  ;;  %2885 = vmatprep.subr.bf16.mxu0 %v3990_v6  ;;  %v134_v44 = vld [vmem:[#allocation3 + $0x1a0] sm:$0xff]  ;;  %v136_v48 = vld [vmem:[#allocation3 + $0x1b0] sm:$0xff]  ;;  %v143_v51 = vld [vmem:[#allocation3 + $0x1e8] sm:$0xff] }
  0x29   :  { %70 = vrot.lane.b32.xlu0 %v68_v13, %s3863_s1  ;;  %v120_v13 = vld [vmem:[#allocation3 + $0x130] sm:$0xff]  ;;  %2917 = vmatprep.subr.bf16.mxu1 %v3993_v11  ;;  %v141_v52 = vld [vmem:[#allocation3 + $0x1d8] sm:$0xff]  ;;  %v4020_v56 = vpack.c.bf16 %v134_v44, %v130_v43  ;;  %v4024_v57 = vpack.c.bf16 %v136_v48, %v132_v46  ;;  %v4026_v59 = vpack.c.bf16 %v143_v51, %v139_v50  ;;  %v138_v60 = vld [vmem:[#allocation3 + $0x1c0] sm:$0xff] }
  0x2a   :  { %v4000_v20 = vpack.c.bf16 %v120_v13, %v116_v9  ;;  %v145_v55 = vld [vmem:[#allocation3 + $0x1f8] sm:$0xff]  ;;  %v142_v61 = vld [vmem:[#allocation3 + $0x1e0] sm:$0xff]  ;;  %v140_v63 = vld [vmem:[#allocation3 + $0x1d0] sm:$0xff]  ;;  %v67_v9 = vmul.f32 0.0, %v3934_v10  ;;  %v4086_v10 = vshrl.u32 %v46_v3, 7 }
  0x2b   :  { %2887 = vmatpush1.bf16.msra.mxu0 %v3996_v19  ;;  %v4029_v62 = vpack.c.bf16 %v145_v55, %v141_v52  ;;  %v144_v0 = vld [vmem:[#allocation3 + $0x1f0] sm:$0xff]  ;;  %v4032_v7 = vpack.c.bf16 %v142_v61, %v138_v60  ;;  %v42_v25 = vld [vmem:[%s4907_s2] sm:$0x3] }
  0x2c   :  { %2919 = vmatpush1.bf16.msra.mxu1 %v4000_v20  ;;  %2889 = vmatprep.subr.bf16.mxu0 %v4002_v24  ;;  %v4036_v8 = vpack.c.bf16 %v144_v0, %v140_v63  ;;  %v4914_v26 = vsub.s32 0, %v4086_v10  ;;  %v2850_v28 = vld [vmem:[%s4905_s0 + $0x10] sm:$0xff]  ;;  %v2851_v33 = vld [vmem:[%s4905_s0 + $0x18] sm:$0xff] }
  0x2d   :  { %2921 = vmatprep.subr.bf16.mxu1 %v4005_v29 }
  0x2e   :  { %v4102_v3 = vrot.slane %v42_v25, %v4914_v26 }
  0x2f   :  { %2891 = vmatpush1.bf16.msra.mxu0 %v4008_v38 }
  0x30   :  { %2923 = vmatpush1.bf16.msra.mxu1 %v4012_v39  ;;  %2893 = vmatprep.subr.bf16.mxu0 %v4014_v42 }
  0x31   :  { %2925 = vmatprep.subr.bf16.mxu1 %v4017_v47 }
  0x33   :  { %2895 = vmatpush1.bf16.msra.mxu0 %v4020_v56 }
  0x34   :  { %2927 = vmatpush1.bf16.msra.mxu1 %v4024_v57  ;;  %2897 = vmatprep.subr.bf16.mxu0 %v4026_v59 }
  0x35   :  { %2929 = vmatprep.subr.bf16.mxu1 %v4029_v62 }
  0x37   :  { %2899 = vmatpush1.bf16.msra.mxu0 %v4032_v7 }
  0x38   :  { %2931 = vmatpush1.bf16.msra.mxu1 %v4036_v8  ;;  %2933 = vmatprep.subr.bf16.mxu0 %v3943_v17 }
  0x39   :  { %2965 = vmatprep.subr.bf16.mxu1 %v3947_v22 }
  0x9b   :  { %v71_v13 = vpop.permute.xlu0 %70 }
  0x9c   :  { %v4044_v14 = vadd.f32 %v71_v13, %v67_v9 }
  0x9e   :  { %3696 = vtanh.f32 %v4044_v14 }
  0xa8   :  { %v3697_v15 = vpop.eup %3696 }
  0xa9   :  { %v75_v16 = vmul.f32 %v3697_v15, %v3938_v12  ;;  %v4913_v12 = vsub.s32 1, %v4086_v10 }
  0xab   :  { %77 = vrot.lane.b32.xlu0 %v75_v16, %s3863_s1  ;;  %v4098_v30 = vrot.slane %v42_v25, %v4913_v12 }
 0x11d   :  { %v78_v18 = vpop.permute.xlu0 %77 }
 0x11e   :  { %2846 = vmatmul.mubr.msk.f32.vlgmr.msra.gmra.mrb[0].mxu0 %vm80_vm1, %v78_v18  ;;  %2847 = vmatmul.mubr.msk.f32.vlgmr.msra.gmra.mrb[0].mxu1 %vm80_vm1, %v78_v18 }
 0x11f   :  { %2935 = vmatpush1.bf16.msra.mxu0 %v3949_v23  ;;  %2967 = vmatpush1.bf16.msra.mxu1 %v3952_v27 }
 0x120   :  { %2937 = vmatprep.subr.bf16.mxu0 %v3956_v31  ;;  %2969 = vmatprep.subr.bf16.mxu1 %v3958_v32 }
 0x121   :  { %439 = vmatprep.mubr.f32.mxu0 %v4915_v21  ;;  %510 = vmatprep.mubr.f32.mxu1 %v4915_v21 }
 0x123   :  { %2939 = vmatpush1.bf16.msra.mxu0 %v3961_v36  ;;  %2971 = vmatpush1.bf16.msra.mxu1 %v3965_v40 }
 0x124   :  { %2941 = vmatprep.subr.bf16.mxu0 %v3967_v41  ;;  %2973 = vmatprep.subr.bf16.mxu1 %v3969_v45 }
 0x127   :  { %2943 = vmatpush1.bf16.msra.mxu0 %v3972_v49  ;;  %2975 = vmatpush1.bf16.msra.mxu1 %v3976_v53 }
 0x128   :  { %2945 = vmatprep.subr.bf16.mxu0 %v3978_v54  ;;  %2977 = vmatprep.subr.bf16.mxu1 %v3981_v58 }
 0x12b   :  { %2947 = vmatpush1.bf16.msra.mxu0 %v3984_v1  ;;  %2979 = vmatpush1.bf16.msra.mxu1 %v3988_v2 }
 0x12c   :  { %2949 = vmatprep.subr.bf16.mxu0 %v3990_v6  ;;  %2981 = vmatprep.subr.bf16.mxu1 %v3993_v11 }
 0x12f   :  { %2951 = vmatpush1.bf16.msra.mxu0 %v3996_v19  ;;  %2983 = vmatpush1.bf16.msra.mxu1 %v4000_v20 }
 0x130   :  { %2953 = vmatprep.subr.bf16.mxu0 %v4002_v24  ;;  %2985 = vmatprep.subr.bf16.mxu1 %v4005_v29 }
 0x133   :  { %2955 = vmatpush1.bf16.msra.mxu0 %v4008_v38  ;;  %2987 = vmatpush1.bf16.msra.mxu1 %v4012_v39 }
 0x134   :  { %2957 = vmatprep.subr.bf16.mxu0 %v4014_v42  ;;  %2989 = vmatprep.subr.bf16.mxu1 %v4017_v47 }
 0x137   :  { %2959 = vmatpush1.bf16.msra.mxu0 %v4020_v56  ;;  %2991 = vmatpush1.bf16.msra.mxu1 %v4024_v57 }
 0x138   :  { %2961 = vmatprep.subr.bf16.mxu0 %v4026_v59  ;;  %2993 = vmatprep.subr.bf16.mxu1 %v4029_v62 }
 0x13b   :  { %2963 = vmatpush1.bf16.msra.mxu0 %v4032_v7  ;;  %2995 = vmatpush1.bf16.msra.mxu1 %v4036_v8 }
 0x13c   :  { %2997 = vmatprep.subr.bf16.mxu0 %v3943_v17  ;;  %3029 = vmatprep.subr.bf16.mxu1 %v3947_v22 }
 0x1f1   :  { %v212_v34 = vpop.f32.mrb[0].mxu0  ;;  %v283_v35 = vpop.f32.mrb[0].mxu1 }
 0x1f2   :  { %v351_v37 = vadd.f32 %v2850_v28, %v283_v35  ;;  %v214_v43 = vpop.f32.mrb[1].mxu0  ;;  %v285_v44 = vpop.f32.mrb[1].mxu1  ;;  %v299_v50 = vadd.f32 %v4102_v3, %v212_v34 }
 0x1f3   :  { %v300_v46 = vadd.f32 %v4098_v30, %v214_v43  ;;  %v352_v48 = vadd.f32 %v2851_v33, %v285_v44 }
 0x1f4   :  { %3698 = vtanh.f32 %v351_v37 }
 0x1f5   :  { %3700 = vtanh.f32 %v300_v46 }
 0x1f6   :  { %3702 = vtanh.f32 %v352_v48 }
 0x1f7   :  { %3704 = vtanh.f32 %v299_v50 }
 0x1fe   :  { %v3699_v51 = vpop.eup %3698 }
 0x1ff   :  { %v3701_v52 = vpop.eup %3700  ;;  %v355_v60 = vmul.f32 0.5, %v3699_v51 }
 0x200   :  { %v3703_v55 = vpop.eup %3702  ;;  %v304_v61 = vmul.f32 0.5, %v3701_v52 }
 0x201   :  { %v3705_v63 = vpop.eup %3704  ;;  %v356_v0 = vmul.f32 0.5, %v3703_v55  ;;  %v357_v16 = vadd.f32 0.5, %v355_v60 }
 0x202   :  { %v306_v13 = vadd.f32 0.5, %v304_v61  ;;  %v303_v15 = vmul.f32 0.5, %v3705_v63  ;;  %v2852_v61 = vld [vmem:[%s4905_s0 + $0x20] sm:$0xff]  ;;  %v2853_v63 = vld [vmem:[%s4905_s0 + $0x28] sm:$0xff] }
 0x203   :  { %v358_v9 = vadd.f32 0.5, %v356_v0  ;;  %v361_v35 = vmul.f32 %v357_v16, %v4044_v14 }
 0x204   :  { %v308_v28 = vsel %vm52_vm0, %v3701_v52, %v306_v13  ;;  %v305_v33 = vadd.f32 0.5, %v303_v15 }
 0x205   :  { %v360_v18 = vsel %vm52_vm0, %v3703_v55, %v358_v9 }
 0x206   :  { %v362_v25 = vmul.f32 %v360_v18, %v357_v16  ;;  %v310_v34 = vmul.f32 %v308_v28, %v305_v33  ;;  %v309_v50 = vmul.f32 0.0, %v305_v33 }
 0x208   :  { %364 = vrot.lane.b32.xlu1 %v362_v25, %s3863_s1 }
 0x20c   :  { %312 = vrot.lane.b32.xlu1 %v310_v34, %s3863_s1 }
 0x27a   :  { %v365_v37 = vpop.permute.xlu1 %364 }
 0x27b   :  { %v4116_v43 = vadd.f32 %v365_v37, %v361_v35 }
 0x27d   :  { %3706 = vtanh.f32 %v4116_v43 }
 0x27e   :  { %v313_v48 = vpop.permute.xlu1 %312 }
 0x27f   :  { %v4120_v51 = vadd.f32 %v313_v48, %v309_v50 }
 0x281   :  { %3708 = vtanh.f32 %v4120_v51 }
 0x287   :  { %v3707_v44 = vpop.eup %3706 }
 0x288   :  { %v369_v46 = vmul.f32 %v3707_v44, %v360_v18 }
 0x28a   :  { %371 = vrot.lane.b32.xlu0 %v369_v46, %s3863_s1 }
 0x28b   :  { %v3709_v52 = vpop.eup %3708 }
 0x28c   :  { %v4123_v55 = vmul.f32 %v3709_v52, %v308_v28 }
 0x2fc   :  { %v372_v60 = vpop.permute.xlu0 %371 }
 0x2fd   :  { %v374_v14 = vsel %vm80_vm1, %v372_v60, %v4123_v55 }
 0x2fe   :  { %440 = vmatmul.mubr.f32.vlgmr.msra.gmra.mrb[2].mxu0 %v374_v14  ;;  %511 = vmatmul.mubr.f32.vlgmr.msra.gmra.mrb[2].mxu1 %v374_v14 }
 0x2ff   :  { %2999 = vmatpush1.bf16.msra.mxu0 %v3949_v23  ;;  %3031 = vmatpush1.bf16.msra.mxu1 %v3952_v27 }
 0x300   :  { %3001 = vmatprep.subr.bf16.mxu0 %v3956_v31  ;;  %3033 = vmatprep.subr.bf16.mxu1 %v3958_v32 }
 0x301   :  { %643 = vmatprep.mubr.f32.mxu0 %v4915_v21  ;;  %714 = vmatprep.mubr.f32.mxu1 %v4915_v21 }
 0x303   :  { %3003 = vmatpush1.bf16.msra.mxu0 %v3961_v36  ;;  %3035 = vmatpush1.bf16.msra.mxu1 %v3965_v40 }
 0x304   :  { %3005 = vmatprep.subr.bf16.mxu0 %v3967_v41  ;;  %3037 = vmatprep.subr.bf16.mxu1 %v3969_v45 }
 0x307   :  { %3007 = vmatpush1.bf16.msra.mxu0 %v3972_v49  ;;  %3039 = vmatpush1.bf16.msra.mxu1 %v3976_v53 }
 0x308   :  { %3009 = vmatprep.subr.bf16.mxu0 %v3978_v54  ;;  %3041 = vmatprep.subr.bf16.mxu1 %v3981_v58 }
 0x30b   :  { %3011 = vmatpush1.bf16.msra.mxu0 %v3984_v1  ;;  %3043 = vmatpush1.bf16.msra.mxu1 %v3988_v2 }
 0x30c   :  { %3013 = vmatprep.subr.bf16.mxu0 %v3990_v6  ;;  %3045 = vmatprep.subr.bf16.mxu1 %v3993_v11 }
 0x30f   :  { %3015 = vmatpush1.bf16.msra.mxu0 %v3996_v19  ;;  %3047 = vmatpush1.bf16.msra.mxu1 %v4000_v20 }
 0x310   :  { %3017 = vmatprep.subr.bf16.mxu0 %v4002_v24  ;;  %3049 = vmatprep.subr.bf16.mxu1 %v4005_v29 }
 0x313   :  { %3019 = vmatpush1.bf16.msra.mxu0 %v4008_v38  ;;  %3051 = vmatpush1.bf16.msra.mxu1 %v4012_v39 }
 0x314   :  { %3021 = vmatprep.subr.bf16.mxu0 %v4014_v42  ;;  %3053 = vmatprep.subr.bf16.mxu1 %v4017_v47 }
 0x317   :  { %3023 = vmatpush1.bf16.msra.mxu0 %v4020_v56  ;;  %3055 = vmatpush1.bf16.msra.mxu1 %v4024_v57 }
 0x318   :  { %3025 = vmatprep.subr.bf16.mxu0 %v4026_v59  ;;  %3057 = vmatprep.subr.bf16.mxu1 %v4029_v62 }
 0x31b   :  { %3027 = vmatpush1.bf16.msra.mxu0 %v4032_v7  ;;  %3059 = vmatpush1.bf16.msra.mxu1 %v4036_v8 }
 0x31c   :  { %3061 = vmatprep.subr.bf16.mxu0 %v3943_v17  ;;  %3093 = vmatprep.subr.bf16.mxu1 %v3947_v22 }
 0x3d1   :  { %v441_v0 = vpop.f32.mrb[2].mxu0  ;;  %v512_v9 = vpop.f32.mrb[2].mxu1 }
 0x3d2   :  { %v517_v13 = vadd.f32 %v441_v0, %v4102_v3  ;;  %v555_v15 = vadd.f32 %v2852_v61, %v512_v9  ;;  %v443_v16 = vpop.f32.mrb[3].mxu0  ;;  %v514_v18 = vpop.f32.mrb[3].mxu1 }
 0x3d3   :  { %v518_v25 = vadd.f32 %v443_v16, %v4098_v30  ;;  %v556_v28 = vadd.f32 %v2853_v63, %v514_v18 }
 0x3d4   :  { %3710 = vtanh.f32 %v517_v13 }
 0x3d5   :  { %3712 = vtanh.f32 %v555_v15 }
 0x3d6   :  { %3714 = vtanh.f32 %v518_v25 }
 0x3d7   :  { %3716 = vtanh.f32 %v556_v28 }
 0x3de   :  { %v3711_v33 = vpop.eup %3710 }
 0x3df   :  { %v3713_v34 = vpop.eup %3712  ;;  %v521_v37 = vmul.f32 0.5, %v3711_v33 }
 0x3e0   :  { %v3715_v35 = vpop.eup %3714  ;;  %v559_v46 = vmul.f32 0.5, %v3713_v34 }
 0x3e1   :  { %v3717_v44 = vpop.eup %3716  ;;  %v522_v48 = vmul.f32 0.5, %v3715_v35  ;;  %v523_v60 = vadd.f32 0.5, %v521_v37 }
 0x3e2   :  { %v560_v50 = vmul.f32 0.5, %v3717_v44  ;;  %v561_v61 = vadd.f32 0.5, %v559_v46 }
 0x3e3   :  { %v524_v52 = vadd.f32 0.5, %v522_v48  ;;  %v527_v34 = vmul.f32 %v523_v60, %v4120_v51  ;;  %v2854_v51 = vld [vmem:[%s4905_s0 + $0x30] sm:$0xff]  ;;  %v2855_v48 = vld [vmem:[%s4905_s0 + $0x38] sm:$0xff] }
 0x3e4   :  { %v562_v14 = vadd.f32 0.5, %v560_v50  ;;  %v565_v15 = vmul.f32 %v561_v61, %v4116_v43 }
 0x3e5   :  { %v526_v0 = vsel %vm52_vm0, %v3715_v35, %v524_v52 }
 0x3e6   :  { %v564_v63 = vsel %vm52_vm0, %v3717_v44, %v562_v14  ;;  %v528_v9 = vmul.f32 %v526_v0, %v523_v60 }
 0x3e7   :  { %v566_v13 = vmul.f32 %v564_v63, %v561_v61 }
 0x3e8   :  { %530 = vrot.lane.b32.xlu0 %v528_v9, %s3863_s1 }
 0x3e9   :  { %568 = vrot.lane.b32.xlu1 %v566_v13, %s3863_s1 }
 0x45a   :  { %v531_v33 = vpop.permute.xlu0 %530 }
 0x45b   :  { %v569_v16 = vpop.permute.xlu1 %568  ;;  %v4181_v35 = vadd.f32 %v531_v33, %v527_v34 }
 0x45c   :  { %v4176_v18 = vadd.f32 %v569_v16, %v565_v15 }
 0x45e   :  { %3718 = vtanh.f32 %v4176_v18 }
 0x45f   :  { %3720 = vtanh.f32 %v4181_v35 }
 0x468   :  { %v3719_v25 = vpop.eup %3718 }
 0x469   :  { %v573_v28 = vmul.f32 %v3719_v25, %v564_v63  ;;  %v3721_v37 = vpop.eup %3720 }
 0x46a   :  { %v4184_v44 = vmul.f32 %v3721_v37, %v526_v0 }
 0x46b   :  { %575 = vrot.lane.b32.xlu1 %v573_v28, %s3863_s1 }
 0x46c   :  { %4926 = vst [vmem:[#allocation7_spill] sm:$0xff] %v4184_v44 }
 0x4dd   :  { %v576_v43 = vpop.permute.xlu1 %575 }
 0x4de   :  { %v578_v46 = vsel %vm80_vm1, %v576_v43, %v4184_v44 }
 0x4df   :  { %644 = vmatmul.mubr.f32.vlgmr.msra.gmra.mrb[4].mxu0 %v578_v46  ;;  %715 = vmatmul.mubr.f32.vlgmr.msra.gmra.mrb[4].mxu1 %v578_v46 }
 0x4e0   :  { %3063 = vmatpush1.bf16.msra.mxu0 %v3949_v23  ;;  %3095 = vmatpush1.bf16.msra.mxu1 %v3952_v27 }
 0x4e1   :  { %3065 = vmatprep.subr.bf16.mxu0 %v3956_v31  ;;  %3097 = vmatprep.subr.bf16.mxu1 %v3958_v32 }
 0x4e2   :  { %847 = vmatprep.mubr.f32.mxu0 %v4915_v21  ;;  %918 = vmatprep.mubr.f32.mxu1 %v4915_v21 }
 0x4e4   :  { %3067 = vmatpush1.bf16.msra.mxu0 %v3961_v36  ;;  %3099 = vmatpush1.bf16.msra.mxu1 %v3965_v40 }
 0x4e5   :  { %3069 = vmatprep.subr.bf16.mxu0 %v3967_v41  ;;  %3101 = vmatprep.subr.bf16.mxu1 %v3969_v45 }
 0x4e8   :  { %3071 = vmatpush1.bf16.msra.mxu0 %v3972_v49  ;;  %3103 = vmatpush1.bf16.msra.mxu1 %v3976_v53 }
 0x4e9   :  { %3073 = vmatprep.subr.bf16.mxu0 %v3978_v54  ;;  %3105 = vmatprep.subr.bf16.mxu1 %v3981_v58 }
 0x4ec   :  { %3075 = vmatpush1.bf16.msra.mxu0 %v3984_v1  ;;  %3107 = vmatpush1.bf16.msra.mxu1 %v3988_v2 }
 0x4ed   :  { %3077 = vmatprep.subr.bf16.mxu0 %v3990_v6  ;;  %3109 = vmatprep.subr.bf16.mxu1 %v3993_v11 }
 0x4f0   :  { %3079 = vmatpush1.bf16.msra.mxu0 %v3996_v19  ;;  %3111 = vmatpush1.bf16.msra.mxu1 %v4000_v20 }
 0x4f1   :  { %3081 = vmatprep.subr.bf16.mxu0 %v4002_v24  ;;  %3113 = vmatprep.subr.bf16.mxu1 %v4005_v29 }
 0x4f4   :  { %3083 = vmatpush1.bf16.msra.mxu0 %v4008_v38  ;;  %3115 = vmatpush1.bf16.msra.mxu1 %v4012_v39 }
 0x4f5   :  { %3085 = vmatprep.subr.bf16.mxu0 %v4014_v42  ;;  %3117 = vmatprep.subr.bf16.mxu1 %v4017_v47 }
 0x4f8   :  { %3087 = vmatpush1.bf16.msra.mxu0 %v4020_v56  ;;  %3119 = vmatpush1.bf16.msra.mxu1 %v4024_v57 }
 0x4f9   :  { %3089 = vmatprep.subr.bf16.mxu0 %v4026_v59  ;;  %3121 = vmatprep.subr.bf16.mxu1 %v4029_v62 }
 0x4fc   :  { %3091 = vmatpush1.bf16.msra.mxu0 %v4032_v7  ;;  %3123 = vmatpush1.bf16.msra.mxu1 %v4036_v8 }
 0x4fd   :  { %3125 = vmatprep.subr.bf16.mxu0 %v3943_v17  ;;  %3157 = vmatprep.subr.bf16.mxu1 %v3947_v22 }
 0x5b2   :  { %v645_v50 = vpop.f32.mrb[4].mxu0  ;;  %v716_v52 = vpop.f32.mrb[4].mxu1 }
 0x5b3   :  { %v721_v60 = vadd.f32 %v645_v50, %v4102_v3  ;;  %v759_v14 = vadd.f32 %v2854_v51, %v716_v52  ;;  %v647_v61 = vpop.f32.mrb[5].mxu0  ;;  %v718_v0 = vpop.f32.mrb[5].mxu1 }
 0x5b4   :  { %v722_v63 = vadd.f32 %v647_v61, %v4098_v30  ;;  %v760_v9 = vadd.f32 %v2855_v48, %v718_v0 }
 0x5b5   :  { %3722 = vtanh.f32 %v721_v60 }
 0x5b6   :  { %3724 = vtanh.f32 %v759_v14 }
 0x5b7   :  { %3726 = vtanh.f32 %v722_v63 }
 0x5b8   :  { %3728 = vtanh.f32 %v760_v9 }
 0x5bf   :  { %v3723_v13 = vpop.eup %3722 }
 0x5c0   :  { %v3725_v15 = vpop.eup %3724  ;;  %v725_v25 = vmul.f32 0.5, %v3723_v13 }
 0x5c1   :  { %v3727_v16 = vpop.eup %3726  ;;  %v763_v33 = vmul.f32 0.5, %v3725_v15 }
 0x5c2   :  { %v3729_v28 = vpop.eup %3728  ;;  %v726_v34 = vmul.f32 0.5, %v3727_v16  ;;  %v727_v46 = vadd.f32 0.5, %v725_v25 }
 0x5c3   :  { %v764_v37 = vmul.f32 0.5, %v3729_v28  ;;  %v765_v50 = vadd.f32 0.5, %v763_v33 }
 0x5c4   :  { %v728_v43 = vadd.f32 0.5, %v726_v34 }
 0x5c5   :  { %v766_v51 = vadd.f32 0.5, %v764_v37  ;;  %v769_v61 = vmul.f32 %v765_v50, %v4176_v18  ;;  %v2857_v37 = vld [vmem:[%s4905_s0 + $0x48] sm:$0xff] }
 0x5c6   :  { %v730_v52 = vsel %vm52_vm0, %v3727_v16, %v728_v43  ;;  %v731_v16 = vmul.f32 %v727_v46, %v4181_v35  ;;  %v2856_v35 = vld [vmem:[%s4905_s0 + $0x40] sm:$0xff] }
 0x5c7   :  { %v768_v48 = vsel %vm52_vm0, %v3729_v28, %v766_v51  ;;  %v732_v60 = vmul.f32 %v730_v52, %v727_v46 }
 0x5c8   :  { %v770_v14 = vmul.f32 %v768_v48, %v765_v50 }
 0x5c9   :  { %734 = vrot.lane.b32.xlu1 %v732_v60, %s3863_s1 }
 0x5ca   :  { %772 = vrot.lane.b32.xlu0 %v770_v14, %s3863_s1 }
 0x63b   :  { %v735_v15 = vpop.permute.xlu1 %734 }
 0x63c   :  { %v773_v0 = vpop.permute.xlu0 %772  ;;  %v4242_v25 = vadd.f32 %v735_v15, %v731_v16 }
 0x63d   :  { %v4237_v63 = vadd.f32 %v773_v0, %v769_v61 }
 0x63f   :  { %3730 = vtanh.f32 %v4237_v63 }
 0x640   :  { %3732 = vtanh.f32 %v4242_v25 }
 0x649   :  { %v3731_v9 = vpop.eup %3730 }
 0x64a   :  { %v777_v13 = vmul.f32 %v3731_v9, %v768_v48  ;;  %v3733_v28 = vpop.eup %3732 }
 0x64b   :  { %v4245_v33 = vmul.f32 %v3733_v28, %v730_v52 }
 0x64c   :  { %779 = vrot.lane.b32.xlu0 %v777_v13, %s3863_s1 }
 0x64d   :  { %4927 = vst [vmem:[#allocation8_spill] sm:$0xff] %v4245_v33 }
 0x6be   :  { %v780_v18 = vpop.permute.xlu0 %779 }
 0x6bf   :  { %v782_v34 = vsel %vm80_vm1, %v780_v18, %v4245_v33 }
 0x6c0   :  { %848 = vmatmul.mubr.f32.vlgmr.msra.gmra.mrb[6].mxu0 %v782_v34  ;;  %919 = vmatmul.mubr.f32.vlgmr.msra.gmra.mrb[6].mxu1 %v782_v34 }
 0x6c1   :  { %3127 = vmatpush1.bf16.msra.mxu0 %v3949_v23  ;;  %3159 = vmatpush1.bf16.msra.mxu1 %v3952_v27 }
 0x6c2   :  { %3129 = vmatprep.subr.bf16.mxu0 %v3956_v31  ;;  %3161 = vmatprep.subr.bf16.mxu1 %v3958_v32 }
 0x6c3   :  { %1051 = vmatprep.mubr.f32.mxu0 %v4915_v21  ;;  %1122 = vmatprep.mubr.f32.mxu1 %v4915_v21 }
 0x6c5   :  { %3131 = vmatpush1.bf16.msra.mxu0 %v3961_v36  ;;  %3163 = vmatpush1.bf16.msra.mxu1 %v3965_v40 }
 0x6c6   :  { %3133 = vmatprep.subr.bf16.mxu0 %v3967_v41  ;;  %3165 = vmatprep.subr.bf16.mxu1 %v3969_v45 }
 0x6c9   :  { %3135 = vmatpush1.bf16.msra.mxu0 %v3972_v49  ;;  %3167 = vmatpush1.bf16.msra.mxu1 %v3976_v53 }
 0x6ca   :  { %3137 = vmatprep.subr.bf16.mxu0 %v3978_v54  ;;  %3169 = vmatprep.subr.bf16.mxu1 %v3981_v58 }
 0x6cd   :  { %3139 = vmatpush1.bf16.msra.mxu0 %v3984_v1  ;;  %3171 = vmatpush1.bf16.msra.mxu1 %v3988_v2 }
 0x6ce   :  { %3141 = vmatprep.subr.bf16.mxu0 %v3990_v6  ;;  %3173 = vmatprep.subr.bf16.mxu1 %v3993_v11 }
 0x6d1   :  { %3143 = vmatpush1.bf16.msra.mxu0 %v3996_v19  ;;  %3175 = vmatpush1.bf16.msra.mxu1 %v4000_v20 }
 0x6d2   :  { %3145 = vmatprep.subr.bf16.mxu0 %v4002_v24  ;;  %3177 = vmatprep.subr.bf16.mxu1 %v4005_v29 }
 0x6d5   :  { %3147 = vmatpush1.bf16.msra.mxu0 %v4008_v38  ;;  %3179 = vmatpush1.bf16.msra.mxu1 %v4012_v39 }
 0x6d6   :  { %3149 = vmatprep.subr.bf16.mxu0 %v4014_v42  ;;  %3181 = vmatprep.subr.bf16.mxu1 %v4017_v47 }
 0x6d9   :  { %3151 = vmatpush1.bf16.msra.mxu0 %v4020_v56  ;;  %3183 = vmatpush1.bf16.msra.mxu1 %v4024_v57 }
 0x6da   :  { %3153 = vmatprep.subr.bf16.mxu0 %v4026_v59  ;;  %3185 = vmatprep.subr.bf16.mxu1 %v4029_v62 }
 0x6dd   :  { %3155 = vmatpush1.bf16.msra.mxu0 %v4032_v7  ;;  %3187 = vmatpush1.bf16.msra.mxu1 %v4036_v8 }
 0x6de   :  { %3189 = vmatprep.subr.bf16.mxu0 %v3943_v17  ;;  %3221 = vmatprep.subr.bf16.mxu1 %v3947_v22 }
 0x793   :  { %v849_v43 = vpop.f32.mrb[6].mxu0  ;;  %v920_v46 = vpop.f32.mrb[6].mxu1 }
 0x794   :  { %v925_v51 = vadd.f32 %v849_v43, %v4102_v3  ;;  %v963_v50 = vadd.f32 %v2856_v35, %v920_v46  ;;  %v851_v52 = vpop.f32.mrb[7].mxu0  ;;  %v922_v48 = vpop.f32.mrb[7].mxu1 }
 0x795   :  { %v926_v60 = vadd.f32 %v851_v52, %v4098_v30  ;;  %v964_v14 = vadd.f32 %v2857_v37, %v922_v48 }
 0x796   :  { %3734 = vtanh.f32 %v925_v51 }
 0x797   :  { %3736 = vtanh.f32 %v963_v50 }
 0x798   :  { %3738 = vtanh.f32 %v926_v60 }
 0x799   :  { %3740 = vtanh.f32 %v964_v14 }
 0x7a0   :  { %v3735_v61 = vpop.eup %3734 }
 0x7a1   :  { %v3737_v0 = vpop.eup %3736  ;;  %v929_v13 = vmul.f32 0.5, %v3735_v61 }
 0x7a2   :  { %v3739_v9 = vpop.eup %3738  ;;  %v967_v16 = vmul.f32 0.5, %v3737_v0 }
 0x7a3   :  { %v3741_v15 = vpop.eup %3740  ;;  %v930_v28 = vmul.f32 0.5, %v3739_v9  ;;  %v931_v43 = vadd.f32 0.5, %v929_v13 }
 0x7a4   :  { %v968_v18 = vmul.f32 0.5, %v3741_v15  ;;  %v969_v46 = vadd.f32 0.5, %v967_v16 }
 0x7a5   :  { %v932_v34 = vadd.f32 0.5, %v930_v28  ;;  %v935_v13 = vmul.f32 %v931_v43, %v4242_v25  ;;  %v2858_v25 = vld [vmem:[%s4905_s0 + $0x50] sm:$0xff] }
 0x7a6   :  { %v970_v35 = vadd.f32 0.5, %v968_v18  ;;  %v973_v48 = vmul.f32 %v969_v46, %v4237_v63 }
 0x7a7   :  { %v934_v52 = vsel %vm52_vm0, %v3739_v9, %v932_v34  ;;  %v2859_v34 = vld [vmem:[%s4905_s0 + $0x58] sm:$0xff] }
 0x7a8   :  { %v972_v37 = vsel %vm52_vm0, %v3741_v15, %v970_v35  ;;  %v936_v51 = vmul.f32 %v934_v52, %v931_v43 }
 0x7a9   :  { %v974_v50 = vmul.f32 %v972_v37, %v969_v46 }
 0x7aa   :  { %938 = vrot.lane.b32.xlu0 %v936_v51, %s3863_s1 }
 0x7ab   :  { %976 = vrot.lane.b32.xlu1 %v974_v50, %s3863_s1 }
 0x81c   :  { %v939_v9 = vpop.permute.xlu0 %938 }
 0x81d   :  { %v977_v60 = vpop.permute.xlu1 %976  ;;  %v4303_v15 = vadd.f32 %v939_v9, %v935_v13 }
 0x81e   :  { %v4298_v14 = vadd.f32 %v977_v60, %v973_v48 }
 0x820   :  { %3742 = vtanh.f32 %v4298_v14 }
 0x821   :  { %3744 = vtanh.f32 %v4303_v15 }
 0x82a   :  { %v3743_v61 = vpop.eup %3742 }
 0x82b   :  { %v981_v0 = vmul.f32 %v3743_v61, %v972_v37  ;;  %v3745_v16 = vpop.eup %3744 }
 0x82c   :  { %v4306_v28 = vmul.f32 %v3745_v16, %v934_v52 }
 0x82d   :  { %983 = vrot.lane.b32.xlu1 %v981_v0, %s3863_s1 }
 0x82e   :  { %4928 = vst [vmem:[#allocation9_spill] sm:$0xff] %v4306_v28 }
 0x89f   :  { %v984_v63 = vpop.permute.xlu1 %983 }
 0x8a0   :  { %v986_v18 = vsel %vm80_vm1, %v984_v63, %v4306_v28 }
 0x8a1   :  { %1052 = vmatmul.mubr.f32.vlgmr.msra.gmra.mrb[8].mxu0 %v986_v18  ;;  %1123 = vmatmul.mubr.f32.vlgmr.msra.gmra.mrb[8].mxu1 %v986_v18 }
 0x8a2   :  { %3191 = vmatpush1.bf16.msra.mxu0 %v3949_v23  ;;  %3223 = vmatpush1.bf16.msra.mxu1 %v3952_v27 }
 0x8a3   :  { %3193 = vmatprep.subr.bf16.mxu0 %v3956_v31  ;;  %3225 = vmatprep.subr.bf16.mxu1 %v3958_v32 }
 0x8a4   :  { %1255 = vmatprep.mubr.f32.mxu0 %v4915_v21  ;;  %1326 = vmatprep.mubr.f32.mxu1 %v4915_v21 }
 0x8a6   :  { %3195 = vmatpush1.bf16.msra.mxu0 %v3961_v36  ;;  %3227 = vmatpush1.bf16.msra.mxu1 %v3965_v40 }
 0x8a7   :  { %3197 = vmatprep.subr.bf16.mxu0 %v3967_v41  ;;  %3229 = vmatprep.subr.bf16.mxu1 %v3969_v45 }
 0x8aa   :  { %3199 = vmatpush1.bf16.msra.mxu0 %v3972_v49  ;;  %3231 = vmatpush1.bf16.msra.mxu1 %v3976_v53 }
 0x8ab   :  { %3201 = vmatprep.subr.bf16.mxu0 %v3978_v54  ;;  %3233 = vmatprep.subr.bf16.mxu1 %v3981_v58 }
 0x8ae   :  { %3203 = vmatpush1.bf16.msra.mxu0 %v3984_v1  ;;  %3235 = vmatpush1.bf16.msra.mxu1 %v3988_v2 }
 0x8af   :  { %3205 = vmatprep.subr.bf16.mxu0 %v3990_v6  ;;  %3237 = vmatprep.subr.bf16.mxu1 %v3993_v11 }
 0x8b2   :  { %3207 = vmatpush1.bf16.msra.mxu0 %v3996_v19  ;;  %3239 = vmatpush1.bf16.msra.mxu1 %v4000_v20 }
 0x8b3   :  { %3209 = vmatprep.subr.bf16.mxu0 %v4002_v24  ;;  %3241 = vmatprep.subr.bf16.mxu1 %v4005_v29 }
 0x8b6   :  { %3211 = vmatpush1.bf16.msra.mxu0 %v4008_v38  ;;  %3243 = vmatpush1.bf16.msra.mxu1 %v4012_v39 }
 0x8b7   :  { %3213 = vmatprep.subr.bf16.mxu0 %v4014_v42  ;;  %3245 = vmatprep.subr.bf16.mxu1 %v4017_v47 }
 0x8ba   :  { %3215 = vmatpush1.bf16.msra.mxu0 %v4020_v56  ;;  %3247 = vmatpush1.bf16.msra.mxu1 %v4024_v57 }
 0x8bb   :  { %3217 = vmatprep.subr.bf16.mxu0 %v4026_v59  ;;  %3249 = vmatprep.subr.bf16.mxu1 %v4029_v62 }
 0x8be   :  { %3219 = vmatpush1.bf16.msra.mxu0 %v4032_v7  ;;  %3251 = vmatpush1.bf16.msra.mxu1 %v4036_v8 }
 0x8bf   :  { %3253 = vmatprep.subr.bf16.mxu0 %v3943_v17  ;;  %3285 = vmatprep.subr.bf16.mxu1 %v3947_v22 }
 0x974   :  { %v1053_v43 = vpop.f32.mrb[8].mxu0  ;;  %v1124_v35 = vpop.f32.mrb[8].mxu1 }
 0x975   :  { %v1129_v46 = vadd.f32 %v1053_v43, %v4102_v3  ;;  %v1167_v52 = vadd.f32 %v2858_v25, %v1124_v35  ;;  %v1055_v37 = vpop.f32.mrb[9].mxu0  ;;  %v1126_v51 = vpop.f32.mrb[9].mxu1 }
 0x976   :  { %v1130_v50 = vadd.f32 %v1055_v37, %v4098_v30  ;;  %v1168_v48 = vadd.f32 %v2859_v34, %v1126_v51 }
 0x977   :  { %3746 = vtanh.f32 %v1129_v46 }
 0x978   :  { %3748 = vtanh.f32 %v1167_v52 }
 0x979   :  { %3750 = vtanh.f32 %v1130_v50 }
 0x97a   :  { %3752 = vtanh.f32 %v1168_v48 }
 0x981   :  { %v3747_v60 = vpop.eup %3746 }
 0x982   :  { %v3749_v61 = vpop.eup %3748  ;;  %v1133_v9 = vmul.f32 0.5, %v3747_v60 }
 0x983   :  { %v3751_v0 = vpop.eup %3750  ;;  %v1171_v16 = vmul.f32 0.5, %v3749_v61 }
 0x984   :  { %v3753_v13 = vpop.eup %3752  ;;  %v1134_v63 = vmul.f32 0.5, %v3751_v0  ;;  %v1135_v43 = vadd.f32 0.5, %v1133_v9 }
 0x985   :  { %v1172_v18 = vmul.f32 0.5, %v3753_v13  ;;  %v1173_v35 = vadd.f32 0.5, %v1171_v16 }
 0x986   :  { %v1136_v12 = vadd.f32 0.5, %v1134_v63 }
 0x987   :  { %v1174_v25 = vadd.f32 0.5, %v1172_v18  ;;  %v1177_v51 = vmul.f32 %v1173_v35, %v4298_v14  ;;  %v2861_v18 = vld [vmem:[%s4905_s0 + $0x68] sm:$0xff] }
 0x988   :  { %v1138_v37 = vsel %vm52_vm0, %v3751_v0, %v1136_v12  ;;  %v1139_v0 = vmul.f32 %v1135_v43, %v4303_v15  ;;  %v2860_v15 = vld [vmem:[%s4905_s0 + $0x60] sm:$0xff] }
 0x989   :  { %v1176_v34 = vsel %vm52_vm0, %v3753_v13, %v1174_v25  ;;  %v1140_v46 = vmul.f32 %v1138_v37, %v1135_v43 }
 0x98a   :  { %v1178_v52 = vmul.f32 %v1176_v34, %v1173_v35 }
 0x98b   :  { %1142 = vrot.lane.b32.xlu1 %v1140_v46, %s3863_s1 }
 0x98c   :  { %1180 = vrot.lane.b32.xlu0 %v1178_v52, %s3863_s1 }
 0x9fd   :  { %v1143_v12 = vpop.permute.xlu1 %1142 }
 0x9fe   :  { %v1181_v50 = vpop.permute.xlu0 %1180  ;;  %v4364_v9 = vadd.f32 %v1143_v12, %v1139_v0 }
 0x9ff   :  { %v4359_v48 = vadd.f32 %v1181_v50, %v1177_v51 }
 0xa01   :  { %3754 = vtanh.f32 %v4359_v48 }
 0xa02   :  { %3756 = vtanh.f32 %v4364_v9 }
 0xa0b   :  { %v3755_v60 = vpop.eup %3754 }
 0xa0c   :  { %v1185_v61 = vmul.f32 %v3755_v60, %v1176_v34  ;;  %v3757_v13 = vpop.eup %3756 }
 0xa0d   :  { %v4367_v16 = vmul.f32 %v3757_v13, %v1138_v37 }
 0xa0e   :  { %1187 = vrot.lane.b32.xlu0 %v1185_v61, %s3863_s1 }
 0xa0f   :  { %4929 = vst [vmem:[#allocation10_spill] sm:$0xff] %v4367_v16 }
 0xa80   :  { %v1188_v14 = vpop.permute.xlu0 %1187 }
 0xa81   :  { %v1190_v63 = vsel %vm80_vm1, %v1188_v14, %v4367_v16 }
 0xa82   :  { %1256 = vmatmul.mubr.f32.vlgmr.msra.gmra.mrb[10].mxu0 %v1190_v63  ;;  %1327 = vmatmul.mubr.f32.vlgmr.msra.gmra.mrb[10].mxu1 %v1190_v63 }
 0xa83   :  { %3255 = vmatpush1.bf16.msra.mxu0 %v3949_v23  ;;  %3287 = vmatpush1.bf16.msra.mxu1 %v3952_v27 }
 0xa84   :  { %3257 = vmatprep.subr.bf16.mxu0 %v3956_v31  ;;  %3289 = vmatprep.subr.bf16.mxu1 %v3958_v32 }
 0xa85   :  { %1459 = vmatprep.mubr.f32.mxu0 %v4915_v21  ;;  %1530 = vmatprep.mubr.f32.mxu1 %v4915_v21 }
 0xa87   :  { %3259 = vmatpush1.bf16.msra.mxu0 %v3961_v36  ;;  %3291 = vmatpush1.bf16.msra.mxu1 %v3965_v40 }
 0xa88   :  { %3261 = vmatprep.subr.bf16.mxu0 %v3967_v41  ;;  %3293 = vmatprep.subr.bf16.mxu1 %v3969_v45 }
 0xa8b   :  { %3263 = vmatpush1.bf16.msra.mxu0 %v3972_v49  ;;  %3295 = vmatpush1.bf16.msra.mxu1 %v3976_v53 }
 0xa8c   :  { %3265 = vmatprep.subr.bf16.mxu0 %v3978_v54  ;;  %3297 = vmatprep.subr.bf16.mxu1 %v3981_v58 }
 0xa8f   :  { %3267 = vmatpush1.bf16.msra.mxu0 %v3984_v1  ;;  %3299 = vmatpush1.bf16.msra.mxu1 %v3988_v2 }
 0xa90   :  { %3269 = vmatprep.subr.bf16.mxu0 %v3990_v6  ;;  %3301 = vmatprep.subr.bf16.mxu1 %v3993_v11 }
 0xa93   :  { %3271 = vmatpush1.bf16.msra.mxu0 %v3996_v19  ;;  %3303 = vmatpush1.bf16.msra.mxu1 %v4000_v20 }
 0xa94   :  { %3273 = vmatprep.subr.bf16.mxu0 %v4002_v24  ;;  %3305 = vmatprep.subr.bf16.mxu1 %v4005_v29 }
 0xa97   :  { %3275 = vmatpush1.bf16.msra.mxu0 %v4008_v38  ;;  %3307 = vmatpush1.bf16.msra.mxu1 %v4012_v39 }
 0xa98   :  { %3277 = vmatprep.subr.bf16.mxu0 %v4014_v42  ;;  %3309 = vmatprep.subr.bf16.mxu1 %v4017_v47 }
 0xa9b   :  { %3279 = vmatpush1.bf16.msra.mxu0 %v4020_v56  ;;  %3311 = vmatpush1.bf16.msra.mxu1 %v4024_v57 }
 0xa9c   :  { %3281 = vmatprep.subr.bf16.mxu0 %v4026_v59  ;;  %3313 = vmatprep.subr.bf16.mxu1 %v4029_v62 }
 0xa9f   :  { %3283 = vmatpush1.bf16.msra.mxu0 %v4032_v7  ;;  %3315 = vmatpush1.bf16.msra.mxu1 %v4036_v8 }
 0xaa0   :  { %3317 = vmatprep.subr.bf16.mxu0 %v3943_v17  ;;  %3349 = vmatprep.subr.bf16.mxu1 %v3947_v22 }
 0xb55   :  { %v1257_v43 = vpop.f32.mrb[10].mxu0  ;;  %v1328_v25 = vpop.f32.mrb[10].mxu1 }
 0xb56   :  { %v1333_v35 = vadd.f32 %v1257_v43, %v4102_v3  ;;  %v1371_v37 = vadd.f32 %v2860_v15, %v1328_v25  ;;  %v1259_v34 = vpop.f32.mrb[11].mxu0  ;;  %v1330_v46 = vpop.f32.mrb[11].mxu1 }
 0xb57   :  { %v1334_v52 = vadd.f32 %v1259_v34, %v4098_v30  ;;  %v1372_v51 = vadd.f32 %v2861_v18, %v1330_v46 }
 0xb58   :  { %3758 = vtanh.f32 %v1333_v35 }
 0xb59   :  { %3760 = vtanh.f32 %v1371_v37 }
 0xb5a   :  { %3762 = vtanh.f32 %v1334_v52 }
 0xb5b   :  { %3764 = vtanh.f32 %v1372_v51 }
 0xb62   :  { %v3759_v50 = vpop.eup %3758 }
 0xb63   :  { %v3761_v60 = vpop.eup %3760  ;;  %v1337_v12 = vmul.f32 0.5, %v3759_v50 }
 0xb64   :  { %v3763_v61 = vpop.eup %3762  ;;  %v1375_v13 = vmul.f32 0.5, %v3761_v60 }
 0xb65   :  { %v3765_v0 = vpop.eup %3764  ;;  %v1338_v14 = vmul.f32 0.5, %v3763_v61  ;;  %v1339_v43 = vadd.f32 0.5, %v1337_v12 }
 0xb66   :  { %v1376_v63 = vmul.f32 0.5, %v3765_v0  ;;  %v1377_v25 = vadd.f32 0.5, %v1375_v13 }
 0xb67   :  { %v1340_v26 = vadd.f32 0.5, %v1338_v14 }
 0xb68   :  { %v1378_v15 = vadd.f32 0.5, %v1376_v63  ;;  %v1381_v46 = vmul.f32 %v1377_v25, %v4359_v48  ;;  %v2863_v63 = vld [vmem:[%s4905_s0 + $0x78] sm:$0xff] }
 0xb69   :  { %v1342_v34 = vsel %vm52_vm0, %v3763_v61, %v1340_v26  ;;  %v1343_v61 = vmul.f32 %v1339_v43, %v4364_v9  ;;  %v2862_v9 = vld [vmem:[%s4905_s0 + $0x70] sm:$0xff] }
 0xb6a   :  { %v1380_v18 = vsel %vm52_vm0, %v3765_v0, %v1378_v15  ;;  %v1344_v35 = vmul.f32 %v1342_v34, %v1339_v43 }
 0xb6b   :  { %v1382_v37 = vmul.f32 %v1380_v18, %v1377_v25 }
 0xb6c   :  { %1346 = vrot.lane.b32.xlu0 %v1344_v35, %s3863_s1 }
 0xb6d   :  { %1384 = vrot.lane.b32.xlu1 %v1382_v37, %s3863_s1 }
 0xbde   :  { %v1347_v26 = vpop.permute.xlu0 %1346 }
 0xbdf   :  { %v1385_v52 = vpop.permute.xlu1 %1384  ;;  %v4425_v12 = vadd.f32 %v1347_v26, %v1343_v61 }
 0xbe0   :  { %v4420_v51 = vadd.f32 %v1385_v52, %v1381_v46 }
 0xbe2   :  { %3766 = vtanh.f32 %v4420_v51 }
 0xbe3   :  { %3768 = vtanh.f32 %v4425_v12 }
 0xbec   :  { %v3767_v50 = vpop.eup %3766 }
 0xbed   :  { %v1389_v60 = vmul.f32 %v3767_v50, %v1380_v18  ;;  %v3769_v0 = vpop.eup %3768 }
 0xbee   :  { %v4428_v13 = vmul.f32 %v3769_v0, %v1342_v34 }
 0xbef   :  { %1391 = vrot.lane.b32.xlu1 %v1389_v60, %s3863_s1 }
 0xbf0   :  { %4930 = vst [vmem:[#allocation11_spill] sm:$0xff] %v4428_v13 }
 0xc61   :  { %v1392_v48 = vpop.permute.xlu1 %1391 }
 0xc62   :  { %v1394_v14 = vsel %vm80_vm1, %v1392_v48, %v4428_v13 }
 0xc63   :  { %1460 = vmatmul.mubr.f32.vlgmr.msra.gmra.mrb[12].mxu0 %v1394_v14  ;;  %1531 = vmatmul.mubr.f32.vlgmr.msra.gmra.mrb[12].mxu1 %v1394_v14 }
 0xc64   :  { %3319 = vmatpush1.bf16.msra.mxu0 %v3949_v23  ;;  %3351 = vmatpush1.bf16.msra.mxu1 %v3952_v27 }
 0xc65   :  { %3321 = vmatprep.subr.bf16.mxu0 %v3956_v31  ;;  %3353 = vmatprep.subr.bf16.mxu1 %v3958_v32 }
 0xc66   :  { %1663 = vmatprep.mubr.f32.mxu0 %v4915_v21  ;;  %1734 = vmatprep.mubr.f32.mxu1 %v4915_v21 }
 0xc68   :  { %3323 = vmatpush1.bf16.msra.mxu0 %v3961_v36  ;;  %3355 = vmatpush1.bf16.msra.mxu1 %v3965_v40 }
 0xc69   :  { %3325 = vmatprep.subr.bf16.mxu0 %v3967_v41  ;;  %3357 = vmatprep.subr.bf16.mxu1 %v3969_v45 }
 0xc6c   :  { %3327 = vmatpush1.bf16.msra.mxu0 %v3972_v49  ;;  %3359 = vmatpush1.bf16.msra.mxu1 %v3976_v53 }
 0xc6d   :  { %3329 = vmatprep.subr.bf16.mxu0 %v3978_v54  ;;  %3361 = vmatprep.subr.bf16.mxu1 %v3981_v58 }
 0xc70   :  { %3331 = vmatpush1.bf16.msra.mxu0 %v3984_v1  ;;  %3363 = vmatpush1.bf16.msra.mxu1 %v3988_v2 }
 0xc71   :  { %3333 = vmatprep.subr.bf16.mxu0 %v3990_v6  ;;  %3365 = vmatprep.subr.bf16.mxu1 %v3993_v11 }
 0xc74   :  { %3335 = vmatpush1.bf16.msra.mxu0 %v3996_v19  ;;  %3367 = vmatpush1.bf16.msra.mxu1 %v4000_v20 }
 0xc75   :  { %3337 = vmatprep.subr.bf16.mxu0 %v4002_v24  ;;  %3369 = vmatprep.subr.bf16.mxu1 %v4005_v29 }
 0xc78   :  { %3339 = vmatpush1.bf16.msra.mxu0 %v4008_v38  ;;  %3371 = vmatpush1.bf16.msra.mxu1 %v4012_v39 }
 0xc79   :  { %3341 = vmatprep.subr.bf16.mxu0 %v4014_v42  ;;  %3373 = vmatprep.subr.bf16.mxu1 %v4017_v47 }
 0xc7c   :  { %3343 = vmatpush1.bf16.msra.mxu0 %v4020_v56  ;;  %3375 = vmatpush1.bf16.msra.mxu1 %v4024_v57 }
 0xc7d   :  { %3345 = vmatprep.subr.bf16.mxu0 %v4026_v59  ;;  %3377 = vmatprep.subr.bf16.mxu1 %v4029_v62 }
 0xc80   :  { %3347 = vmatpush1.bf16.msra.mxu0 %v4032_v7  ;;  %3379 = vmatpush1.bf16.msra.mxu1 %v4036_v8 }
 0xc81   :  { %3397 = vmatprep.subr.bf16.mxu0 %v3943_v17 }
 0xd36   :  { %v1461_v43 = vpop.f32.mrb[12].mxu0  ;;  %v1532_v15 = vpop.f32.mrb[12].mxu1 }
 0xd37   :  { %v1537_v25 = vadd.f32 %v1461_v43, %v4102_v3  ;;  %v1575_v34 = vadd.f32 %v2862_v9, %v1532_v15  ;;  %v1463_v18 = vpop.f32.mrb[13].mxu0  ;;  %v1534_v35 = vpop.f32.mrb[13].mxu1 }
 0xd38   :  { %v1538_v37 = vadd.f32 %v1463_v18, %v4098_v30  ;;  %v1576_v46 = vadd.f32 %v2863_v63, %v1534_v35 }
 0xd39   :  { %3770 = vtanh.f32 %v1537_v25 }
 0xd3a   :  { %3772 = vtanh.f32 %v1575_v34 }
 0xd3b   :  { %3774 = vtanh.f32 %v1538_v37 }
 0xd3c   :  { %3776 = vtanh.f32 %v1576_v46 }
 0xd43   :  { %v3771_v52 = vpop.eup %3770 }
 0xd44   :  { %v3773_v50 = vpop.eup %3772  ;;  %v1541_v26 = vmul.f32 0.5, %v3771_v52 }
 0xd45   :  { %v3775_v60 = vpop.eup %3774  ;;  %v1579_v0 = vmul.f32 0.5, %v3773_v50 }
 0xd46   :  { %v3777_v61 = vpop.eup %3776  ;;  %v1542_v48 = vmul.f32 0.5, %v3775_v60  ;;  %v1543_v43 = vadd.f32 0.5, %v1541_v26 }
 0xd47   :  { %v1580_v14 = vmul.f32 0.5, %v3777_v61  ;;  %v1581_v15 = vadd.f32 0.5, %v1579_v0 }
 0xd48   :  { %v1544_v21 = vadd.f32 0.5, %v1542_v48 }
 0xd49   :  { %v1582_v9 = vadd.f32 0.5, %v1580_v14  ;;  %v1585_v35 = vmul.f32 %v1581_v15, %v4420_v51  ;;  %v4932_v14 = vmov 0.0  }
 0xd4a   :  { %v1546_v18 = vsel %vm52_vm0, %v3775_v60, %v1544_v21  ;;  %v1547_v60 = vmul.f32 %v1543_v43, %v4425_v12 }
 0xd4b   :  { %v1584_v63 = vsel %vm52_vm0, %v3777_v61, %v1582_v9  ;;  %v1548_v25 = vmul.f32 %v1546_v18, %v1543_v43 }
 0xd4c   :  { %v1586_v34 = vmul.f32 %v1584_v63, %v1581_v15 }
 0xd4d   :  { %1550 = vrot.lane.b32.xlu1 %v1548_v25, %s3863_s1 }
 0xd4e   :  { %1588 = vrot.lane.b32.xlu0 %v1586_v34, %s3863_s1 }
 0xdbf   :  { %v1551_v21 = vpop.permute.xlu1 %1550 }
 0xdc0   :  { %v1589_v37 = vpop.permute.xlu0 %1588  ;;  %v4485_v26 = vadd.f32 %v1551_v21, %v1547_v60  ;;  %v1777_v21 = vld [vmem:[%s4908_s3 + $0x8] sm:$0xff]  ;;  %v1779_v60 = vld [vmem:[%s4908_s3 + $0x18] sm:$0xff] }
 0xdc1   :  { %v4480_v46 = vadd.f32 %v1589_v37, %v1585_v35 }
 0xdc3   :  { %3778 = vtanh.f32 %v4480_v46 }
 0xdc4   :  { %3780 = vtanh.f32 %v4485_v26 }
 0xdcd   :  { %v3779_v52 = vpop.eup %3778 }
 0xdce   :  { %v1593_v50 = vmul.f32 %v3779_v52, %v1584_v63  ;;  %v3781_v61 = vpop.eup %3780 }
 0xdcf   :  { %v4488_v0 = vmul.f32 %v3781_v61, %v1546_v18  ;;  %v1776_v61 = vld [vmem:[%s4908_s3] sm:$0xff] }
 0xdd0   :  { %1595 = vrot.lane.b32.xlu0 %v1593_v50, %s3863_s1 }
 0xdd1   :  { %4931 = vst [vmem:[#allocation12_spill] sm:$0xff] %v4488_v0 }
 0xe42   :  { %v1596_v51 = vpop.permute.xlu0 %1595 }
 0xe43   :  { %v1598_v48 = vsel %vm80_vm1, %v1596_v51, %v4488_v0  ;;  %v4524_v51 = vpack.c.bf16 %v1779_v60, %v1777_v21  ;;  %v1784_v21 = vld [vmem:[%s4908_s3 + $0x40] sm:$0xff]  ;;  %v1786_v60 = vld [vmem:[%s4908_s3 + $0x50] sm:$0xff] }
 0xe44   :  { %1664 = vmatmul.mubr.f32.vlgmr.msra.gmra.mrb[14].mxu0 %v1598_v48  ;;  %1735 = vmatmul.mubr.f32.vlgmr.msra.gmra.mrb[14].mxu1 %v1598_v48  ;;  %v1778_v48 = vld [vmem:[%s4908_s3 + $0x10] sm:$0xff] }
 0xe45   :  { %1872 = vmatprep.mubr.f32.mxu1 %v4932_v14  ;;  %3399 = vmatpush1.bf16.msra.mxu0 %v3949_v23 }
 0xe46   :  { %3401 = vmatprep.subr.bf16.mxu0 %v3956_v31  ;;  %1967 = vmatprep.mubr.f32.mxu0 %v4932_v14 }
 0xe47   :  { %3381 = vmatprep.subr.bf16.mxu1 %v4524_v51 }
 0xe49   :  { %3403 = vmatpush1.bf16.msra.mxu0 %v3961_v36 }
 0xe4a   :  { %3405 = vmatprep.subr.bf16.mxu0 %v3967_v41 }
 0xe4d   :  { %3407 = vmatpush1.bf16.msra.mxu0 %v3972_v49 }
 0xe4e   :  { %3409 = vmatprep.subr.bf16.mxu0 %v3978_v54 }
 0xe51   :  { %3411 = vmatpush1.bf16.msra.mxu0 %v3984_v1 }
 0xe52   :  { %3413 = vmatprep.subr.bf16.mxu0 %v3990_v6 }
 0xe55   :  { %3415 = vmatpush1.bf16.msra.mxu0 %v3996_v19 }
 0xe56   :  { %3417 = vmatprep.subr.bf16.mxu0 %v4002_v24 }
 0xe59   :  { %3419 = vmatpush1.bf16.msra.mxu0 %v4008_v38 }
 0xe5a   :  { %3421 = vmatprep.subr.bf16.mxu0 %v4014_v42 }
 0xe5d   :  { %3423 = vmatpush1.bf16.msra.mxu0 %v4020_v56 }
 0xe5e   :  { %3425 = vmatprep.subr.bf16.mxu0 %v4026_v59 }
 0xe61   :  { %3427 = vmatpush1.bf16.msra.mxu0 %v4032_v7 }
 0xe62   :  { %3477 = vmatprep.subr.bf16.mxu0 %v3943_v17 }
 0xf17   :  { %v1665_v12 = vpop.f32.mrb[14].mxu0 }
 0xf18   :  { %v1741_v43 = vadd.f32 %v1665_v12, %v4102_v3  ;;  %v1667_v9 = vpop.f32.mrb[15].mxu0  ;;  %v1781_v12 = vld [vmem:[%s4908_s3 + $0x28] sm:$0xff] }
 0xf19   :  { %v1742_v15 = vadd.f32 %v1667_v9, %v4098_v30  ;;  %v4535_v9 = vpack.c.bf16 %v1778_v48, %v1776_v61  ;;  %v1789_v61 = vld [vmem:[%s4908_s3 + $0x68] sm:$0xff]  ;;  %v1791_v48 = vld [vmem:[%s4908_s3 + $0x78] sm:$0xff] }
 0xf1a   :  { %3782 = vtanh.f32 %v1741_v43  ;;  %v1783_v43 = vld [vmem:[%s4908_s3 + $0x38] sm:$0xff] }
 0xf1b   :  { %3784 = vtanh.f32 %v1742_v15  ;;  %v4537_v15 = vpack.c.bf16 %v1783_v43, %v1781_v12  ;;  %3383 = vmatpush1.bf16.msra.mxu1 %v4535_v9  ;;  %v4571_v12 = vpack.c.bf16 %v1786_v60, %v1784_v21  ;;  %v4574_v43 = vpack.c.bf16 %v1791_v48, %v1789_v61 }
 0xf1d   :  { %3385 = vmatprep.subr.bf16.mxu1 %v4537_v15 }
 0xf24   :  { %v3783_v18 = vpop.eup %3782 }
 0xf25   :  { %v3785_v63 = vpop.eup %3784  ;;  %v1745_v25 = vmul.f32 0.5, %v3783_v18  ;;  %v1780_v18 = vld [vmem:[%s4908_s3 + $0x20] sm:$0xff] }
 0xf26   :  { %v1746_v34 = vmul.f32 0.5, %v3785_v63 }
 0xf27   :  { %v1747_v37 = vadd.f32 0.5, %v1745_v25  ;;  %v1785_v25 = vld [vmem:[%s4908_s3 + $0x48] sm:$0xff] }
 0xf28   :  { %v1748_v35 = vadd.f32 0.5, %v1746_v34  ;;  %v1787_v34 = vld [vmem:[%s4908_s3 + $0x58] sm:$0xff] }
 0xf2a   :  { %v1750_v52 = vsel %vm52_vm0, %v3785_v63, %v1748_v35  ;;  %v1782_v63 = vld [vmem:[%s4908_s3 + $0x30] sm:$0xff] }
 0xf2b   :  { %v1752_v50 = vmul.f32 %v1750_v52, %v1747_v37  ;;  %v4553_v35 = vpack.c.bf16 %v1782_v63, %v1780_v18  ;;  %v1788_v18 = vld [vmem:[%s4908_s3 + $0x60] sm:$0xff]  ;;  %v1790_v63 = vld [vmem:[%s4908_s3 + $0x70] sm:$0xff] }
 0xf2d   :  { %1754 = vrot.lane.b32.xlu1 %v1752_v50, %s3863_s1  ;;  %v4556_v50 = vpack.c.bf16 %v1787_v34, %v1785_v25  ;;  %3387 = vmatpush1.bf16.msra.mxu1 %v4553_v35  ;;  %v4583_v25 = vpack.c.bf16 %v1790_v63, %v1788_v18  ;;  %v1751_v34 = vmul.f32 %v1747_v37, %v4485_v26  ;;  %v43_v26 = vld [vmem:[%s4909_s4] sm:$0x3]  ;;  %v4933_v37 = vsub.s32 0, %v4086_v10 }
 0xf2e   :  { %v4934_v63 = vsub.s32 1, %v4086_v10 }
 0xf2f   :  { %3389 = vmatprep.subr.bf16.mxu1 %v4556_v50 }
 0xf31   :  { %3391 = vmatpush1.bf16.msra.mxu1 %v4571_v12 }
 0xf32   :  { %3393 = vmatprep.subr.bf16.mxu1 %v4574_v43 }
 0xf35   :  { %3395 = vmatpush1.bf16.msra.mxu1 %v4583_v25 }
 0xf36   :  { %3429 = vmatprep.subr.bf16.mxu1 %v3947_v22 }
 0xf9f   :  { %v1755_v21 = vpop.permute.xlu1 %1754 }
 0xfa0   :  { %v4589_v60 = vadd.f32 %v1755_v21, %v1751_v34  ;;  %v4623_v34 = vrot.slane %v43_v26, %v4934_v63 }
 0xfa2   :  { %3786 = vtanh.f32 %v4589_v60 }
 0xfac   :  { %v3787_v61 = vpop.eup %3786 }
 0xfad   :  { %v4592_v48 = vmul.f32 %v3787_v61, %v1750_v52  ;;  %v4619_v52 = vrot.slane %v43_v26, %v4933_v37 }
 0xfaf   :  { %1804 = vrot.lane.b32.xlu0 %v4592_v48, %s3863_s1 }
0x1021   :  { %v1805_v18 = vpop.permute.xlu0 %1804 }
0x1022   :  { %2864 = vmatmul.mubr.msk.f32.vlgmr.msra.gmra.mrb[14].mxu1 %vm80_vm1, %v1805_v18 }
0x1023   :  { %3431 = vmatpush1.bf16.msra.mxu1 %v3952_v27  ;;  %2038 = vmatprep.mubr.f32.mxu1 %v4932_v14 }
0x1024   :  { %3433 = vmatprep.subr.bf16.mxu1 %v3958_v32 }
0x1027   :  { %3435 = vmatpush1.bf16.msra.mxu1 %v3965_v40 }
0x1028   :  { %3437 = vmatprep.subr.bf16.mxu1 %v3969_v45 }
0x102b   :  { %3439 = vmatpush1.bf16.msra.mxu1 %v3976_v53 }
0x102c   :  { %3441 = vmatprep.subr.bf16.mxu1 %v3981_v58 }
0x102f   :  { %3443 = vmatpush1.bf16.msra.mxu1 %v3988_v2 }
0x1030   :  { %3445 = vmatprep.subr.bf16.mxu1 %v3993_v11 }
0x1033   :  { %3447 = vmatpush1.bf16.msra.mxu1 %v4000_v20 }
0x1034   :  { %3449 = vmatprep.subr.bf16.mxu1 %v4005_v29 }
0x1037   :  { %3451 = vmatpush1.bf16.msra.mxu1 %v4012_v39 }
0x1038   :  { %3453 = vmatprep.subr.bf16.mxu1 %v4017_v47 }
0x103b   :  { %3455 = vmatpush1.bf16.msra.mxu1 %v4024_v57 }
0x103c   :  { %3457 = vmatprep.subr.bf16.mxu1 %v4029_v62 }
0x103f   :  { %3459 = vmatpush1.bf16.msra.mxu1 %v4036_v8 }
0x1040   :  { %3461 = vmatprep.subr.bf16.mxu1 %v4524_v51 }
0x10f5   :  { %v1874_v21 = vpop.f32.mrb[14].mxu1 }
0x10f6   :  { %v1875_v61 = vadd.f32 %v1874_v21, %v4619_v52  ;;  %v1876_v18 = vpop.f32.mrb[15].mxu1 }
0x10f7   :  { %v1877_v4 = vadd.f32 %v1876_v18, %v4623_v34 }
0x10f8   :  { %3788 = vtanh.f32 %v1875_v61 }
0x10f9   :  { %3790 = vtanh.f32 %v1877_v4 }
0x1102   :  { %v3789_v0 = vpop.eup %3788 }
0x1103   :  { %v3791_v13 = vpop.eup %3790  ;;  %v1883_v16 = vmul.f32 0.5, %v3789_v0 }
0x1104   :  { %v1884_v28 = vmul.f32 0.5, %v3791_v13 }
0x1105   :  { %v1885_v44 = vadd.f32 0.5, %v1883_v16 }
0x1106   :  { %v1886_v33 = vadd.f32 0.5, %v1884_v28 }
0x1107   :  { %v1889_v26 = vmul.f32 %v1885_v44, %v4480_v46 }
0x1108   :  { %v1888_v37 = vsel %vm52_vm0, %v3791_v13, %v1886_v33 }
0x1109   :  { %v1890_v10 = vmul.f32 %v1888_v37, %v1885_v44 }
0x110b   :  { %1892 = vrot.lane.b32.xlu1 %v1890_v10, %s3863_s1 }
0x117d   :  { %v1893_v63 = vpop.permute.xlu1 %1892 }
0x117e   :  { %v4631_v21 = vadd.f32 %v1893_v63, %v1889_v26 }
0x1180   :  { %3792 = vtanh.f32 %v4631_v21 }
0x118a   :  { %v3793_v4 = vpop.eup %3792 }
0x118b   :  { %v1897_v61 = vmul.f32 %v3793_v4, %v1888_v37 }
0x118d   :  { %1899 = vrot.lane.b32.xlu0 %v1897_v61, %s3863_s1 }
0x11ff   :  { %v1900_v0 = vpop.permute.xlu0 %1899 }
0x1200   :  { %v1902_v28 = vsel %vm80_vm1, %v1900_v0, %v4592_v48 }
0x1201   :  { %1968 = vmatmul.mubr.f32.vlgmr.msra.gmra.mrb[16].mxu0 %v1902_v28  ;;  %2039 = vmatmul.mubr.f32.vlgmr.msra.gmra.mrb[16].mxu1 %v1902_v28 }
0x1202   :  { %3463 = vmatpush1.bf16.msra.mxu1 %v4535_v9  ;;  %2149 = vmatprep.mubr.f32.mxu1 %v4932_v14 }
0x1203   :  { %3465 = vmatprep.subr.bf16.mxu1 %v4537_v15  ;;  %3479 = vmatpush1.bf16.msra.mxu0 %v3949_v23 }
0x1204   :  { %3481 = vmatprep.subr.bf16.mxu0 %v3956_v31  ;;  %2244 = vmatprep.mubr.f32.mxu0 %v4932_v14 }
0x1206   :  { %3467 = vmatpush1.bf16.msra.mxu1 %v4553_v35 }
0x1207   :  { %3469 = vmatprep.subr.bf16.mxu1 %v4556_v50  ;;  %3483 = vmatpush1.bf16.msra.mxu0 %v3961_v36 }
0x1208   :  { %3485 = vmatprep.subr.bf16.mxu0 %v3967_v41 }
0x120a   :  { %3471 = vmatpush1.bf16.msra.mxu1 %v4571_v12 }
0x120b   :  { %3473 = vmatprep.subr.bf16.mxu1 %v4574_v43  ;;  %3487 = vmatpush1.bf16.msra.mxu0 %v3972_v49 }
0x120c   :  { %3489 = vmatprep.subr.bf16.mxu0 %v3978_v54 }
0x120e   :  { %3475 = vmatpush1.bf16.msra.mxu1 %v4583_v25 }
0x120f   :  { %3491 = vmatpush1.bf16.msra.mxu0 %v3984_v1  ;;  %3557 = vmatprep.subr.bf16.mxu1 %v3943_v17 }
0x1210   :  { %3493 = vmatprep.subr.bf16.mxu0 %v3990_v6 }
0x1213   :  { %3495 = vmatpush1.bf16.msra.mxu0 %v3996_v19 }
0x1214   :  { %3497 = vmatprep.subr.bf16.mxu0 %v4002_v24 }
0x1217   :  { %3499 = vmatpush1.bf16.msra.mxu0 %v4008_v38 }
0x1218   :  { %3501 = vmatprep.subr.bf16.mxu0 %v4014_v42 }
0x121b   :  { %3503 = vmatpush1.bf16.msra.mxu0 %v4020_v56 }
0x121c   :  { %3505 = vmatprep.subr.bf16.mxu0 %v4026_v59 }
0x121f   :  { %3507 = vmatpush1.bf16.msra.mxu0 %v4032_v7 }
0x1220   :  { %3509 = vmatprep.subr.bf16.mxu0 %v3947_v22 }
0x12d4   :  { %v1969_v44 = vpop.f32.mrb[16].mxu0 }
0x12d5   :  { %v2045_v33 = vadd.f32 %v1969_v44, %v4102_v3  ;;  %v1971_v16 = vpop.f32.mrb[17].mxu0 }
0x12d6   :  { %v2046_v13 = vadd.f32 %v1971_v16, %v4098_v30 }
0x12d7   :  { %3794 = vtanh.f32 %v2045_v33 }
0x12d8   :  { %3796 = vtanh.f32 %v2046_v13 }
0x12e1   :  { %v3795_v46 = vpop.eup %3794 }
0x12e2   :  { %v3797_v18 = vpop.eup %3796  ;;  %v2049_v37 = vmul.f32 0.5, %v3795_v46 }
0x12e3   :  { %v2050_v10 = vmul.f32 0.5, %v3797_v18 }
0x12e4   :  { %v2051_v63 = vadd.f32 0.5, %v2049_v37 }
0x12e5   :  { %v2052_v26 = vadd.f32 0.5, %v2050_v10 }
0x12e6   :  { %v2055_v0 = vmul.f32 %v2051_v63, %v4589_v60 }
0x12e7   :  { %v2054_v4 = vsel %vm52_vm0, %v3797_v18, %v2052_v26 }
0x12e8   :  { %v2056_v61 = vmul.f32 %v2054_v4, %v2051_v63 }
0x12ea   :  { %2058 = vrot.lane.b32.xlu1 %v2056_v61, %s3863_s1 }
0x135c   :  { %v2059_v28 = vpop.permute.xlu1 %2058 }
0x135d   :  { %v4669_v44 = vadd.f32 %v2059_v28, %v2055_v0 }
0x135f   :  { %3798 = vtanh.f32 %v4669_v44 }
0x1369   :  { %v3799_v33 = vpop.eup %3798 }
0x136a   :  { %v4672_v16 = vmul.f32 %v3799_v33, %v2054_v4 }
0x136c   :  { %2081 = vrot.lane.b32.xlu0 %v4672_v16, %s3863_s1 }
0x13de   :  { %v2082_v13 = vpop.permute.xlu0 %2081 }
0x13df   :  { %2865 = vmatmul.mubr.msk.f32.vlgmr.msra.gmra.mrb[16].mxu1 %vm80_vm1, %v2082_v13 }
0x13e0   :  { %3559 = vmatpush1.bf16.msra.mxu1 %v3949_v23  ;;  %2521 = vmatprep.mubr.f32.mxu1 %v4932_v14 }
0x13e1   :  { %3561 = vmatprep.subr.bf16.mxu1 %v3956_v31 }
0x13e4   :  { %3563 = vmatpush1.bf16.msra.mxu1 %v3961_v36 }
0x13e5   :  { %3565 = vmatprep.subr.bf16.mxu1 %v3967_v41 }
0x13e8   :  { %3567 = vmatpush1.bf16.msra.mxu1 %v3972_v49 }
0x13e9   :  { %3569 = vmatprep.subr.bf16.mxu1 %v3978_v54 }
0x13ec   :  { %3571 = vmatpush1.bf16.msra.mxu1 %v3984_v1 }
0x13ed   :  { %3573 = vmatprep.subr.bf16.mxu1 %v3990_v6 }
0x13f0   :  { %3575 = vmatpush1.bf16.msra.mxu1 %v3996_v19 }
0x13f1   :  { %3577 = vmatprep.subr.bf16.mxu1 %v4002_v24 }
0x13f4   :  { %3579 = vmatpush1.bf16.msra.mxu1 %v4008_v38 }
0x13f5   :  { %3581 = vmatprep.subr.bf16.mxu1 %v4014_v42 }
0x13f8   :  { %3583 = vmatpush1.bf16.msra.mxu1 %v4020_v56 }
0x13f9   :  { %3585 = vmatprep.subr.bf16.mxu1 %v4026_v59 }
0x13fc   :  { %3587 = vmatpush1.bf16.msra.mxu1 %v4032_v7 }
0x13fd   :  { %3589 = vmatprep.subr.bf16.mxu1 %v3947_v22 }
0x14b2   :  { %v2151_v60 = vpop.f32.mrb[16].mxu1 }
0x14b3   :  { %v2152_v46 = vadd.f32 %v2151_v60, %v4619_v52  ;;  %v2153_v18 = vpop.f32.mrb[17].mxu1 }
0x14b4   :  { %v2154_v37 = vadd.f32 %v2153_v18, %v4623_v34 }
0x14b5   :  { %3800 = vtanh.f32 %v2152_v46 }
0x14b6   :  { %3802 = vtanh.f32 %v2154_v37 }
0x14bf   :  { %v3801_v10 = vpop.eup %3800 }
0x14c0   :  { %v3803_v26 = vpop.eup %3802  ;;  %v2160_v63 = vmul.f32 0.5, %v3801_v10 }
0x14c1   :  { %v2161_v4 = vmul.f32 0.5, %v3803_v26 }
0x14c2   :  { %v2162_v0 = vadd.f32 0.5, %v2160_v63 }
0x14c3   :  { %v2163_v61 = vadd.f32 0.5, %v2161_v4 }
0x14c4   :  { %v2166_v22 = vmul.f32 %v2162_v0, %v4631_v21 }
0x14c5   :  { %v2165_v28 = vsel %vm52_vm0, %v3803_v26, %v2163_v61 }
0x14c6   :  { %v2167_v33 = vmul.f32 %v2165_v28, %v2162_v0 }
0x14c8   :  { %2169 = vrot.lane.b32.xlu1 %v2167_v33, %s3863_s1 }
0x153a   :  { %v2170_v13 = vpop.permute.xlu1 %2169 }
0x153b   :  { %v4700_v60 = vadd.f32 %v2170_v13, %v2166_v22 }
0x153d   :  { %3804 = vtanh.f32 %v4700_v60 }
0x1547   :  { %v3805_v46 = vpop.eup %3804 }
0x1548   :  { %v2174_v18 = vmul.f32 %v3805_v46, %v2165_v28 }
0x154a   :  { %2176 = vrot.lane.b32.xlu0 %v2174_v18, %s3863_s1 }
0x15bc   :  { %v2177_v37 = vpop.permute.xlu0 %2176 }
0x15bd   :  { %v2179_v10 = vsel %vm80_vm1, %v2177_v37, %v4672_v16 }
0x15be   :  { %2245 = vmatmul.mubr.f32.vlgmr.msra.gmra.mrb[18].mxu0 %v2179_v10 }
0x15bf   :  { %3511 = vmatpush1.bf16.msra.mxu0 %v3952_v27  ;;  %2315 = vmatprep.mubr.f32.mxu0 %v4932_v14 }
0x15c0   :  { %3513 = vmatprep.subr.bf16.mxu0 %v3958_v32 }
0x15c3   :  { %3515 = vmatpush1.bf16.msra.mxu0 %v3965_v40 }
0x15c4   :  { %3517 = vmatprep.subr.bf16.mxu0 %v3969_v45 }
0x15c7   :  { %3519 = vmatpush1.bf16.msra.mxu0 %v3976_v53 }
0x15c8   :  { %3521 = vmatprep.subr.bf16.mxu0 %v3981_v58 }
0x15cb   :  { %3523 = vmatpush1.bf16.msra.mxu0 %v3988_v2 }
0x15cc   :  { %3525 = vmatprep.subr.bf16.mxu0 %v3993_v11 }
0x15cf   :  { %3527 = vmatpush1.bf16.msra.mxu0 %v4000_v20 }
0x15d0   :  { %3529 = vmatprep.subr.bf16.mxu0 %v4005_v29 }
0x15d3   :  { %3531 = vmatpush1.bf16.msra.mxu0 %v4012_v39 }
0x15d4   :  { %3533 = vmatprep.subr.bf16.mxu0 %v4017_v47 }
0x15d7   :  { %3535 = vmatpush1.bf16.msra.mxu0 %v4024_v57 }
0x15d8   :  { %3537 = vmatprep.subr.bf16.mxu0 %v4029_v62 }
0x15db   :  { %3539 = vmatpush1.bf16.msra.mxu0 %v4036_v8 }
0x15dc   :  { %3541 = vmatprep.subr.bf16.mxu0 %v4524_v51 }
0x15de   :  { %2316 = vmatmul.mubr.f32.vlgmr.msra.gmra.mrb[20].mxu0 %v2179_v10 }
0x15df   :  { %3543 = vmatpush1.bf16.msra.mxu0 %v4535_v9  ;;  %2426 = vmatprep.mubr.f32.mxu0 %v4932_v14 }
0x15e0   :  { %3545 = vmatprep.subr.bf16.mxu0 %v4537_v15 }
0x15e3   :  { %3547 = vmatpush1.bf16.msra.mxu0 %v4553_v35 }
0x15e4   :  { %3549 = vmatprep.subr.bf16.mxu0 %v4556_v50 }
0x15e7   :  { %3551 = vmatpush1.bf16.msra.mxu0 %v4571_v12 }
0x15e8   :  { %3553 = vmatprep.subr.bf16.mxu0 %v4574_v43 }
0x15eb   :  { %3555 = vmatpush1.bf16.msra.mxu0 %v4583_v25 }
0x15ec   :  { %3637 = vmatprep.subr.bf16.mxu0 %v3943_v17 }
0x1691   :  { %v2246_v21 = vpop.f32.mrb[18].mxu0 }
0x1692   :  { %v2322_v26 = vadd.f32 %v2246_v21, %v4102_v3  ;;  %v2248_v63 = vpop.f32.mrb[19].mxu0 }
0x1693   :  { %v2323_v4 = vadd.f32 %v2248_v63, %v4098_v30 }
0x1694   :  { %3806 = vtanh.f32 %v2322_v26 }
0x1695   :  { %3808 = vtanh.f32 %v2323_v4 }
0x169e   :  { %v3807_v61 = vpop.eup %3806 }
0x169f   :  { %v3809_v0 = vpop.eup %3808  ;;  %v2326_v28 = vmul.f32 0.5, %v3807_v61 }
0x16a0   :  { %v2327_v33 = vmul.f32 0.5, %v3809_v0 }
0x16a1   :  { %v2328_v13 = vadd.f32 0.5, %v2326_v28 }
0x16a2   :  { %v2329_v22 = vadd.f32 0.5, %v2327_v33 }
0x16a3   :  { %v2332_v17 = vmul.f32 %v2328_v13, %v4669_v44 }
0x16a4   :  { %v2331_v46 = vsel %vm52_vm0, %v3809_v0, %v2329_v22 }
0x16a5   :  { %v2333_v18 = vmul.f32 %v2331_v46, %v2328_v13 }
0x16a7   :  { %2335 = vrot.lane.b32.xlu1 %v2333_v18, %s3863_s1 }
0x1719   :  { %v2336_v37 = vpop.permute.xlu1 %2335 }
0x171a   :  { %v4738_v10 = vadd.f32 %v2336_v37, %v2332_v17 }
0x171c   :  { %3810 = vtanh.f32 %v4738_v10 }
0x1726   :  { %v3811_v21 = vpop.eup %3810 }
0x1727   :  { %v4741_v26 = vmul.f32 %v3811_v21, %v2331_v46 }
0x1729   :  { %2358 = vrot.lane.b32.xlu0 %v4741_v26, %s3863_s1 }
0x179b   :  { %v2359_v63 = vpop.permute.xlu0 %2358 }
0x179c   :  { %2866 = vmatmul.mubr.msk.f32.vlgmr.msra.gmra.mrb[20].mxu0 %vm80_vm1, %v2359_v63 }
0x179d   :  { %3639 = vmatpush1.bf16.msra.mxu0 %v3949_v23  ;;  %2798 = vmatprep.mubr.f32.mxu0 %v4932_v14 }
0x179e   :  { %3641 = vmatprep.subr.bf16.mxu0 %v3956_v31 }
0x17a1   :  { %3643 = vmatpush1.bf16.msra.mxu0 %v3961_v36 }
0x17a2   :  { %3645 = vmatprep.subr.bf16.mxu0 %v3967_v41 }
0x17a5   :  { %3647 = vmatpush1.bf16.msra.mxu0 %v3972_v49 }
0x17a6   :  { %3649 = vmatprep.subr.bf16.mxu0 %v3978_v54 }
0x17a9   :  { %3651 = vmatpush1.bf16.msra.mxu0 %v3984_v1 }
0x17aa   :  { %3653 = vmatprep.subr.bf16.mxu0 %v3990_v6 }
0x17ad   :  { %3655 = vmatpush1.bf16.msra.mxu0 %v3996_v19 }
0x17ae   :  { %3657 = vmatprep.subr.bf16.mxu0 %v4002_v24 }
0x17b1   :  { %3659 = vmatpush1.bf16.msra.mxu0 %v4008_v38 }
0x17b2   :  { %3661 = vmatprep.subr.bf16.mxu0 %v4014_v42 }
0x17b5   :  { %3663 = vmatpush1.bf16.msra.mxu0 %v4020_v56 }
0x17b6   :  { %3665 = vmatprep.subr.bf16.mxu0 %v4026_v59 }
0x17b9   :  { %3667 = vmatpush1.bf16.msra.mxu0 %v4032_v7 }
0x186f   :  { %v2428_v23 = vpop.f32.mrb[20].mxu0 }
0x1870   :  { %v2429_v31 = vadd.f32 %v2428_v23, %v4619_v52  ;;  %v2430_v36 = vpop.f32.mrb[21].mxu0  ;;  %v4935_v23 = vld [vmem:[#allocation7_spill] sm:$0xff] }
0x1871   :  { %v2431_v41 = vadd.f32 %v2430_v36, %v4623_v34 }
0x1872   :  { %3812 = vtanh.f32 %v2429_v31 }
0x1873   :  { %3814 = vtanh.f32 %v2431_v41 }
0x187c   :  { %v3813_v49 = vpop.eup %3812 }
0x187d   :  { %v3815_v54 = vpop.eup %3814  ;;  %v2437_v1 = vmul.f32 0.5, %v3813_v49 }
0x187e   :  { %v2438_v6 = vmul.f32 0.5, %v3815_v54 }
0x187f   :  { %v2439_v24 = vadd.f32 0.5, %v2437_v1 }
0x1880   :  { %v2440_v19 = vadd.f32 0.5, %v2438_v6 }
0x1881   :  { %v2443_v56 = vmul.f32 %v2439_v24, %v4700_v60 }
0x1882   :  { %v2442_v38 = vsel %vm52_vm0, %v3815_v54, %v2440_v19 }
0x1883   :  { %v2444_v42 = vmul.f32 %v2442_v38, %v2439_v24  ;;  %v4937_v24 = vld [vmem:[#allocation9_spill] sm:$0xff] }
0x1885   :  { %2446 = vrot.lane.b32.xlu1 %v2444_v42, %s3863_s1 }
0x18f7   :  { %v2447_v59 = vpop.permute.xlu1 %2446 }
0x18f8   :  { %v4768_v7 = vadd.f32 %v2447_v59, %v2443_v56 }
0x18fa   :  { %3816 = vtanh.f32 %v4768_v7 }
0x1904   :  { %v3817_v44 = vpop.eup %3816 }
0x1905   :  { %v2451_v4 = vmul.f32 %v3817_v44, %v2442_v38 }
0x1907   :  { %2453 = vrot.lane.b32.xlu0 %v2451_v4, %s3863_s1  ;;  %v4938_v4 = vld [vmem:[#allocation10_spill] sm:$0xff] }
0x1979   :  { %v2454_v61 = vpop.permute.xlu0 %2453 }
0x197a   :  { %v2456_v0 = vsel %vm80_vm1, %v2454_v61, %v4741_v26 }
0x197b   :  { %2522 = vmatmul.mubr.f32.vlgmr.msra.gmra.mrb[18].mxu1 %v2456_v0 }
0x197c   :  { %3591 = vmatpush1.bf16.msra.mxu1 %v3952_v27  ;;  %2592 = vmatprep.mubr.f32.mxu1 %v4932_v14 }
0x197d   :  { %3593 = vmatprep.subr.bf16.mxu1 %v3958_v32 }
0x1980   :  { %3595 = vmatpush1.bf16.msra.mxu1 %v3965_v40 }
0x1981   :  { %3597 = vmatprep.subr.bf16.mxu1 %v3969_v45 }
0x1984   :  { %3599 = vmatpush1.bf16.msra.mxu1 %v3976_v53 }
0x1985   :  { %3601 = vmatprep.subr.bf16.mxu1 %v3981_v58 }
0x1988   :  { %3603 = vmatpush1.bf16.msra.mxu1 %v3988_v2 }
0x1989   :  { %3605 = vmatprep.subr.bf16.mxu1 %v3993_v11 }
0x198c   :  { %3607 = vmatpush1.bf16.msra.mxu1 %v4000_v20 }
0x198d   :  { %3609 = vmatprep.subr.bf16.mxu1 %v4005_v29 }
0x1990   :  { %3611 = vmatpush1.bf16.msra.mxu1 %v4012_v39 }
0x1991   :  { %3613 = vmatprep.subr.bf16.mxu1 %v4017_v47 }
0x1994   :  { %3615 = vmatpush1.bf16.msra.mxu1 %v4024_v57 }
0x1995   :  { %3617 = vmatprep.subr.bf16.mxu1 %v4029_v62 }
0x1998   :  { %3619 = vmatpush1.bf16.msra.mxu1 %v4036_v8 }
0x1999   :  { %3621 = vmatprep.subr.bf16.mxu1 %v4524_v51 }
0x199b   :  { %2593 = vmatmul.mubr.f32.vlgmr.msra.gmra.mrb[20].mxu1 %v2456_v0 }
0x199c   :  { %3623 = vmatpush1.bf16.msra.mxu1 %v4535_v9  ;;  %2703 = vmatprep.mubr.f32.mxu1 %v4932_v14 }
0x199d   :  { %3625 = vmatprep.subr.bf16.mxu1 %v4537_v15 }
0x19a0   :  { %3627 = vmatpush1.bf16.msra.mxu1 %v4553_v35 }
0x19a1   :  { %3629 = vmatprep.subr.bf16.mxu1 %v4556_v50 }
0x19a4   :  { %3631 = vmatpush1.bf16.msra.mxu1 %v4571_v12 }
0x19a5   :  { %3633 = vmatprep.subr.bf16.mxu1 %v4574_v43 }
0x19a8   :  { %3635 = vmatpush1.bf16.msra.mxu1 %v4583_v25 }
0x1a4e   :  { %v2523_v27 = vpop.f32.mrb[18].mxu1 }
0x1a4f   :  { %v2599_v32 = vadd.f32 %v2523_v27, %v4102_v3  ;;  %v2525_v40 = vpop.f32.mrb[19].mxu1 }
0x1a50   :  { %v2600_v45 = vadd.f32 %v2525_v40, %v4098_v30 }
0x1a51   :  { %3818 = vtanh.f32 %v2599_v32 }
0x1a52   :  { %3820 = vtanh.f32 %v2600_v45 }
0x1a5b   :  { %v3819_v53 = vpop.eup %3818 }
0x1a5c   :  { %v3821_v58 = vpop.eup %3820  ;;  %v2603_v2 = vmul.f32 0.5, %v3819_v53 }
0x1a5d   :  { %v2604_v11 = vmul.f32 0.5, %v3821_v58 }
0x1a5e   :  { %v2605_v29 = vadd.f32 0.5, %v2603_v2 }
0x1a5f   :  { %v2606_v20 = vadd.f32 0.5, %v2604_v11 }
0x1a60   :  { %v2609_v57 = vmul.f32 %v2605_v29, %v4738_v10 }
0x1a61   :  { %v2608_v39 = vsel %vm52_vm0, %v3821_v58, %v2606_v20 }
0x1a62   :  { %v2610_v47 = vmul.f32 %v2608_v39, %v2605_v29 }
0x1a64   :  { %2612 = vrot.lane.b32.xlu1 %v2610_v47, %s3863_s1 }
0x1ad6   :  { %v2613_v62 = vpop.permute.xlu1 %2612 }
0x1ad7   :  { %v4805_v8 = vadd.f32 %v2613_v62, %v2609_v57  ;;  %v4939_v57 = vld [vmem:[#allocation11_spill] sm:$0xff] }
0x1ad9   :  { %3822 = vtanh.f32 %v4805_v8 }
0x1ae3   :  { %v3823_v14 = vpop.eup %3822 }
0x1ae4   :  { %v4808_v51 = vmul.f32 %v3823_v14, %v2608_v39 }
0x1ae6   :  { %2635 = vrot.lane.b32.xlu0 %v4808_v51, %s3863_s1 }
0x1b58   :  { %v2636_v9 = vpop.permute.xlu0 %2635 }
0x1b59   :  { %2867 = vmatmul.mubr.msk.f32.vlgmr.msra.gmra.mrb[20].mxu1 %vm80_vm1, %v2636_v9 }
0x1c2c   :  { %v2705_v15 = vpop.f32.mrb[20].mxu1 }
0x1c2d   :  { %v2706_v35 = vadd.f32 %v2705_v15, %v4619_v52  ;;  %v2707_v50 = vpop.f32.mrb[21].mxu1  ;;  %v2848_v52 = vld [vmem:[%s4910_s5] ss:$0 sm:$0xff] }
0x1c2e   :  { %v2708_v12 = vadd.f32 %v2707_v50, %v4623_v34 }
0x1c2f   :  { %3824 = vtanh.f32 %v2706_v35 }
0x1c30   :  { %3826 = vtanh.f32 %v2708_v12 }
0x1c39   :  { %v3825_v43 = vpop.eup %3824 }
0x1c3a   :  { %v3827_v25 = vpop.eup %3826  ;;  %v2714_v60 = vmul.f32 0.5, %v3825_v43 }
0x1c3b   :  { %v2715_v28 = vmul.f32 0.5, %v3827_v25 }
0x1c3c   :  { %v2716_v22 = vadd.f32 0.5, %v2714_v60 }
0x1c3d   :  { %v2717_v33 = vadd.f32 0.5, %v2715_v28 }
0x1c3e   :  { %v2720_v34 = vmul.f32 %v2716_v22, %v4768_v7 }
0x1c3f   :  { %v2719_v13 = vsel %vm52_vm0, %v3827_v25, %v2717_v33 }
0x1c40   :  { %v2721_v46 = vmul.f32 %v2719_v13, %v2716_v22 }
0x1c42   :  { %2723 = vrot.lane.b32.xlu1 %v2721_v46, %s3863_s1 }
0x1c46   :  { %323 = vrot.lane.b32.xlu1 %v2848_v52, %s3863_s1 }
0x1cb4   :  { %v2724_v18 = vpop.permute.xlu1 %2723 }
0x1cb5   :  { %v2726_v17 = vadd.f32 %v2724_v18, %v2720_v34  ;;  %v3865_v18 = vmov 0  }
0x1cb6   :  { %3690 = vset.pattern.permute.xlu1 %v3865_v18  ;;  %3691 = vset.pattern.permute.xlu0 %v3865_v18 }
0x1cb7   :  { %3828 = vtanh.f32 %v2726_v17 }
0x1cb8   :  { %v4823_v21 = vpop.permute.xlu1 %323 }
0x1cb9   :  { %v326_v63 = vmul.f32 %v4823_v21, %v4123_v55  ;;  %v536_v31 = vmul.f32 %v4935_v23, %v4823_v21  ;;  %v4936_v55 = vld [vmem:[#allocation8_spill] sm:$0xff]  ;;  %v944_v38 = vmul.f32 %v4937_v24, %v4823_v21  ;;  %v1148_v61 = vmul.f32 %v4938_v4, %v4823_v21 }
0x1cba   :  { %v740_v19 = vmul.f32 %v4936_v55, %v4823_v21  ;;  %v1352_v62 = vmul.f32 %v4939_v57, %v4823_v21  ;;  %v1760_v28 = vmul.f32 %v4592_v48, %v4823_v21  ;;  %v2341_v46 = vmul.f32 %v4741_v26, %v4823_v21 }
0x1cbb   :  { %v2618_v48 = vmul.f32 %v4808_v51, %v4823_v21 }
0x1cc1   :  { %v3829_v37 = vpop.eup %3828 }
0x1cc2   :  { %v2728_v10 = vmul.f32 %v3829_v37, %v2719_v13  ;;  %v2064_v13 = vmul.f32 %v4672_v16, %v4823_v21 }
0x1cc4   :  { %2730 = vrot.lane.b32.xlu0 %v2728_v10, %s3863_s1 }
0x1cc8   :  { %328 = vrot.lane.b32.xlu0 %v326_v63, %s3863_s1 }
0x1ccc   :  { %538 = vrot.lane.b32.xlu0 %v536_v31, %s3863_s1 }
0x1d36   :  { %v2731_v36 = vpop.permute.xlu0 %2730 }
0x1d37   :  { %v2733_v41 = vsel %vm80_vm1, %v2731_v36, %v4808_v51 }
0x1d38   :  { %2799 = vmatmul.mubr.f32.vlgmr.msra.gmra.mrb[22].mxu0 %v2733_v41 }
0x1d3a   :  { %v329_v49 = vpop.permute.xlu0 %328 }
0x1d3b   :  { %v331_v54 = vsel %vm80_vm1, %v329_v49, 0.0  ;;  %v2849_v49 = vld [vmem:[#allocation2] ss:$0 sm:$0xff] }
0x1d3c   :  { %332 = vadd.xlane.f32.xlu1 %v331_v54 }
0x1d3e   :  { %v539_v1 = vpop.permute.xlu0 %538 }
0x1d3f   :  { %v541_v6 = vsel %vm80_vm1, %v539_v1, 0.0 }
0x1d40   :  { %542 = vadd.xlane.f32.xlu0 %v541_v6 }
0x1d56   :  { %742 = vrot.lane.b32.xlu0 %v740_v19, %s3863_s1 }
0x1d5a   :  { %946 = vrot.lane.b32.xlu0 %v944_v38, %s3863_s1 }
0x1dc9   :  { %v4849_v32 = vpop.xlane.xlu1 %332 }
0x1dca   :  { %v340_v19 = vadd.f32 %v2849_v49, %v4849_v32 }
0x1dcd   :  { %v4842_v42 = vpop.xlane.xlu0 %542 }
0x1dce   :  { %v544_v54 = vadd.f32 %v2849_v49, %v4842_v42 }
0x1dd1   :  { %v743_v56 = vpop.permute.xlu0 %742 }
0x1dd2   :  { %v745_v59 = vsel %vm80_vm1, %v743_v56, 0.0 }
0x1dd3   :  { %746 = vadd.xlane.f32.xlu1 %v745_v59 }
0x1dd5   :  { %v947_v7 = vpop.permute.xlu0 %946 }
0x1dd6   :  { %v949_v44 = vsel %vm80_vm1, %v947_v7, 0.0 }
0x1dd7   :  { %950 = vadd.xlane.f32.xlu0 %v949_v44 }
0x1de4   :  { %1150 = vrot.lane.b32.xlu1 %v1148_v61, %s3863_s1 }
0x1e0b   :  { %v2800_v0 = vpop.f32.mrb[22].mxu0 }
0x1e0c   :  { %v2802_v27 = vpop.f32.mrb[23].mxu0  ;;  %v2805_v2 = vadd.f32 %v2800_v0, %v4102_v3  ;;  %v4940_v3 = vld [vmem:[#allocation12_spill] sm:$0xff] }
0x1e0d   :  { %v2806_v45 = vadd.f32 %v2802_v27, %v4098_v30  ;;  %v1556_v15 = vmul.f32 %v4940_v3, %v4823_v21 }
0x1e0f   :  { %3830 = vtanh.f32 %v2806_v45 }
0x1e10   :  { %3832 = vtanh.f32 %v2805_v2 }
0x1e19   :  { %v3831_v11 = vpop.eup %3830 }
0x1e1a   :  { %v2810_v20 = vmul.f32 0.5, %v3831_v11  ;;  %v3833_v29 = vpop.eup %3832 }
0x1e1b   :  { %v2809_v47 = vmul.f32 0.5, %v3833_v29 }
0x1e1c   :  { %v2812_v39 = vadd.f32 0.5, %v2810_v20 }
0x1e1d   :  { %v2811_v30 = vadd.f32 0.5, %v2809_v47 }
0x1e1e   :  { %v2814_v14 = vsel %vm52_vm0, %v3831_v11, %v2812_v39 }
0x1e1f   :  { %v2816_v9 = vmul.f32 %v2814_v14, %v2811_v30  ;;  %v2815_v33 = vmul.f32 %v2811_v30, %v4805_v8 }
0x1e60   :  { %v4851_v40 = vpop.xlane.xlu1 %746 }
0x1e61   :  { %v748_v24 = vadd.f32 %v2849_v49, %v4851_v40 }
0x1e64   :  { %v1151_v53 = vpop.permute.xlu1 %1150  ;;  %v951_v35 = vpop.xlane.xlu0 %950 }
0x1e65   :  { %v1153_v58 = vsel %vm80_vm1, %v1151_v53, 0.0  ;;  %v952_v1 = vadd.f32 %v2849_v49, %v951_v35 }
0x1e66   :  { %1154 = vadd.xlane.f32.xlu0 %v1153_v58  ;;  %v4941_v58 = vld [vmem:[#allocation6_spill] sm:$0xff] }
0x1e67   :  { %vm341_vm2 = vcmp.eq.s32.totalorder %v4941_v58, 0  ;;  %vm545_vm3 = vcmp.eq.s32.totalorder %v4941_v58, 1  ;;  %vm749_vm4 = vcmp.eq.s32.totalorder %v4941_v58, 2  ;;  %vm953_vm5 = vcmp.eq.s32.totalorder %v4941_v58, 3 }
0x1e68   :  { %vm1157_vm6 = vcmp.eq.s32.totalorder %v4941_v58, 4  ;;  %vm1361_vm7 = vcmp.eq.s32.totalorder %v4941_v58, 5  ;;  %vm1565_vm8 = vcmp.eq.s32.totalorder %v4941_v58, 6  ;;  %vm1769_vm9 = vcmp.eq.s32.totalorder %v4941_v58, 7 }
0x1e69   :  { %vm2073_vm10 = vcmp.eq.s32.totalorder %v4941_v58, 8  ;;  %vm2350_vm11 = vcmp.eq.s32.totalorder %v4941_v58, 9  ;;  %vm2627_vm12 = vcmp.eq.s32.totalorder %v4941_v58, 10  ;;  %vm2833_vm13 = vcmp.eq.s32.totalorder %v4941_v58, 11 }
0x1e7c   :  { %1354 = vrot.lane.b32.xlu0 %v1352_v62, %s3863_s1 }
0x1e80   :  { %2818 = vrot.lane.b32.xlu0 %v2816_v9, %s3863_s1 }
0x1e84   :  { %1558 = vrot.lane.b32.xlu0 %v1556_v15, %s3863_s1 }
0x1ef3   :  { %v1155_v50 = vpop.xlane.xlu0 %1154 }
0x1ef4   :  { %v1156_v6 = vadd.f32 %v2849_v49, %v1155_v50 }
0x1ef7   :  { %v1355_v12 = vpop.permute.xlu0 %1354 }
0x1ef8   :  { %v1357_v43 = vsel %vm80_vm1, %v1355_v12, 0.0 }
0x1ef9   :  { %1358 = vadd.xlane.f32.xlu1 %v1357_v43 }
0x1efb   :  { %v2819_v25 = vpop.permute.xlu0 %2818 }
0x1efc   :  { %v2821_v22 = vadd.f32 %v2819_v25, %v2815_v33 }
0x1efe   :  { %3834 = vtanh.f32 %v2821_v22 }
0x1eff   :  { %v1559_v5 = vpop.permute.xlu0 %1558 }
0x1f00   :  { %v1561_v60 = vsel %vm80_vm1, %v1559_v5, 0.0 }
0x1f01   :  { %1562 = vadd.xlane.f32.xlu0 %v1561_v60 }
0x1f08   :  { %v3835_v52 = vpop.eup %3834 }
0x1f09   :  { %v2823_v34 = vmul.f32 %v3835_v52, %v2814_v14 }
0x1f0a   :  { %1762 = vrot.lane.b32.xlu1 %v1760_v28, %s3863_s1 }
0x1f0b   :  { %v2824_v8 = vmul.f32 %v2823_v34, %v4823_v21 }
0x1f17   :  { %2066 = vrot.lane.b32.xlu0 %v2064_v13, %s3863_s1 }
0x1f1b   :  { %2343 = vrot.lane.b32.xlu0 %v2341_v46, %s3863_s1 }
0x1f1f   :  { %2620 = vrot.lane.b32.xlu0 %v2618_v48, %s3863_s1 }
0x1f23   :  { %2826 = vrot.lane.b32.xlu0 %v2824_v8, %s3863_s1 }
0x1f86   :  { %v1359_v16 = vpop.xlane.xlu1 %1358 }
0x1f87   :  { %v1360_v38 = vadd.f32 %v2849_v49, %v1359_v16 }
0x1f8a   :  { %v1763_v17 = vpop.permute.xlu1 %1762 }
0x1f8b   :  { %v1765_v26 = vsel %vm80_vm1, %v1763_v17, 0.0 }
0x1f8c   :  { %1766 = vadd.xlane.f32.xlu1 %v1765_v26 }
0x1f8e   :  { %v1563_v37 = vpop.xlane.xlu0 %1562 }
0x1f8f   :  { %v1564_v55 = vadd.f32 %v2849_v49, %v1563_v37 }
0x1f92   :  { %v2067_v10 = vpop.permute.xlu0 %2066 }
0x1f93   :  { %v2069_v63 = vsel %vm80_vm1, %v2067_v10, 0.0 }
0x1f94   :  { %2070 = vadd.xlane.f32.xlu0 %v2069_v63 }
0x1f96   :  { %v2344_v51 = vpop.permute.xlu0 %2343 }
0x1f97   :  { %v2346_v23 = vsel %vm80_vm1, %v2344_v51, 0.0 }
0x1f98   :  { %2347 = vadd.xlane.f32.xlu1 %v2346_v23 }
0x1f9a   :  { %v2621_v21 = vpop.permute.xlu0 %2620 }
0x1f9b   :  { %v2623_v31 = vsel %vm80_vm1, %v2621_v21, 0.0 }
0x1f9c   :  { %2624 = vadd.xlane.f32.xlu0 %v2623_v31 }
0x1f9e   :  { %v2827_v36 = vpop.permute.xlu0 %2826 }
0x1f9f   :  { %v2829_v41 = vsel %vm80_vm1, %v2827_v36, 0.0 }
0x1fa0   :  { %2830 = vadd.xlane.f32.xlu0 %v2829_v41 }
0x1fa9   :  { %548 = vperm.xlu1 %3690, %v544_v54  }
0x1fad   :  { %956 = vperm.xlu1 %3690, %v952_v1  }
0x1fb1   :  { %1160 = vperm.xlu1 %3690, %v1156_v6  }
0x1fb5   :  { %1568 = vperm.xlu1 %3690, %v1564_v55  }
0x1fb6   :  { %344 = vperm.xlu0 %3691, %v340_v19  }
0x1fba   :  { %752 = vperm.xlu0 %3691, %v748_v24  }
0x1fbe   :  { %1364 = vperm.xlu0 %3691, %v1360_v38  }
0x2019   :  { %v1767_v56 = vpop.xlane.xlu1 %1766 }
0x201a   :  { %v1768_v59 = vadd.f32 %v2849_v49, %v1767_v56 }
0x201c   :  { %1772 = vperm.xlu1 %3690, %v1768_v59  }
0x2021   :  { %v2071_v7 = vpop.xlane.xlu0 %2070 }
0x2022   :  { %v2072_v42 = vadd.f32 %v2849_v49, %v2071_v7 }
0x2024   :  { %2076 = vperm.xlu1 %3690, %v2072_v42  }
0x2025   :  { %v2348_v44 = vpop.xlane.xlu1 %2347 }
0x2026   :  { %v2349_v4 = vadd.f32 %v2849_v49, %v2348_v44 }
0x2028   :  { %2353 = vperm.xlu0 %3691, %v2349_v4  }
0x2029   :  { %v2625_v61 = vpop.xlane.xlu0 %2624  ;;  %v549_v45 = vpop.permute.xlu1 %548 }
0x202a   :  { %v2626_v0 = vadd.f32 %v2849_v49, %v2625_v61 }
0x202c   :  { %2630 = vperm.xlu1 %3690, %v2626_v0  }
0x202d   :  { %v2831_v27 = vpop.xlane.xlu0 %2830  ;;  %v957_v40 = vpop.permute.xlu1 %956 }
0x202e   :  { %v2832_v32 = vadd.f32 %v2849_v49, %v2831_v27 }
0x2030   :  { %2836 = vperm.xlu0 %3691, %v2832_v32  }
0x2031   :  { %v1161_v2 = vpop.permute.xlu1 %1160 }
0x2035   :  { %v345_v53 = vpop.permute.xlu0 %344  ;;  %v1569_v47 = vpop.permute.xlu1 %1568 }
0x2036   :  { %v347_v11 = vsel %vm341_vm2, %v345_v53, 0.0 }
0x2037   :  { %v551_v29 = vsel %vm545_vm3, %v549_v45, %v347_v11 }
0x2039   :  { %v753_v20 = vpop.permute.xlu0 %752 }
0x203a   :  { %v755_v39 = vsel %vm749_vm4, %v753_v20, %v551_v29 }
0x203b   :  { %v959_v57 = vsel %vm953_vm5, %v957_v40, %v755_v39 }
0x203c   :  { %v1163_v14 = vsel %vm1157_vm6, %v1161_v2, %v959_v57 }
0x203d   :  { %v1365_v30 = vpop.permute.xlu0 %1364 }
0x203e   :  { %v1367_v9 = vsel %vm1361_vm7, %v1365_v30, %v1163_v14 }
0x203f   :  { %v1571_v15 = vsel %vm1565_vm8, %v1569_v47, %v1367_v9 }
0x209b   :  { %v1773_v62 = vpop.permute.xlu1 %1772 }
0x209c   :  { %v1775_v50 = vsel %vm1769_vm9, %v1773_v62, %v1571_v15 }
0x20a3   :  { %v2077_v3 = vpop.permute.xlu1 %2076 }
0x20a4   :  { %v2079_v43 = vsel %vm2073_vm10, %v2077_v3, %v1775_v50 }
0x20a7   :  { %v2354_v35 = vpop.permute.xlu0 %2353 }
0x20a8   :  { %v2356_v25 = vsel %vm2350_vm11, %v2354_v35, %v2079_v43 }
0x20ab   :  { %v2631_v12 = vpop.permute.xlu1 %2630 }
0x20ac   :  { %v2633_v5 = vsel %vm2627_vm12, %v2631_v12, %v2356_v25 }
0x20af   :  { %v2837_v60 = vpop.permute.xlu0 %2836 }
0x20b0   :  { %v2839_v28 = vsel %vm2833_vm13, %v2837_v60, %v2633_v5 }
0x20b1   :  { %2840 = vst [vmem:[%s4912_s7] sm:$0xff] %v2839_v28 }
0x20b2   :  { %2845 = vsyncpa [#allocation4], 1 }

</bundles_post_ra>
